<compile_context>
chip_gen: v7x
topology: tpu7x:2x2x1
jax: 0.10.0
libtpu: 0.0.40
codegen_flags: <defaults>
</compile_context>

<pallas_src>
import functools

import jax
import jax.numpy as jnp
from jax import lax
from jax.experimental import pallas as pl
from jax.experimental.pallas import tpu as pltpu


def _logsigmoid(x):
    # numerically-stable log-sigmoid using VPU/EUP ops only
    return jnp.minimum(x, 0.0) - jnp.log(1.0 + jnp.exp(-jnp.abs(x)))


# ---------------------------------------------------------------------------
# Fused kernel: for a block of TB sequences
#   - gather & average u/v/neg embedding rows from the VMEM-resident tables
#   - compute the per-sequence skip-gram log-likelihood
#   - write it lane-dense to out_ref (TB, 128)
# Index / length matrices live in SMEM via scalar prefetch.
# ---------------------------------------------------------------------------
def _fused_node2vec_kernel(phr_idx, phr_len, pos_idx, pos_len,
                           neg_idx, neg_len,           # SMEM (scalar prefetch)
                           u_tab, v_tab,               # VMEM-resident tables
                           out_ref,                    # (TB, 128) per-seq loss
                           *, neg_sample_num):
    b = pl.program_id(0)
    TB = out_ref.shape[0]
    D = u_tab.shape[1]
    K = neg_sample_num

    def gather_avg(tab_ref, idx_s, len_s, row):
        """sum_l tab[idx_s[row, l]] / len_s[row], padding masked -> (1, D)."""
        L = idx_s.shape[1]
        n = len_s[row]

        def body(l, acc):
            r = tab_ref[pl.ds(idx_s[row, l], 1), :]          # (1, D) VMEM row
            m = (l < n).astype(jnp.float32)                  # mask padding
            return acc + r * m

        acc = lax.fori_loop(0, L, body, jnp.zeros((1, D), jnp.float32),
                            unroll=True)
        return acc / jnp.maximum(n, 1).astype(jnp.float32)   # guard len==0

    # averaged embeddings for the TB sequences of this block
    emb_u = jnp.concatenate(
        [gather_avg(u_tab, phr_idx, phr_len, b * TB + i) for i in range(TB)],
        axis=0)                                              # (TB, D)
    emb_v = jnp.concatenate(
        [gather_avg(v_tab, pos_idx, pos_len, b * TB + i) for i in range(TB)],
        axis=0)                                              # (TB, D)

    score = jnp.sum(emb_u * emb_v, axis=1, keepdims=True)    # (TB, 1)
    per_seq = _logsigmoid(score)

    # negatives: no jnp.repeat of emb_u -- per-k broadcast multiply + lane reduce
    for k in range(K):
        neg_k = jnp.concatenate(
            [gather_avg(v_tab, neg_idx, neg_len, (b * TB + i) * K + k)
             for i in range(TB)],
            axis=0)                                          # (TB, D)
        neg_score = jnp.sum(neg_k * emb_u, axis=1, keepdims=True)
        per_seq = per_seq + _logsigmoid(-neg_score)

    # lane-dense (unmasked) store; wrapper reads column 0
    out_ref[...] = jnp.broadcast_to(per_seq, (TB, 128))


def average_node2vec_loss(phr_idx, pos_idx, neg_idx,
                          phr_len, pos_len, neg_len,
                          u_table, v_table, neg_sample_num):
    """Scalar skip-gram loss; same value as the PyTorch module's forward()."""
    B, _ = phr_idx.shape
    V, D = u_table.shape
    K = int(neg_sample_num)

    # sequences per grid step: sublane-dense (multiple of 8) when possible,
    # otherwise one block covering the whole (small) batch.
    TB = 8 if B % 8 == 0 else B
    num_blocks = B // TB
    # TODO(synk): pad B up to a multiple of 8 (with len=0 dummies) for
    # sublane-dense blocks when B is large and not divisible by 8; and fall
    # back to a manual HBM-gather path when 2*V*D*4 bytes exceeds the VMEM
    # budget (~100 MiB v5e/v6e, ~48 MiB v7x).

    table_bytes = (u_table.size + v_table.size) * 4
    tokens = int(phr_idx.size + pos_idx.size + neg_idx.size)
    cost = pl.CostEstimate(
        flops=2 * tokens * D + 4 * B * (1 + K) * D,
        transcendentals=2 * B * (1 + K),
        bytes_accessed=table_bytes + 4 * tokens + B * 128 * 4)
    # enough scoped VMEM for the resident tables, capped to stay safe on v7x
    vmem_limit = int(min(48 << 20, max(32 << 20, 4 * table_bytes)))

    per_seq = pl.pallas_call(
        functools.partial(_fused_node2vec_kernel, neg_sample_num=K),
        out_shape=jax.ShapeDtypeStruct((B, 128), jnp.float32),
        grid_spec=pltpu.PrefetchScalarGridSpec(
            num_scalar_prefetch=6,
            grid=(num_blocks,),
            in_specs=[
                # constant block index -> table DMA'd once, resident in VMEM
                pl.BlockSpec((V, D), lambda b, *_: (0, 0)),   # u_table
                pl.BlockSpec((V, D), lambda b, *_: (0, 0)),   # v_table
            ],
            out_specs=pl.BlockSpec((TB, 128), lambda b, *_: (b, 0)),
        ),
        compiler_params=pltpu.CompilerParams(
            # sequence-block axis splits across v7x TensorCores
            dimension_semantics=("parallel",),
            vmem_limit_bytes=vmem_limit),
        cost_estimate=cost,
    )(phr_idx, phr_len, pos_idx, pos_len, neg_idx, neg_len, u_table, v_table)

    return -jnp.mean(per_seq[:, 0])


# ---------------------------------------------------------------------------
# Pure-JAX reference mirroring the PyTorch module.
# ---------------------------------------------------------------------------
def _reference_loss(phr_idx, pos_idx, neg_idx,
                    phr_len, pos_len, neg_len,
                    u_table, v_table, B, K, D):
    phr_len = phr_len.astype(jnp.float32)[:, None]
    pos_len = pos_len.astype(jnp.float32)[:, None]
    neg_len = neg_len.astype(jnp.float32)[:, None]
    emb_u = jnp.sum(u_table[phr_idx], axis=1) / phr_len          # (B, D)
    emb_v = jnp.sum(v_table[pos_idx], axis=1) / pos_len          # (B, D)
    neg_v = (jnp.sum(v_table[neg_idx], axis=1) / neg_len).reshape(B, K, D)
    score = jnp.sum(emb_u * emb_v, axis=1)
    log_target = jax.nn.log_sigmoid(score)
    neg_score = jnp.einsum('bkd,bd->bk', neg_v, emb_u)
    sum_log = jnp.sum(jax.nn.log_sigmoid(-neg_score), axis=1)
    return -jnp.mean(log_target + sum_log)


if __name__ == "__main__":
    # module hyper-params (small, consistent with __init__ signature);
    # embedding_dim = 128 keeps the hot tensors lane-dense on TPU.
    vocab_size, embedding_dim = 64, 128
    neg_sample_num, batch_size, window_size = 2, 4, 4
    Lu, Lv, Ln = 8, 6, 6                       # padded sequence lengths

    key = jax.random.PRNGKey(0)
    k_u, k_v, k_phr, k_pos, k_neg = jax.random.split(key, 5)

    # Deterministic parameter init (shapes from __init__).  The PyTorch code
    # zero-inits v_embeddings, which makes the loss degenerate; we use the same
    # small-uniform scheme as u_embeddings for a non-trivial test, keeping the
    # padding row (index 0) at zero as the module does.
    initrange = 0.5 / embedding_dim
    u_table = jax.random.uniform(k_u, (vocab_size, embedding_dim),
                                 jnp.float32, -initrange, initrange).at[0].set(0.0)
    v_table = jax.random.uniform(k_v, (vocab_size, embedding_dim),
                                 jnp.float32, -initrange, initrange).at[0].set(0.0)

    def make_padded(k, n, lmax):
        k1, k2 = jax.random.split(k)
        lens = jax.random.randint(k1, (n,), 1, lmax + 1)
        idx = jax.random.randint(k2, (n, lmax), 1, vocab_size)
        posn = jnp.arange(lmax)[None, :]
        idx = jnp.where(posn < lens[:, None], idx, 0)          # pad with id 0
        return idx.astype(jnp.int32), lens.astype(jnp.int32)

    phr_idx, phr_lens = make_padded(k_phr, batch_size, Lu)
    pos_idx, pos_lens = make_padded(k_pos, batch_size, Lv)
    neg_idx, neg_lens = make_padded(k_neg, batch_size * neg_sample_num, Ln)

    loss = average_node2vec_loss(phr_idx, pos_idx, neg_idx,
                                 phr_lens, pos_lens, neg_lens,
                                 u_table, v_table, neg_sample_num)
    loss = jax.block_until_ready(loss)

    ref = _reference_loss(phr_idx, pos_idx, neg_idx,
                          phr_lens, pos_lens, neg_lens,
                          u_table, v_table,
                          batch_size, neg_sample_num, embedding_dim)
    ref = jax.block_until_ready(ref)

    assert jnp.allclose(loss, ref, rtol=1e-3, atol=1e-5), (loss, ref)
    print("KERNEL_OK")
</pallas_src>

<mosaic_0001>
module attributes {stable_mosaic.version = 11 : i64} {
  func.func @_fused_node2vec_kernel(%arg0: i32, %arg1: memref<4x8xi32, #tpu.memory_space<smem>>, %arg2: memref<4xi32, #tpu.memory_space<smem>>, %arg3: memref<4x6xi32, #tpu.memory_space<smem>>, %arg4: memref<4xi32, #tpu.memory_space<smem>>, %arg5: memref<8x6xi32, #tpu.memory_space<smem>>, %arg6: memref<8xi32, #tpu.memory_space<smem>>, %arg7: memref<64x128xf32, #tpu.memory_space<vmem>>, %arg8: memref<64x128xf32, #tpu.memory_space<vmem>>, %arg9: memref<4x128xf32, #tpu.memory_space<vmem>>) attributes {dimension_semantics = [#tpu.dimension_semantics<parallel>], iteration_bounds = array<i64: 1>, scalar_prefetch = 6 : i64, scratch_operands = 0 : i64, tpu.core_type = #tpu.core_type<tc>, window_params = [{pipeline_mode = #tpu.pipeline_mode<synchronous>, transform_indices = @transform_0, window_bounds = array<i64: 64, 128>}, {pipeline_mode = #tpu.pipeline_mode<synchronous>, transform_indices = @transform_1, window_bounds = array<i64: 64, 128>}, {transform_indices = @transform_2, window_bounds = array<i64: 4, 128>}]} {
    %c4_i32 = arith.constant 4 : i32
    %0 = arith.muli %arg0, %c4_i32 : i32
    %c0_i32 = arith.constant 0 : i32
    %1 = arith.addi %0, %c0_i32 : i32
    %2 = arith.index_cast %1 : i32 to index
    %3 = memref.load %arg2[%2] : memref<4xi32, #tpu.memory_space<smem>>
    %cst = arith.constant 0.000000e+00 : f32
    %4 = vector.broadcast %cst : f32 to vector<1x128xf32>
    %c0_i32_0 = arith.constant 0 : i32
    %5 = arith.index_cast %1 : i32 to index
    %6 = arith.index_cast %c0_i32_0 : i32 to index
    %7 = memref.load %arg1[%5, %6] : memref<4x8xi32, #tpu.memory_space<smem>>
    %8 = arith.index_cast %7 : i32 to index
    %c0 = arith.constant 0 : index
    %9 = vector.load %arg7[%8, %c0] : memref<64x128xf32, #tpu.memory_space<vmem>>, vector<1x128xf32>
    %10 = arith.cmpi slt, %c0_i32_0, %3 : i32
    %11 = arith.extui %10 : i1 to i32
    %12 = arith.sitofp %11 : i32 to f32
    %13 = vector.broadcast %12 : f32 to vector<1x128xf32>
    %14 = arith.mulf %9, %13 : vector<1x128xf32>
    %15 = arith.addf %4, %14 : vector<1x128xf32>
    %c1_i32 = arith.constant 1 : i32
    %16 = arith.index_cast %1 : i32 to index
    %17 = arith.index_cast %c1_i32 : i32 to index
    %18 = memref.load %arg1[%16, %17] : memref<4x8xi32, #tpu.memory_space<smem>>
    %19 = arith.index_cast %18 : i32 to index
    %c0_1 = arith.constant 0 : index
    %20 = vector.load %arg7[%19, %c0_1] : memref<64x128xf32, #tpu.memory_space<vmem>>, vector<1x128xf32>
    %21 = arith.cmpi slt, %c1_i32, %3 : i32
    %22 = arith.extui %21 : i1 to i32
    %23 = arith.sitofp %22 : i32 to f32
    %24 = vector.broadcast %23 : f32 to vector<1x128xf32>
    %25 = arith.mulf %20, %24 : vector<1x128xf32>
    %26 = arith.addf %15, %25 : vector<1x128xf32>
    %c2_i32 = arith.constant 2 : i32
    %27 = arith.index_cast %1 : i32 to index
    %28 = arith.index_cast %c2_i32 : i32 to index
    %29 = memref.load %arg1[%27, %28] : memref<4x8xi32, #tpu.memory_space<smem>>
    %30 = arith.index_cast %29 : i32 to index
    %c0_2 = arith.constant 0 : index
    %31 = vector.load %arg7[%30, %c0_2] : memref<64x128xf32, #tpu.memory_space<vmem>>, vector<1x128xf32>
    %32 = arith.cmpi slt, %c2_i32, %3 : i32
    %33 = arith.extui %32 : i1 to i32
    %34 = arith.sitofp %33 : i32 to f32
    %35 = vector.broadcast %34 : f32 to vector<1x128xf32>
    %36 = arith.mulf %31, %35 : vector<1x128xf32>
    %37 = arith.addf %26, %36 : vector<1x128xf32>
    %c3_i32 = arith.constant 3 : i32
    %38 = arith.index_cast %1 : i32 to index
    %39 = arith.index_cast %c3_i32 : i32 to index
    %40 = memref.load %arg1[%38, %39] : memref<4x8xi32, #tpu.memory_space<smem>>
    %41 = arith.index_cast %40 : i32 to index
    %c0_3 = arith.constant 0 : index
    %42 = vector.load %arg7[%41, %c0_3] : memref<64x128xf32, #tpu.memory_space<vmem>>, vector<1x128xf32>
    %43 = arith.cmpi slt, %c3_i32, %3 : i32
    %44 = arith.extui %43 : i1 to i32
    %45 = arith.sitofp %44 : i32 to f32
    %46 = vector.broadcast %45 : f32 to vector<1x128xf32>
    %47 = arith.mulf %42, %46 : vector<1x128xf32>
    %48 = arith.addf %37, %47 : vector<1x128xf32>
    %c4_i32_4 = arith.constant 4 : i32
    %49 = arith.index_cast %1 : i32 to index
    %50 = arith.index_cast %c4_i32_4 : i32 to index
    %51 = memref.load %arg1[%49, %50] : memref<4x8xi32, #tpu.memory_space<smem>>
    %52 = arith.index_cast %51 : i32 to index
    %c0_5 = arith.constant 0 : index
    %53 = vector.load %arg7[%52, %c0_5] : memref<64x128xf32, #tpu.memory_space<vmem>>, vector<1x128xf32>
    %54 = arith.cmpi slt, %c4_i32_4, %3 : i32
    %55 = arith.extui %54 : i1 to i32
    %56 = arith.sitofp %55 : i32 to f32
    %57 = vector.broadcast %56 : f32 to vector<1x128xf32>
    %58 = arith.mulf %53, %57 : vector<1x128xf32>
    %59 = arith.addf %48, %58 : vector<1x128xf32>
    %c5_i32 = arith.constant 5 : i32
    %60 = arith.index_cast %1 : i32 to index
    %61 = arith.index_cast %c5_i32 : i32 to index
    %62 = memref.load %arg1[%60, %61] : memref<4x8xi32, #tpu.memory_space<smem>>
    %63 = arith.index_cast %62 : i32 to index
    %c0_6 = arith.constant 0 : index
    %64 = vector.load %arg7[%63, %c0_6] : memref<64x128xf32, #tpu.memory_space<vmem>>, vector<1x128xf32>
    %65 = arith.cmpi slt, %c5_i32, %3 : i32
    %66 = arith.extui %65 : i1 to i32
    %67 = arith.sitofp %66 : i32 to f32
    %68 = vector.broadcast %67 : f32 to vector<1x128xf32>
    %69 = arith.mulf %64, %68 : vector<1x128xf32>
    %70 = arith.addf %59, %69 : vector<1x128xf32>
    %c6_i32 = arith.constant 6 : i32
    %71 = arith.index_cast %1 : i32 to index
    %72 = arith.index_cast %c6_i32 : i32 to index
    %73 = memref.load %arg1[%71, %72] : memref<4x8xi32, #tpu.memory_space<smem>>
    %74 = arith.index_cast %73 : i32 to index
    %c0_7 = arith.constant 0 : index
    %75 = vector.load %arg7[%74, %c0_7] : memref<64x128xf32, #tpu.memory_space<vmem>>, vector<1x128xf32>
    %76 = arith.cmpi slt, %c6_i32, %3 : i32
    %77 = arith.extui %76 : i1 to i32
    %78 = arith.sitofp %77 : i32 to f32
    %79 = vector.broadcast %78 : f32 to vector<1x128xf32>
    %80 = arith.mulf %75, %79 : vector<1x128xf32>
    %81 = arith.addf %70, %80 : vector<1x128xf32>
    %c7_i32 = arith.constant 7 : i32
    %82 = arith.index_cast %1 : i32 to index
    %83 = arith.index_cast %c7_i32 : i32 to index
    %84 = memref.load %arg1[%82, %83] : memref<4x8xi32, #tpu.memory_space<smem>>
    %85 = arith.index_cast %84 : i32 to index
    %c0_8 = arith.constant 0 : index
    %86 = vector.load %arg7[%85, %c0_8] : memref<64x128xf32, #tpu.memory_space<vmem>>, vector<1x128xf32>
    %87 = arith.cmpi slt, %c7_i32, %3 : i32
    %88 = arith.extui %87 : i1 to i32
    %89 = arith.sitofp %88 : i32 to f32
    %90 = vector.broadcast %89 : f32 to vector<1x128xf32>
    %91 = arith.mulf %86, %90 : vector<1x128xf32>
    %92 = arith.addf %81, %91 : vector<1x128xf32>
    %c8_i32 = arith.constant 8 : i32
    %c1_i32_9 = arith.constant 1 : i32
    %93 = arith.maxsi %3, %c1_i32_9 : i32
    %94 = arith.sitofp %93 : i32 to f32
    %95 = vector.broadcast %94 : f32 to vector<1x128xf32>
    %96 = arith.divf %92, %95 : vector<1x128xf32>
    %c4_i32_10 = arith.constant 4 : i32
    %97 = arith.muli %arg0, %c4_i32_10 : i32
    %c1_i32_11 = arith.constant 1 : i32
    %98 = arith.addi %97, %c1_i32_11 : i32
    %99 = arith.index_cast %98 : i32 to index
    %100 = memref.load %arg2[%99] : memref<4xi32, #tpu.memory_space<smem>>
    %cst_12 = arith.constant 0.000000e+00 : f32
    %101 = vector.broadcast %cst_12 : f32 to vector<1x128xf32>
    %c0_i32_13 = arith.constant 0 : i32
    %102 = arith.index_cast %98 : i32 to index
    %103 = arith.index_cast %c0_i32_13 : i32 to index
    %104 = memref.load %arg1[%102, %103] : memref<4x8xi32, #tpu.memory_space<smem>>
    %105 = arith.index_cast %104 : i32 to index
    %c0_14 = arith.constant 0 : index
    %106 = vector.load %arg7[%105, %c0_14] : memref<64x128xf32, #tpu.memory_space<vmem>>, vector<1x128xf32>
    %107 = arith.cmpi slt, %c0_i32_13, %100 : i32
    %108 = arith.extui %107 : i1 to i32
    %109 = arith.sitofp %108 : i32 to f32
    %110 = vector.broadcast %109 : f32 to vector<1x128xf32>
    %111 = arith.mulf %106, %110 : vector<1x128xf32>
    %112 = arith.addf %101, %111 : vector<1x128xf32>
    %c1_i32_15 = arith.constant 1 : i32
    %113 = arith.index_cast %98 : i32 to index
    %114 = arith.index_cast %c1_i32_15 : i32 to index
    %115 = memref.load %arg1[%113, %114] : memref<4x8xi32, #tpu.memory_space<smem>>
    %116 = arith.index_cast %115 : i32 to index
    %c0_16 = arith.constant 0 : index
    %117 = vector.load %arg7[%116, %c0_16] : memref<64x128xf32, #tpu.memory_space<vmem>>, vector<1x128xf32>
    %118 = arith.cmpi slt, %c1_i32_15, %100 : i32
    %119 = arith.extui %118 : i1 to i32
    %120 = arith.sitofp %119 : i32 to f32
    %121 = vector.broadcast %120 : f32 to vector<1x128xf32>
    %122 = arith.mulf %117, %121 : vector<1x128xf32>
    %123 = arith.addf %112, %122 : vector<1x128xf32>
    %c2_i32_17 = arith.constant 2 : i32
    %124 = arith.index_cast %98 : i32 to index
    %125 = arith.index_cast %c2_i32_17 : i32 to index
    %126 = memref.load %arg1[%124, %125] : memref<4x8xi32, #tpu.memory_space<smem>>
    %127 = arith.index_cast %126 : i32 to index
    %c0_18 = arith.constant 0 : index
    %128 = vector.load %arg7[%127, %c0_18] : memref<64x128xf32, #tpu.memory_space<vmem>>, vector<1x128xf32>
    %129 = arith.cmpi slt, %c2_i32_17, %100 : i32
    %130 = arith.extui %129 : i1 to i32
    %131 = arith.sitofp %130 : i32 to f32
    %132 = vector.broadcast %131 : f32 to vector<1x128xf32>
    %133 = arith.mulf %128, %132 : vector<1x128xf32>
    %134 = arith.addf %123, %133 : vector<1x128xf32>
    %c3_i32_19 = arith.constant 3 : i32
    %135 = arith.index_cast %98 : i32 to index
    %136 = arith.index_cast %c3_i32_19 : i32 to index
    %137 = memref.load %arg1[%135, %136] : memref<4x8xi32, #tpu.memory_space<smem>>
    %138 = arith.index_cast %137 : i32 to index
    %c0_20 = arith.constant 0 : index
    %139 = vector.load %arg7[%138, %c0_20] : memref<64x128xf32, #tpu.memory_space<vmem>>, vector<1x128xf32>
    %140 = arith.cmpi slt, %c3_i32_19, %100 : i32
    %141 = arith.extui %140 : i1 to i32
    %142 = arith.sitofp %141 : i32 to f32
    %143 = vector.broadcast %142 : f32 to vector<1x128xf32>
    %144 = arith.mulf %139, %143 : vector<1x128xf32>
    %145 = arith.addf %134, %144 : vector<1x128xf32>
    %c4_i32_21 = arith.constant 4 : i32
    %146 = arith.index_cast %98 : i32 to index
    %147 = arith.index_cast %c4_i32_21 : i32 to index
    %148 = memref.load %arg1[%146, %147] : memref<4x8xi32, #tpu.memory_space<smem>>
    %149 = arith.index_cast %148 : i32 to index
    %c0_22 = arith.constant 0 : index
    %150 = vector.load %arg7[%149, %c0_22] : memref<64x128xf32, #tpu.memory_space<vmem>>, vector<1x128xf32>
    %151 = arith.cmpi slt, %c4_i32_21, %100 : i32
    %152 = arith.extui %151 : i1 to i32
    %153 = arith.sitofp %152 : i32 to f32
    %154 = vector.broadcast %153 : f32 to vector<1x128xf32>
    %155 = arith.mulf %150, %154 : vector<1x128xf32>
    %156 = arith.addf %145, %155 : vector<1x128xf32>
    %c5_i32_23 = arith.constant 5 : i32
    %157 = arith.index_cast %98 : i32 to index
    %158 = arith.index_cast %c5_i32_23 : i32 to index
    %159 = memref.load %arg1[%157, %158] : memref<4x8xi32, #tpu.memory_space<smem>>
    %160 = arith.index_cast %159 : i32 to index
    %c0_24 = arith.constant 0 : index
    %161 = vector.load %arg7[%160, %c0_24] : memref<64x128xf32, #tpu.memory_space<vmem>>, vector<1x128xf32>
    %162 = arith.cmpi slt, %c5_i32_23, %100 : i32
    %163 = arith.extui %162 : i1 to i32
    %164 = arith.sitofp %163 : i32 to f32
    %165 = vector.broadcast %164 : f32 to vector<1x128xf32>
    %166 = arith.mulf %161, %165 : vector<1x128xf32>
    %167 = arith.addf %156, %166 : vector<1x128xf32>
    %c6_i32_25 = arith.constant 6 : i32
    %168 = arith.index_cast %98 : i32 to index
    %169 = arith.index_cast %c6_i32_25 : i32 to index
    %170 = memref.load %arg1[%168, %169] : memref<4x8xi32, #tpu.memory_space<smem>>
    %171 = arith.index_cast %170 : i32 to index
    %c0_26 = arith.constant 0 : index
    %172 = vector.load %arg7[%171, %c0_26] : memref<64x128xf32, #tpu.memory_space<vmem>>, vector<1x128xf32>
    %173 = arith.cmpi slt, %c6_i32_25, %100 : i32
    %174 = arith.extui %173 : i1 to i32
    %175 = arith.sitofp %174 : i32 to f32
    %176 = vector.broadcast %175 : f32 to vector<1x128xf32>
    %177 = arith.mulf %172, %176 : vector<1x128xf32>
    %178 = arith.addf %167, %177 : vector<1x128xf32>
    %c7_i32_27 = arith.constant 7 : i32
    %179 = arith.index_cast %98 : i32 to index
    %180 = arith.index_cast %c7_i32_27 : i32 to index
    %181 = memref.load %arg1[%179, %180] : memref<4x8xi32, #tpu.memory_space<smem>>
    %182 = arith.index_cast %181 : i32 to index
    %c0_28 = arith.constant 0 : index
    %183 = vector.load %arg7[%182, %c0_28] : memref<64x128xf32, #tpu.memory_space<vmem>>, vector<1x128xf32>
    %184 = arith.cmpi slt, %c7_i32_27, %100 : i32
    %185 = arith.extui %184 : i1 to i32
    %186 = arith.sitofp %185 : i32 to f32
    %187 = vector.broadcast %186 : f32 to vector<1x128xf32>
    %188 = arith.mulf %183, %187 : vector<1x128xf32>
    %189 = arith.addf %178, %188 : vector<1x128xf32>
    %c8_i32_29 = arith.constant 8 : i32
    %c1_i32_30 = arith.constant 1 : i32
    %190 = arith.maxsi %100, %c1_i32_30 : i32
    %191 = arith.sitofp %190 : i32 to f32
    %192 = vector.broadcast %191 : f32 to vector<1x128xf32>
    %193 = arith.divf %189, %192 : vector<1x128xf32>
    %c4_i32_31 = arith.constant 4 : i32
    %194 = arith.muli %arg0, %c4_i32_31 : i32
    %c2_i32_32 = arith.constant 2 : i32
    %195 = arith.addi %194, %c2_i32_32 : i32
    %196 = arith.index_cast %195 : i32 to index
    %197 = memref.load %arg2[%196] : memref<4xi32, #tpu.memory_space<smem>>
    %cst_33 = arith.constant 0.000000e+00 : f32
    %198 = vector.broadcast %cst_33 : f32 to vector<1x128xf32>
    %c0_i32_34 = arith.constant 0 : i32
    %199 = arith.index_cast %195 : i32 to index
    %200 = arith.index_cast %c0_i32_34 : i32 to index
    %201 = memref.load %arg1[%199, %200] : memref<4x8xi32, #tpu.memory_space<smem>>
    %202 = arith.index_cast %201 : i32 to index
    %c0_35 = arith.constant 0 : index
    %203 = vector.load %arg7[%202, %c0_35] : memref<64x128xf32, #tpu.memory_space<vmem>>, vector<1x128xf32>
    %204 = arith.cmpi slt, %c0_i32_34, %197 : i32
    %205 = arith.extui %204 : i1 to i32
    %206 = arith.sitofp %205 : i32 to f32
    %207 = vector.broadcast %206 : f32 to vector<1x128xf32>
    %208 = arith.mulf %203, %207 : vector<1x128xf32>
    %209 = arith.addf %198, %208 : vector<1x128xf32>
    %c1_i32_36 = arith.constant 1 : i32
    %210 = arith.index_cast %195 : i32 to index
    %211 = arith.index_cast %c1_i32_36 : i32 to index
    %212 = memref.load %arg1[%210, %211] : memref<4x8xi32, #tpu.memory_space<smem>>
    %213 = arith.index_cast %212 : i32 to index
    %c0_37 = arith.constant 0 : index
    %214 = vector.load %arg7[%213, %c0_37] : memref<64x128xf32, #tpu.memory_space<vmem>>, vector<1x128xf32>
    %215 = arith.cmpi slt, %c1_i32_36, %197 : i32
    %216 = arith.extui %215 : i1 to i32
    %217 = arith.sitofp %216 : i32 to f32
    %218 = vector.broadcast %217 : f32 to vector<1x128xf32>
    %219 = arith.mulf %214, %218 : vector<1x128xf32>
    %220 = arith.addf %209, %219 : vector<1x128xf32>
    %c2_i32_38 = arith.constant 2 : i32
    %221 = arith.index_cast %195 : i32 to index
    %222 = arith.index_cast %c2_i32_38 : i32 to index
    %223 = memref.load %arg1[%221, %222] : memref<4x8xi32, #tpu.memory_space<smem>>
    %224 = arith.index_cast %223 : i32 to index
    %c0_39 = arith.constant 0 : index
    %225 = vector.load %arg7[%224, %c0_39] : memref<64x128xf32, #tpu.memory_space<vmem>>, vector<1x128xf32>
    %226 = arith.cmpi slt, %c2_i32_38, %197 : i32
    %227 = arith.extui %226 : i1 to i32
    %228 = arith.sitofp %227 : i32 to f32
    %229 = vector.broadcast %228 : f32 to vector<1x128xf32>
    %230 = arith.mulf %225, %229 : vector<1x128xf32>
    %231 = arith.addf %220, %230 : vector<1x128xf32>
    %c3_i32_40 = arith.constant 3 : i32
    %232 = arith.index_cast %195 : i32 to index
    %233 = arith.index_cast %c3_i32_40 : i32 to index
    %234 = memref.load %arg1[%232, %233] : memref<4x8xi32, #tpu.memory_space<smem>>
    %235 = arith.index_cast %234 : i32 to index
    %c0_41 = arith.constant 0 : index
    %236 = vector.load %arg7[%235, %c0_41] : memref<64x128xf32, #tpu.memory_space<vmem>>, vector<1x128xf32>
    %237 = arith.cmpi slt, %c3_i32_40, %197 : i32
    %238 = arith.extui %237 : i1 to i32
    %239 = arith.sitofp %238 : i32 to f32
    %240 = vector.broadcast %239 : f32 to vector<1x128xf32>
    %241 = arith.mulf %236, %240 : vector<1x128xf32>
    %242 = arith.addf %231, %241 : vector<1x128xf32>
    %c4_i32_42 = arith.constant 4 : i32
    %243 = arith.index_cast %195 : i32 to index
    %244 = arith.index_cast %c4_i32_42 : i32 to index
    %245 = memref.load %arg1[%243, %244] : memref<4x8xi32, #tpu.memory_space<smem>>
    %246 = arith.index_cast %245 : i32 to index
    %c0_43 = arith.constant 0 : index
    %247 = vector.load %arg7[%246, %c0_43] : memref<64x128xf32, #tpu.memory_space<vmem>>, vector<1x128xf32>
    %248 = arith.cmpi slt, %c4_i32_42, %197 : i32
    %249 = arith.extui %248 : i1 to i32
    %250 = arith.sitofp %249 : i32 to f32
    %251 = vector.broadcast %250 : f32 to vector<1x128xf32>
    %252 = arith.mulf %247, %251 : vector<1x128xf32>
    %253 = arith.addf %242, %252 : vector<1x128xf32>
    %c5_i32_44 = arith.constant 5 : i32
    %254 = arith.index_cast %195 : i32 to index
    %255 = arith.index_cast %c5_i32_44 : i32 to index
    %256 = memref.load %arg1[%254, %255] : memref<4x8xi32, #tpu.memory_space<smem>>
    %257 = arith.index_cast %256 : i32 to index
    %c0_45 = arith.constant 0 : index
    %258 = vector.load %arg7[%257, %c0_45] : memref<64x128xf32, #tpu.memory_space<vmem>>, vector<1x128xf32>
    %259 = arith.cmpi slt, %c5_i32_44, %197 : i32
    %260 = arith.extui %259 : i1 to i32
    %261 = arith.sitofp %260 : i32 to f32
    %262 = vector.broadcast %261 : f32 to vector<1x128xf32>
    %263 = arith.mulf %258, %262 : vector<1x128xf32>
    %264 = arith.addf %253, %263 : vector<1x128xf32>
    %c6_i32_46 = arith.constant 6 : i32
    %265 = arith.index_cast %195 : i32 to index
    %266 = arith.index_cast %c6_i32_46 : i32 to index
    %267 = memref.load %arg1[%265, %266] : memref<4x8xi32, #tpu.memory_space<smem>>
    %268 = arith.index_cast %267 : i32 to index
    %c0_47 = arith.constant 0 : index
    %269 = vector.load %arg7[%268, %c0_47] : memref<64x128xf32, #tpu.memory_space<vmem>>, vector<1x128xf32>
    %270 = arith.cmpi slt, %c6_i32_46, %197 : i32
    %271 = arith.extui %270 : i1 to i32
    %272 = arith.sitofp %271 : i32 to f32
    %273 = vector.broadcast %272 : f32 to vector<1x128xf32>
    %274 = arith.mulf %269, %273 : vector<1x128xf32>
    %275 = arith.addf %264, %274 : vector<1x128xf32>
    %c7_i32_48 = arith.constant 7 : i32
    %276 = arith.index_cast %195 : i32 to index
    %277 = arith.index_cast %c7_i32_48 : i32 to index
    %278 = memref.load %arg1[%276, %277] : memref<4x8xi32, #tpu.memory_space<smem>>
    %279 = arith.index_cast %278 : i32 to index
    %c0_49 = arith.constant 0 : index
    %280 = vector.load %arg7[%279, %c0_49] : memref<64x128xf32, #tpu.memory_space<vmem>>, vector<1x128xf32>
    %281 = arith.cmpi slt, %c7_i32_48, %197 : i32
    %282 = arith.extui %281 : i1 to i32
    %283 = arith.sitofp %282 : i32 to f32
    %284 = vector.broadcast %283 : f32 to vector<1x128xf32>
    %285 = arith.mulf %280, %284 : vector<1x128xf32>
    %286 = arith.addf %275, %285 : vector<1x128xf32>
    %c8_i32_50 = arith.constant 8 : i32
    %c1_i32_51 = arith.constant 1 : i32
    %287 = arith.maxsi %197, %c1_i32_51 : i32
    %288 = arith.sitofp %287 : i32 to f32
    %289 = vector.broadcast %288 : f32 to vector<1x128xf32>
    %290 = arith.divf %286, %289 : vector<1x128xf32>
    %c4_i32_52 = arith.constant 4 : i32
    %291 = arith.muli %arg0, %c4_i32_52 : i32
    %c3_i32_53 = arith.constant 3 : i32
    %292 = arith.addi %291, %c3_i32_53 : i32
    %293 = arith.index_cast %292 : i32 to index
    %294 = memref.load %arg2[%293] : memref<4xi32, #tpu.memory_space<smem>>
    %cst_54 = arith.constant 0.000000e+00 : f32
    %295 = vector.broadcast %cst_54 : f32 to vector<1x128xf32>
    %c0_i32_55 = arith.constant 0 : i32
    %296 = arith.index_cast %292 : i32 to index
    %297 = arith.index_cast %c0_i32_55 : i32 to index
    %298 = memref.load %arg1[%296, %297] : memref<4x8xi32, #tpu.memory_space<smem>>
    %299 = arith.index_cast %298 : i32 to index
    %c0_56 = arith.constant 0 : index
    %300 = vector.load %arg7[%299, %c0_56] : memref<64x128xf32, #tpu.memory_space<vmem>>, vector<1x128xf32>
    %301 = arith.cmpi slt, %c0_i32_55, %294 : i32
    %302 = arith.extui %301 : i1 to i32
    %303 = arith.sitofp %302 : i32 to f32
    %304 = vector.broadcast %303 : f32 to vector<1x128xf32>
    %305 = arith.mulf %300, %304 : vector<1x128xf32>
    %306 = arith.addf %295, %305 : vector<1x128xf32>
    %c1_i32_57 = arith.constant 1 : i32
    %307 = arith.index_cast %292 : i32 to index
    %308 = arith.index_cast %c1_i32_57 : i32 to index
    %309 = memref.load %arg1[%307, %308] : memref<4x8xi32, #tpu.memory_space<smem>>
    %310 = arith.index_cast %309 : i32 to index
    %c0_58 = arith.constant 0 : index
    %311 = vector.load %arg7[%310, %c0_58] : memref<64x128xf32, #tpu.memory_space<vmem>>, vector<1x128xf32>
    %312 = arith.cmpi slt, %c1_i32_57, %294 : i32
    %313 = arith.extui %312 : i1 to i32
    %314 = arith.sitofp %313 : i32 to f32
    %315 = vector.broadcast %314 : f32 to vector<1x128xf32>
    %316 = arith.mulf %311, %315 : vector<1x128xf32>
    %317 = arith.addf %306, %316 : vector<1x128xf32>
    %c2_i32_59 = arith.constant 2 : i32
    %318 = arith.index_cast %292 : i32 to index
    %319 = arith.index_cast %c2_i32_59 : i32 to index
    %320 = memref.load %arg1[%318, %319] : memref<4x8xi32, #tpu.memory_space<smem>>
    %321 = arith.index_cast %320 : i32 to index
    %c0_60 = arith.constant 0 : index
    %322 = vector.load %arg7[%321, %c0_60] : memref<64x128xf32, #tpu.memory_space<vmem>>, vector<1x128xf32>
    %323 = arith.cmpi slt, %c2_i32_59, %294 : i32
    %324 = arith.extui %323 : i1 to i32
    %325 = arith.sitofp %324 : i32 to f32
    %326 = vector.broadcast %325 : f32 to vector<1x128xf32>
    %327 = arith.mulf %322, %326 : vector<1x128xf32>
    %328 = arith.addf %317, %327 : vector<1x128xf32>
    %c3_i32_61 = arith.constant 3 : i32
    %329 = arith.index_cast %292 : i32 to index
    %330 = arith.index_cast %c3_i32_61 : i32 to index
    %331 = memref.load %arg1[%329, %330] : memref<4x8xi32, #tpu.memory_space<smem>>
    %332 = arith.index_cast %331 : i32 to index
    %c0_62 = arith.constant 0 : index
    %333 = vector.load %arg7[%332, %c0_62] : memref<64x128xf32, #tpu.memory_space<vmem>>, vector<1x128xf32>
    %334 = arith.cmpi slt, %c3_i32_61, %294 : i32
    %335 = arith.extui %334 : i1 to i32
    %336 = arith.sitofp %335 : i32 to f32
    %337 = vector.broadcast %336 : f32 to vector<1x128xf32>
    %338 = arith.mulf %333, %337 : vector<1x128xf32>
    %339 = arith.addf %328, %338 : vector<1x128xf32>
    %c4_i32_63 = arith.constant 4 : i32
    %340 = arith.index_cast %292 : i32 to index
    %341 = arith.index_cast %c4_i32_63 : i32 to index
    %342 = memref.load %arg1[%340, %341] : memref<4x8xi32, #tpu.memory_space<smem>>
    %343 = arith.index_cast %342 : i32 to index
    %c0_64 = arith.constant 0 : index
    %344 = vector.load %arg7[%343, %c0_64] : memref<64x128xf32, #tpu.memory_space<vmem>>, vector<1x128xf32>
    %345 = arith.cmpi slt, %c4_i32_63, %294 : i32
    %346 = arith.extui %345 : i1 to i32
    %347 = arith.sitofp %346 : i32 to f32
    %348 = vector.broadcast %347 : f32 to vector<1x128xf32>
    %349 = arith.mulf %344, %348 : vector<1x128xf32>
    %350 = arith.addf %339, %349 : vector<1x128xf32>
    %c5_i32_65 = arith.constant 5 : i32
    %351 = arith.index_cast %292 : i32 to index
    %352 = arith.index_cast %c5_i32_65 : i32 to index
    %353 = memref.load %arg1[%351, %352] : memref<4x8xi32, #tpu.memory_space<smem>>
    %354 = arith.index_cast %353 : i32 to index
    %c0_66 = arith.constant 0 : index
    %355 = vector.load %arg7[%354, %c0_66] : memref<64x128xf32, #tpu.memory_space<vmem>>, vector<1x128xf32>
    %356 = arith.cmpi slt, %c5_i32_65, %294 : i32
    %357 = arith.extui %356 : i1 to i32
    %358 = arith.sitofp %357 : i32 to f32
    %359 = vector.broadcast %358 : f32 to vector<1x128xf32>
    %360 = arith.mulf %355, %359 : vector<1x128xf32>
    %361 = arith.addf %350, %360 : vector<1x128xf32>
    %c6_i32_67 = arith.constant 6 : i32
    %362 = arith.index_cast %292 : i32 to index
    %363 = arith.index_cast %c6_i32_67 : i32 to index
    %364 = memref.load %arg1[%362, %363] : memref<4x8xi32, #tpu.memory_space<smem>>
    %365 = arith.index_cast %364 : i32 to index
    %c0_68 = arith.constant 0 : index
    %366 = vector.load %arg7[%365, %c0_68] : memref<64x128xf32, #tpu.memory_space<vmem>>, vector<1x128xf32>
    %367 = arith.cmpi slt, %c6_i32_67, %294 : i32
    %368 = arith.extui %367 : i1 to i32
    %369 = arith.sitofp %368 : i32 to f32
    %370 = vector.broadcast %369 : f32 to vector<1x128xf32>
    %371 = arith.mulf %366, %370 : vector<1x128xf32>
    %372 = arith.addf %361, %371 : vector<1x128xf32>
    %c7_i32_69 = arith.constant 7 : i32
    %373 = arith.index_cast %292 : i32 to index
    %374 = arith.index_cast %c7_i32_69 : i32 to index
    %375 = memref.load %arg1[%373, %374] : memref<4x8xi32, #tpu.memory_space<smem>>
    %376 = arith.index_cast %375 : i32 to index
    %c0_70 = arith.constant 0 : index
    %377 = vector.load %arg7[%376, %c0_70] : memref<64x128xf32, #tpu.memory_space<vmem>>, vector<1x128xf32>
    %378 = arith.cmpi slt, %c7_i32_69, %294 : i32
    %379 = arith.extui %378 : i1 to i32
    %380 = arith.sitofp %379 : i32 to f32
    %381 = vector.broadcast %380 : f32 to vector<1x128xf32>
    %382 = arith.mulf %377, %381 : vector<1x128xf32>
    %383 = arith.addf %372, %382 : vector<1x128xf32>
    %c8_i32_71 = arith.constant 8 : i32
    %c1_i32_72 = arith.constant 1 : i32
    %384 = arith.maxsi %294, %c1_i32_72 : i32
    %385 = arith.sitofp %384 : i32 to f32
    %386 = vector.broadcast %385 : f32 to vector<1x128xf32>
    %387 = arith.divf %383, %386 : vector<1x128xf32>
    %388 = tpu.concatenate %96, %193, %290, %387 in 0 : vector<1x128xf32>, vector<1x128xf32>, vector<1x128xf32>, vector<1x128xf32> -> vector<4x128xf32>
    %c4_i32_73 = arith.constant 4 : i32
    %389 = arith.muli %arg0, %c4_i32_73 : i32
    %c0_i32_74 = arith.constant 0 : i32
    %390 = arith.addi %389, %c0_i32_74 : i32
    %391 = arith.index_cast %390 : i32 to index
    %392 = memref.load %arg4[%391] : memref<4xi32, #tpu.memory_space<smem>>
    %cst_75 = arith.constant 0.000000e+00 : f32
    %393 = vector.broadcast %cst_75 : f32 to vector<1x128xf32>
    %c0_i32_76 = arith.constant 0 : i32
    %394 = arith.index_cast %390 : i32 to index
    %395 = arith.index_cast %c0_i32_76 : i32 to index
    %396 = memref.load %arg3[%394, %395] : memref<4x6xi32, #tpu.memory_space<smem>>
    %397 = arith.index_cast %396 : i32 to index
    %c0_77 = arith.constant 0 : index
    %398 = vector.load %arg8[%397, %c0_77] : memref<64x128xf32, #tpu.memory_space<vmem>>, vector<1x128xf32>
    %399 = arith.cmpi slt, %c0_i32_76, %392 : i32
    %400 = arith.extui %399 : i1 to i32
    %401 = arith.sitofp %400 : i32 to f32
    %402 = vector.broadcast %401 : f32 to vector<1x128xf32>
    %403 = arith.mulf %398, %402 : vector<1x128xf32>
    %404 = arith.addf %393, %403 : vector<1x128xf32>
    %c1_i32_78 = arith.constant 1 : i32
    %405 = arith.index_cast %390 : i32 to index
    %406 = arith.index_cast %c1_i32_78 : i32 to index
    %407 = memref.load %arg3[%405, %406] : memref<4x6xi32, #tpu.memory_space<smem>>
    %408 = arith.index_cast %407 : i32 to index
    %c0_79 = arith.constant 0 : index
    %409 = vector.load %arg8[%408, %c0_79] : memref<64x128xf32, #tpu.memory_space<vmem>>, vector<1x128xf32>
    %410 = arith.cmpi slt, %c1_i32_78, %392 : i32
    %411 = arith.extui %410 : i1 to i32
    %412 = arith.sitofp %411 : i32 to f32
    %413 = vector.broadcast %412 : f32 to vector<1x128xf32>
    %414 = arith.mulf %409, %413 : vector<1x128xf32>
    %415 = arith.addf %404, %414 : vector<1x128xf32>
    %c2_i32_80 = arith.constant 2 : i32
    %416 = arith.index_cast %390 : i32 to index
    %417 = arith.index_cast %c2_i32_80 : i32 to index
    %418 = memref.load %arg3[%416, %417] : memref<4x6xi32, #tpu.memory_space<smem>>
    %419 = arith.index_cast %418 : i32 to index
    %c0_81 = arith.constant 0 : index
    %420 = vector.load %arg8[%419, %c0_81] : memref<64x128xf32, #tpu.memory_space<vmem>>, vector<1x128xf32>
    %421 = arith.cmpi slt, %c2_i32_80, %392 : i32
    %422 = arith.extui %421 : i1 to i32
    %423 = arith.sitofp %422 : i32 to f32
    %424 = vector.broadcast %423 : f32 to vector<1x128xf32>
    %425 = arith.mulf %420, %424 : vector<1x128xf32>
    %426 = arith.addf %415, %425 : vector<1x128xf32>
    %c3_i32_82 = arith.constant 3 : i32
    %427 = arith.index_cast %390 : i32 to index
    %428 = arith.index_cast %c3_i32_82 : i32 to index
    %429 = memref.load %arg3[%427, %428] : memref<4x6xi32, #tpu.memory_space<smem>>
    %430 = arith.index_cast %429 : i32 to index
    %c0_83 = arith.constant 0 : index
    %431 = vector.load %arg8[%430, %c0_83] : memref<64x128xf32, #tpu.memory_space<vmem>>, vector<1x128xf32>
    %432 = arith.cmpi slt, %c3_i32_82, %392 : i32
    %433 = arith.extui %432 : i1 to i32
    %434 = arith.sitofp %433 : i32 to f32
    %435 = vector.broadcast %434 : f32 to vector<1x128xf32>
    %436 = arith.mulf %431, %435 : vector<1x128xf32>
    %437 = arith.addf %426, %436 : vector<1x128xf32>
    %c4_i32_84 = arith.constant 4 : i32
    %438 = arith.index_cast %390 : i32 to index
    %439 = arith.index_cast %c4_i32_84 : i32 to index
    %440 = memref.load %arg3[%438, %439] : memref<4x6xi32, #tpu.memory_space<smem>>
    %441 = arith.index_cast %440 : i32 to index
    %c0_85 = arith.constant 0 : index
    %442 = vector.load %arg8[%441, %c0_85] : memref<64x128xf32, #tpu.memory_space<vmem>>, vector<1x128xf32>
    %443 = arith.cmpi slt, %c4_i32_84, %392 : i32
    %444 = arith.extui %443 : i1 to i32
    %445 = arith.sitofp %444 : i32 to f32
    %446 = vector.broadcast %445 : f32 to vector<1x128xf32>
    %447 = arith.mulf %442, %446 : vector<1x128xf32>
    %448 = arith.addf %437, %447 : vector<1x128xf32>
    %c5_i32_86 = arith.constant 5 : i32
    %449 = arith.index_cast %390 : i32 to index
    %450 = arith.index_cast %c5_i32_86 : i32 to index
    %451 = memref.load %arg3[%449, %450] : memref<4x6xi32, #tpu.memory_space<smem>>
    %452 = arith.index_cast %451 : i32 to index
    %c0_87 = arith.constant 0 : index
    %453 = vector.load %arg8[%452, %c0_87] : memref<64x128xf32, #tpu.memory_space<vmem>>, vector<1x128xf32>
    %454 = arith.cmpi slt, %c5_i32_86, %392 : i32
    %455 = arith.extui %454 : i1 to i32
    %456 = arith.sitofp %455 : i32 to f32
    %457 = vector.broadcast %456 : f32 to vector<1x128xf32>
    %458 = arith.mulf %453, %457 : vector<1x128xf32>
    %459 = arith.addf %448, %458 : vector<1x128xf32>
    %c6_i32_88 = arith.constant 6 : i32
    %c1_i32_89 = arith.constant 1 : i32
    %460 = arith.maxsi %392, %c1_i32_89 : i32
    %461 = arith.sitofp %460 : i32 to f32
    %462 = vector.broadcast %461 : f32 to vector<1x128xf32>
    %463 = arith.divf %459, %462 : vector<1x128xf32>
    %c4_i32_90 = arith.constant 4 : i32
    %464 = arith.muli %arg0, %c4_i32_90 : i32
    %c1_i32_91 = arith.constant 1 : i32
    %465 = arith.addi %464, %c1_i32_91 : i32
    %466 = arith.index_cast %465 : i32 to index
    %467 = memref.load %arg4[%466] : memref<4xi32, #tpu.memory_space<smem>>
    %cst_92 = arith.constant 0.000000e+00 : f32
    %468 = vector.broadcast %cst_92 : f32 to vector<1x128xf32>
    %c0_i32_93 = arith.constant 0 : i32
    %469 = arith.index_cast %465 : i32 to index
    %470 = arith.index_cast %c0_i32_93 : i32 to index
    %471 = memref.load %arg3[%469, %470] : memref<4x6xi32, #tpu.memory_space<smem>>
    %472 = arith.index_cast %471 : i32 to index
    %c0_94 = arith.constant 0 : index
    %473 = vector.load %arg8[%472, %c0_94] : memref<64x128xf32, #tpu.memory_space<vmem>>, vector<1x128xf32>
    %474 = arith.cmpi slt, %c0_i32_93, %467 : i32
    %475 = arith.extui %474 : i1 to i32
    %476 = arith.sitofp %475 : i32 to f32
    %477 = vector.broadcast %476 : f32 to vector<1x128xf32>
    %478 = arith.mulf %473, %477 : vector<1x128xf32>
    %479 = arith.addf %468, %478 : vector<1x128xf32>
    %c1_i32_95 = arith.constant 1 : i32
    %480 = arith.index_cast %465 : i32 to index
    %481 = arith.index_cast %c1_i32_95 : i32 to index
    %482 = memref.load %arg3[%480, %481] : memref<4x6xi32, #tpu.memory_space<smem>>
    %483 = arith.index_cast %482 : i32 to index
    %c0_96 = arith.constant 0 : index
    %484 = vector.load %arg8[%483, %c0_96] : memref<64x128xf32, #tpu.memory_space<vmem>>, vector<1x128xf32>
    %485 = arith.cmpi slt, %c1_i32_95, %467 : i32
    %486 = arith.extui %485 : i1 to i32
    %487 = arith.sitofp %486 : i32 to f32
    %488 = vector.broadcast %487 : f32 to vector<1x128xf32>
    %489 = arith.mulf %484, %488 : vector<1x128xf32>
    %490 = arith.addf %479, %489 : vector<1x128xf32>
    %c2_i32_97 = arith.constant 2 : i32
    %491 = arith.index_cast %465 : i32 to index
    %492 = arith.index_cast %c2_i32_97 : i32 to index
    %493 = memref.load %arg3[%491, %492] : memref<4x6xi32, #tpu.memory_space<smem>>
    %494 = arith.index_cast %493 : i32 to index
    %c0_98 = arith.constant 0 : index
    %495 = vector.load %arg8[%494, %c0_98] : memref<64x128xf32, #tpu.memory_space<vmem>>, vector<1x128xf32>
    %496 = arith.cmpi slt, %c2_i32_97, %467 : i32
    %497 = arith.extui %496 : i1 to i32
    %498 = arith.sitofp %497 : i32 to f32
    %499 = vector.broadcast %498 : f32 to vector<1x128xf32>
    %500 = arith.mulf %495, %499 : vector<1x128xf32>
    %501 = arith.addf %490, %500 : vector<1x128xf32>
    %c3_i32_99 = arith.constant 3 : i32
    %502 = arith.index_cast %465 : i32 to index
    %503 = arith.index_cast %c3_i32_99 : i32 to index
    %504 = memref.load %arg3[%502, %503] : memref<4x6xi32, #tpu.memory_space<smem>>
    %505 = arith.index_cast %504 : i32 to index
    %c0_100 = arith.constant 0 : index
    %506 = vector.load %arg8[%505, %c0_100] : memref<64x128xf32, #tpu.memory_space<vmem>>, vector<1x128xf32>
    %507 = arith.cmpi slt, %c3_i32_99, %467 : i32
    %508 = arith.extui %507 : i1 to i32
    %509 = arith.sitofp %508 : i32 to f32
    %510 = vector.broadcast %509 : f32 to vector<1x128xf32>
    %511 = arith.mulf %506, %510 : vector<1x128xf32>
    %512 = arith.addf %501, %511 : vector<1x128xf32>
    %c4_i32_101 = arith.constant 4 : i32
    %513 = arith.index_cast %465 : i32 to index
    %514 = arith.index_cast %c4_i32_101 : i32 to index
    %515 = memref.load %arg3[%513, %514] : memref<4x6xi32, #tpu.memory_space<smem>>
    %516 = arith.index_cast %515 : i32 to index
    %c0_102 = arith.constant 0 : index
    %517 = vector.load %arg8[%516, %c0_102] : memref<64x128xf32, #tpu.memory_space<vmem>>, vector<1x128xf32>
    %518 = arith.cmpi slt, %c4_i32_101, %467 : i32
    %519 = arith.extui %518 : i1 to i32
    %520 = arith.sitofp %519 : i32 to f32
    %521 = vector.broadcast %520 : f32 to vector<1x128xf32>
    %522 = arith.mulf %517, %521 : vector<1x128xf32>
    %523 = arith.addf %512, %522 : vector<1x128xf32>
    %c5_i32_103 = arith.constant 5 : i32
    %524 = arith.index_cast %465 : i32 to index
    %525 = arith.index_cast %c5_i32_103 : i32 to index
    %526 = memref.load %arg3[%524, %525] : memref<4x6xi32, #tpu.memory_space<smem>>
    %527 = arith.index_cast %526 : i32 to index
    %c0_104 = arith.constant 0 : index
    %528 = vector.load %arg8[%527, %c0_104] : memref<64x128xf32, #tpu.memory_space<vmem>>, vector<1x128xf32>
    %529 = arith.cmpi slt, %c5_i32_103, %467 : i32
    %530 = arith.extui %529 : i1 to i32
    %531 = arith.sitofp %530 : i32 to f32
    %532 = vector.broadcast %531 : f32 to vector<1x128xf32>
    %533 = arith.mulf %528, %532 : vector<1x128xf32>
    %534 = arith.addf %523, %533 : vector<1x128xf32>
    %c6_i32_105 = arith.constant 6 : i32
    %c1_i32_106 = arith.constant 1 : i32
    %535 = arith.maxsi %467, %c1_i32_106 : i32
    %536 = arith.sitofp %535 : i32 to f32
    %537 = vector.broadcast %536 : f32 to vector<1x128xf32>
    %538 = arith.divf %534, %537 : vector<1x128xf32>
    %c4_i32_107 = arith.constant 4 : i32
    %539 = arith.muli %arg0, %c4_i32_107 : i32
    %c2_i32_108 = arith.constant 2 : i32
    %540 = arith.addi %539, %c2_i32_108 : i32
    %541 = arith.index_cast %540 : i32 to index
    %542 = memref.load %arg4[%541] : memref<4xi32, #tpu.memory_space<smem>>
    %cst_109 = arith.constant 0.000000e+00 : f32
    %543 = vector.broadcast %cst_109 : f32 to vector<1x128xf32>
    %c0_i32_110 = arith.constant 0 : i32
    %544 = arith.index_cast %540 : i32 to index
    %545 = arith.index_cast %c0_i32_110 : i32 to index
    %546 = memref.load %arg3[%544, %545] : memref<4x6xi32, #tpu.memory_space<smem>>
    %547 = arith.index_cast %546 : i32 to index
    %c0_111 = arith.constant 0 : index
    %548 = vector.load %arg8[%547, %c0_111] : memref<64x128xf32, #tpu.memory_space<vmem>>, vector<1x128xf32>
    %549 = arith.cmpi slt, %c0_i32_110, %542 : i32
    %550 = arith.extui %549 : i1 to i32
    %551 = arith.sitofp %550 : i32 to f32
    %552 = vector.broadcast %551 : f32 to vector<1x128xf32>
    %553 = arith.mulf %548, %552 : vector<1x128xf32>
    %554 = arith.addf %543, %553 : vector<1x128xf32>
    %c1_i32_112 = arith.constant 1 : i32
    %555 = arith.index_cast %540 : i32 to index
    %556 = arith.index_cast %c1_i32_112 : i32 to index
    %557 = memref.load %arg3[%555, %556] : memref<4x6xi32, #tpu.memory_space<smem>>
    %558 = arith.index_cast %557 : i32 to index
    %c0_113 = arith.constant 0 : index
    %559 = vector.load %arg8[%558, %c0_113] : memref<64x128xf32, #tpu.memory_space<vmem>>, vector<1x128xf32>
    %560 = arith.cmpi slt, %c1_i32_112, %542 : i32
    %561 = arith.extui %560 : i1 to i32
    %562 = arith.sitofp %561 : i32 to f32
    %563 = vector.broadcast %562 : f32 to vector<1x128xf32>
    %564 = arith.mulf %559, %563 : vector<1x128xf32>
    %565 = arith.addf %554, %564 : vector<1x128xf32>
    %c2_i32_114 = arith.constant 2 : i32
    %566 = arith.index_cast %540 : i32 to index
    %567 = arith.index_cast %c2_i32_114 : i32 to index
    %568 = memref.load %arg3[%566, %567] : memref<4x6xi32, #tpu.memory_space<smem>>
    %569 = arith.index_cast %568 : i32 to index
    %c0_115 = arith.constant 0 : index
    %570 = vector.load %arg8[%569, %c0_115] : memref<64x128xf32, #tpu.memory_space<vmem>>, vector<1x128xf32>
    %571 = arith.cmpi slt, %c2_i32_114, %542 : i32
    %572 = arith.extui %571 : i1 to i32
    %573 = arith.sitofp %572 : i32 to f32
    %574 = vector.broadcast %573 : f32 to vector<1x128xf32>
    %575 = arith.mulf %570, %574 : vector<1x128xf32>
    %576 = arith.addf %565, %575 : vector<1x128xf32>
    %c3_i32_116 = arith.constant 3 : i32
    %577 = arith.index_cast %540 : i32 to index
    %578 = arith.index_cast %c3_i32_116 : i32 to index
    %579 = memref.load %arg3[%577, %578] : memref<4x6xi32, #tpu.memory_space<smem>>
    %580 = arith.index_cast %579 : i32 to index
    %c0_117 = arith.constant 0 : index
    %581 = vector.load %arg8[%580, %c0_117] : memref<64x128xf32, #tpu.memory_space<vmem>>, vector<1x128xf32>
    %582 = arith.cmpi slt, %c3_i32_116, %542 : i32
    %583 = arith.extui %582 : i1 to i32
    %584 = arith.sitofp %583 : i32 to f32
    %585 = vector.broadcast %584 : f32 to vector<1x128xf32>
    %586 = arith.mulf %581, %585 : vector<1x128xf32>
    %587 = arith.addf %576, %586 : vector<1x128xf32>
    %c4_i32_118 = arith.constant 4 : i32
    %588 = arith.index_cast %540 : i32 to index
    %589 = arith.index_cast %c4_i32_118 : i32 to index
    %590 = memref.load %arg3[%588, %589] : memref<4x6xi32, #tpu.memory_space<smem>>
    %591 = arith.index_cast %590 : i32 to index
    %c0_119 = arith.constant 0 : index
    %592 = vector.load %arg8[%591, %c0_119] : memref<64x128xf32, #tpu.memory_space<vmem>>, vector<1x128xf32>
    %593 = arith.cmpi slt, %c4_i32_118, %542 : i32
    %594 = arith.extui %593 : i1 to i32
    %595 = arith.sitofp %594 : i32 to f32
    %596 = vector.broadcast %595 : f32 to vector<1x128xf32>
    %597 = arith.mulf %592, %596 : vector<1x128xf32>
    %598 = arith.addf %587, %597 : vector<1x128xf32>
    %c5_i32_120 = arith.constant 5 : i32
    %599 = arith.index_cast %540 : i32 to index
    %600 = arith.index_cast %c5_i32_120 : i32 to index
    %601 = memref.load %arg3[%599, %600] : memref<4x6xi32, #tpu.memory_space<smem>>
    %602 = arith.index_cast %601 : i32 to index
    %c0_121 = arith.constant 0 : index
    %603 = vector.load %arg8[%602, %c0_121] : memref<64x128xf32, #tpu.memory_space<vmem>>, vector<1x128xf32>
    %604 = arith.cmpi slt, %c5_i32_120, %542 : i32
    %605 = arith.extui %604 : i1 to i32
    %606 = arith.sitofp %605 : i32 to f32
    %607 = vector.broadcast %606 : f32 to vector<1x128xf32>
    %608 = arith.mulf %603, %607 : vector<1x128xf32>
    %609 = arith.addf %598, %608 : vector<1x128xf32>
    %c6_i32_122 = arith.constant 6 : i32
    %c1_i32_123 = arith.constant 1 : i32
    %610 = arith.maxsi %542, %c1_i32_123 : i32
    %611 = arith.sitofp %610 : i32 to f32
    %612 = vector.broadcast %611 : f32 to vector<1x128xf32>
    %613 = arith.divf %609, %612 : vector<1x128xf32>
    %c4_i32_124 = arith.constant 4 : i32
    %614 = arith.muli %arg0, %c4_i32_124 : i32
    %c3_i32_125 = arith.constant 3 : i32
    %615 = arith.addi %614, %c3_i32_125 : i32
    %616 = arith.index_cast %615 : i32 to index
    %617 = memref.load %arg4[%616] : memref<4xi32, #tpu.memory_space<smem>>
    %cst_126 = arith.constant 0.000000e+00 : f32
    %618 = vector.broadcast %cst_126 : f32 to vector<1x128xf32>
    %c0_i32_127 = arith.constant 0 : i32
    %619 = arith.index_cast %615 : i32 to index
    %620 = arith.index_cast %c0_i32_127 : i32 to index
    %621 = memref.load %arg3[%619, %620] : memref<4x6xi32, #tpu.memory_space<smem>>
    %622 = arith.index_cast %621 : i32 to index
    %c0_128 = arith.constant 0 : index
    %623 = vector.load %arg8[%622, %c0_128] : memref<64x128xf32, #tpu.memory_space<vmem>>, vector<1x128xf32>
    %624 = arith.cmpi slt, %c0_i32_127, %617 : i32
    %625 = arith.extui %624 : i1 to i32
    %626 = arith.sitofp %625 : i32 to f32
    %627 = vector.broadcast %626 : f32 to vector<1x128xf32>
    %628 = arith.mulf %623, %627 : vector<1x128xf32>
    %629 = arith.addf %618, %628 : vector<1x128xf32>
    %c1_i32_129 = arith.constant 1 : i32
    %630 = arith.index_cast %615 : i32 to index
    %631 = arith.index_cast %c1_i32_129 : i32 to index
    %632 = memref.load %arg3[%630, %631] : memref<4x6xi32, #tpu.memory_space<smem>>
    %633 = arith.index_cast %632 : i32 to index
    %c0_130 = arith.constant 0 : index
    %634 = vector.load %arg8[%633, %c0_130] : memref<64x128xf32, #tpu.memory_space<vmem>>, vector<1x128xf32>
    %635 = arith.cmpi slt, %c1_i32_129, %617 : i32
    %636 = arith.extui %635 : i1 to i32
    %637 = arith.sitofp %636 : i32 to f32
    %638 = vector.broadcast %637 : f32 to vector<1x128xf32>
    %639 = arith.mulf %634, %638 : vector<1x128xf32>
    %640 = arith.addf %629, %639 : vector<1x128xf32>
    %c2_i32_131 = arith.constant 2 : i32
    %641 = arith.index_cast %615 : i32 to index
    %642 = arith.index_cast %c2_i32_131 : i32 to index
    %643 = memref.load %arg3[%641, %642] : memref<4x6xi32, #tpu.memory_space<smem>>
    %644 = arith.index_cast %643 : i32 to index
    %c0_132 = arith.constant 0 : index
    %645 = vector.load %arg8[%644, %c0_132] : memref<64x128xf32, #tpu.memory_space<vmem>>, vector<1x128xf32>
    %646 = arith.cmpi slt, %c2_i32_131, %617 : i32
    %647 = arith.extui %646 : i1 to i32
    %648 = arith.sitofp %647 : i32 to f32
    %649 = vector.broadcast %648 : f32 to vector<1x128xf32>
    %650 = arith.mulf %645, %649 : vector<1x128xf32>
    %651 = arith.addf %640, %650 : vector<1x128xf32>
    %c3_i32_133 = arith.constant 3 : i32
    %652 = arith.index_cast %615 : i32 to index
    %653 = arith.index_cast %c3_i32_133 : i32 to index
    %654 = memref.load %arg3[%652, %653] : memref<4x6xi32, #tpu.memory_space<smem>>
    %655 = arith.index_cast %654 : i32 to index
    %c0_134 = arith.constant 0 : index
    %656 = vector.load %arg8[%655, %c0_134] : memref<64x128xf32, #tpu.memory_space<vmem>>, vector<1x128xf32>
    %657 = arith.cmpi slt, %c3_i32_133, %617 : i32
    %658 = arith.extui %657 : i1 to i32
    %659 = arith.sitofp %658 : i32 to f32
    %660 = vector.broadcast %659 : f32 to vector<1x128xf32>
    %661 = arith.mulf %656, %660 : vector<1x128xf32>
    %662 = arith.addf %651, %661 : vector<1x128xf32>
    %c4_i32_135 = arith.constant 4 : i32
    %663 = arith.index_cast %615 : i32 to index
    %664 = arith.index_cast %c4_i32_135 : i32 to index
    %665 = memref.load %arg3[%663, %664] : memref<4x6xi32, #tpu.memory_space<smem>>
    %666 = arith.index_cast %665 : i32 to index
    %c0_136 = arith.constant 0 : index
    %667 = vector.load %arg8[%666, %c0_136] : memref<64x128xf32, #tpu.memory_space<vmem>>, vector<1x128xf32>
    %668 = arith.cmpi slt, %c4_i32_135, %617 : i32
    %669 = arith.extui %668 : i1 to i32
    %670 = arith.sitofp %669 : i32 to f32
    %671 = vector.broadcast %670 : f32 to vector<1x128xf32>
    %672 = arith.mulf %667, %671 : vector<1x128xf32>
    %673 = arith.addf %662, %672 : vector<1x128xf32>
    %c5_i32_137 = arith.constant 5 : i32
    %674 = arith.index_cast %615 : i32 to index
    %675 = arith.index_cast %c5_i32_137 : i32 to index
    %676 = memref.load %arg3[%674, %675] : memref<4x6xi32, #tpu.memory_space<smem>>
    %677 = arith.index_cast %676 : i32 to index
    %c0_138 = arith.constant 0 : index
    %678 = vector.load %arg8[%677, %c0_138] : memref<64x128xf32, #tpu.memory_space<vmem>>, vector<1x128xf32>
    %679 = arith.cmpi slt, %c5_i32_137, %617 : i32
    %680 = arith.extui %679 : i1 to i32
    %681 = arith.sitofp %680 : i32 to f32
    %682 = vector.broadcast %681 : f32 to vector<1x128xf32>
    %683 = arith.mulf %678, %682 : vector<1x128xf32>
    %684 = arith.addf %673, %683 : vector<1x128xf32>
    %c6_i32_139 = arith.constant 6 : i32
    %c1_i32_140 = arith.constant 1 : i32
    %685 = arith.maxsi %617, %c1_i32_140 : i32
    %686 = arith.sitofp %685 : i32 to f32
    %687 = vector.broadcast %686 : f32 to vector<1x128xf32>
    %688 = arith.divf %684, %687 : vector<1x128xf32>
    %689 = tpu.concatenate %463, %538, %613, %688 in 0 : vector<1x128xf32>, vector<1x128xf32>, vector<1x128xf32>, vector<1x128xf32> -> vector<4x128xf32>
    %690 = arith.mulf %388, %689 : vector<4x128xf32>
    %cst_141 = arith.constant dense<0.000000e+00> : vector<4xf32>
    %691 = vector.multi_reduction <add>, %690, %cst_141 [1] : vector<4x128xf32> to vector<4xf32>
    %692 = vector.shape_cast %691 : vector<4xf32> to vector<4x1xf32>
    %cst_142 = arith.constant 0.000000e+00 : f32
    %693 = vector.broadcast %cst_142 : f32 to vector<4x1xf32>
    %694 = arith.minimumf %692, %693 : vector<4x1xf32>
    %695 = math.absf %692 : vector<4x1xf32>
    %cst_143 = arith.constant 0.000000e+00 : f32
    %696 = vector.broadcast %cst_143 : f32 to vector<4x1xf32>
    %697 = arith.subf %696, %695 : vector<4x1xf32>
    %698 = math.exp %697 : vector<4x1xf32>
    %cst_144 = arith.constant 1.000000e+00 : f32
    %699 = vector.broadcast %cst_144 : f32 to vector<4x1xf32>
    %700 = arith.addf %699, %698 : vector<4x1xf32>
    %701 = math.log %700 : vector<4x1xf32>
    %702 = arith.subf %694, %701 : vector<4x1xf32>
    %c4_i32_145 = arith.constant 4 : i32
    %703 = arith.muli %arg0, %c4_i32_145 : i32
    %c0_i32_146 = arith.constant 0 : i32
    %704 = arith.addi %703, %c0_i32_146 : i32
    %c2_i32_147 = arith.constant 2 : i32
    %705 = arith.muli %704, %c2_i32_147 : i32
    %c0_i32_148 = arith.constant 0 : i32
    %706 = arith.addi %705, %c0_i32_148 : i32
    %707 = arith.index_cast %706 : i32 to index
    %708 = memref.load %arg6[%707] : memref<8xi32, #tpu.memory_space<smem>>
    %cst_149 = arith.constant 0.000000e+00 : f32
    %709 = vector.broadcast %cst_149 : f32 to vector<1x128xf32>
    %c0_i32_150 = arith.constant 0 : i32
    %710 = arith.index_cast %706 : i32 to index
    %711 = arith.index_cast %c0_i32_150 : i32 to index
    %712 = memref.load %arg5[%710, %711] : memref<8x6xi32, #tpu.memory_space<smem>>
    %713 = arith.index_cast %712 : i32 to index
    %c0_151 = arith.constant 0 : index
    %714 = vector.load %arg8[%713, %c0_151] : memref<64x128xf32, #tpu.memory_space<vmem>>, vector<1x128xf32>
    %715 = arith.cmpi slt, %c0_i32_150, %708 : i32
    %716 = arith.extui %715 : i1 to i32
    %717 = arith.sitofp %716 : i32 to f32
    %718 = vector.broadcast %717 : f32 to vector<1x128xf32>
    %719 = arith.mulf %714, %718 : vector<1x128xf32>
    %720 = arith.addf %709, %719 : vector<1x128xf32>
    %c1_i32_152 = arith.constant 1 : i32
    %721 = arith.index_cast %706 : i32 to index
    %722 = arith.index_cast %c1_i32_152 : i32 to index
    %723 = memref.load %arg5[%721, %722] : memref<8x6xi32, #tpu.memory_space<smem>>
    %724 = arith.index_cast %723 : i32 to index
    %c0_153 = arith.constant 0 : index
    %725 = vector.load %arg8[%724, %c0_153] : memref<64x128xf32, #tpu.memory_space<vmem>>, vector<1x128xf32>
    %726 = arith.cmpi slt, %c1_i32_152, %708 : i32
    %727 = arith.extui %726 : i1 to i32
    %728 = arith.sitofp %727 : i32 to f32
    %729 = vector.broadcast %728 : f32 to vector<1x128xf32>
    %730 = arith.mulf %725, %729 : vector<1x128xf32>
    %731 = arith.addf %720, %730 : vector<1x128xf32>
    %c2_i32_154 = arith.constant 2 : i32
    %732 = arith.index_cast %706 : i32 to index
    %733 = arith.index_cast %c2_i32_154 : i32 to index
    %734 = memref.load %arg5[%732, %733] : memref<8x6xi32, #tpu.memory_space<smem>>
    %735 = arith.index_cast %734 : i32 to index
    %c0_155 = arith.constant 0 : index
    %736 = vector.load %arg8[%735, %c0_155] : memref<64x128xf32, #tpu.memory_space<vmem>>, vector<1x128xf32>
    %737 = arith.cmpi slt, %c2_i32_154, %708 : i32
    %738 = arith.extui %737 : i1 to i32
    %739 = arith.sitofp %738 : i32 to f32
    %740 = vector.broadcast %739 : f32 to vector<1x128xf32>
    %741 = arith.mulf %736, %740 : vector<1x128xf32>
    %742 = arith.addf %731, %741 : vector<1x128xf32>
    %c3_i32_156 = arith.constant 3 : i32
    %743 = arith.index_cast %706 : i32 to index
    %744 = arith.index_cast %c3_i32_156 : i32 to index
    %745 = memref.load %arg5[%743, %744] : memref<8x6xi32, #tpu.memory_space<smem>>
    %746 = arith.index_cast %745 : i32 to index
    %c0_157 = arith.constant 0 : index
    %747 = vector.load %arg8[%746, %c0_157] : memref<64x128xf32, #tpu.memory_space<vmem>>, vector<1x128xf32>
    %748 = arith.cmpi slt, %c3_i32_156, %708 : i32
    %749 = arith.extui %748 : i1 to i32
    %750 = arith.sitofp %749 : i32 to f32
    %751 = vector.broadcast %750 : f32 to vector<1x128xf32>
    %752 = arith.mulf %747, %751 : vector<1x128xf32>
    %753 = arith.addf %742, %752 : vector<1x128xf32>
    %c4_i32_158 = arith.constant 4 : i32
    %754 = arith.index_cast %706 : i32 to index
    %755 = arith.index_cast %c4_i32_158 : i32 to index
    %756 = memref.load %arg5[%754, %755] : memref<8x6xi32, #tpu.memory_space<smem>>
    %757 = arith.index_cast %756 : i32 to index
    %c0_159 = arith.constant 0 : index
    %758 = vector.load %arg8[%757, %c0_159] : memref<64x128xf32, #tpu.memory_space<vmem>>, vector<1x128xf32>
    %759 = arith.cmpi slt, %c4_i32_158, %708 : i32
    %760 = arith.extui %759 : i1 to i32
    %761 = arith.sitofp %760 : i32 to f32
    %762 = vector.broadcast %761 : f32 to vector<1x128xf32>
    %763 = arith.mulf %758, %762 : vector<1x128xf32>
    %764 = arith.addf %753, %763 : vector<1x128xf32>
    %c5_i32_160 = arith.constant 5 : i32
    %765 = arith.index_cast %706 : i32 to index
    %766 = arith.index_cast %c5_i32_160 : i32 to index
    %767 = memref.load %arg5[%765, %766] : memref<8x6xi32, #tpu.memory_space<smem>>
    %768 = arith.index_cast %767 : i32 to index
    %c0_161 = arith.constant 0 : index
    %769 = vector.load %arg8[%768, %c0_161] : memref<64x128xf32, #tpu.memory_space<vmem>>, vector<1x128xf32>
    %770 = arith.cmpi slt, %c5_i32_160, %708 : i32
    %771 = arith.extui %770 : i1 to i32
    %772 = arith.sitofp %771 : i32 to f32
    %773 = vector.broadcast %772 : f32 to vector<1x128xf32>
    %774 = arith.mulf %769, %773 : vector<1x128xf32>
    %775 = arith.addf %764, %774 : vector<1x128xf32>
    %c6_i32_162 = arith.constant 6 : i32
    %c1_i32_163 = arith.constant 1 : i32
    %776 = arith.maxsi %708, %c1_i32_163 : i32
    %777 = arith.sitofp %776 : i32 to f32
    %778 = vector.broadcast %777 : f32 to vector<1x128xf32>
    %779 = arith.divf %775, %778 : vector<1x128xf32>
    %c4_i32_164 = arith.constant 4 : i32
    %780 = arith.muli %arg0, %c4_i32_164 : i32
    %c1_i32_165 = arith.constant 1 : i32
    %781 = arith.addi %780, %c1_i32_165 : i32
    %c2_i32_166 = arith.constant 2 : i32
    %782 = arith.muli %781, %c2_i32_166 : i32
    %c0_i32_167 = arith.constant 0 : i32
    %783 = arith.addi %782, %c0_i32_167 : i32
    %784 = arith.index_cast %783 : i32 to index
    %785 = memref.load %arg6[%784] : memref<8xi32, #tpu.memory_space<smem>>
    %cst_168 = arith.constant 0.000000e+00 : f32
    %786 = vector.broadcast %cst_168 : f32 to vector<1x128xf32>
    %c0_i32_169 = arith.constant 0 : i32
    %787 = arith.index_cast %783 : i32 to index
    %788 = arith.index_cast %c0_i32_169 : i32 to index
    %789 = memref.load %arg5[%787, %788] : memref<8x6xi32, #tpu.memory_space<smem>>
    %790 = arith.index_cast %789 : i32 to index
    %c0_170 = arith.constant 0 : index
    %791 = vector.load %arg8[%790, %c0_170] : memref<64x128xf32, #tpu.memory_space<vmem>>, vector<1x128xf32>
    %792 = arith.cmpi slt, %c0_i32_169, %785 : i32
    %793 = arith.extui %792 : i1 to i32
    %794 = arith.sitofp %793 : i32 to f32
    %795 = vector.broadcast %794 : f32 to vector<1x128xf32>
    %796 = arith.mulf %791, %795 : vector<1x128xf32>
    %797 = arith.addf %786, %796 : vector<1x128xf32>
    %c1_i32_171 = arith.constant 1 : i32
    %798 = arith.index_cast %783 : i32 to index
    %799 = arith.index_cast %c1_i32_171 : i32 to index
    %800 = memref.load %arg5[%798, %799] : memref<8x6xi32, #tpu.memory_space<smem>>
    %801 = arith.index_cast %800 : i32 to index
    %c0_172 = arith.constant 0 : index
    %802 = vector.load %arg8[%801, %c0_172] : memref<64x128xf32, #tpu.memory_space<vmem>>, vector<1x128xf32>
    %803 = arith.cmpi slt, %c1_i32_171, %785 : i32
    %804 = arith.extui %803 : i1 to i32
    %805 = arith.sitofp %804 : i32 to f32
    %806 = vector.broadcast %805 : f32 to vector<1x128xf32>
    %807 = arith.mulf %802, %806 : vector<1x128xf32>
    %808 = arith.addf %797, %807 : vector<1x128xf32>
    %c2_i32_173 = arith.constant 2 : i32
    %809 = arith.index_cast %783 : i32 to index
    %810 = arith.index_cast %c2_i32_173 : i32 to index
    %811 = memref.load %arg5[%809, %810] : memref<8x6xi32, #tpu.memory_space<smem>>
    %812 = arith.index_cast %811 : i32 to index
    %c0_174 = arith.constant 0 : index
    %813 = vector.load %arg8[%812, %c0_174] : memref<64x128xf32, #tpu.memory_space<vmem>>, vector<1x128xf32>
    %814 = arith.cmpi slt, %c2_i32_173, %785 : i32
    %815 = arith.extui %814 : i1 to i32
    %816 = arith.sitofp %815 : i32 to f32
    %817 = vector.broadcast %816 : f32 to vector<1x128xf32>
    %818 = arith.mulf %813, %817 : vector<1x128xf32>
    %819 = arith.addf %808, %818 : vector<1x128xf32>
    %c3_i32_175 = arith.constant 3 : i32
    %820 = arith.index_cast %783 : i32 to index
    %821 = arith.index_cast %c3_i32_175 : i32 to index
    %822 = memref.load %arg5[%820, %821] : memref<8x6xi32, #tpu.memory_space<smem>>
    %823 = arith.index_cast %822 : i32 to index
    %c0_176 = arith.constant 0 : index
    %824 = vector.load %arg8[%823, %c0_176] : memref<64x128xf32, #tpu.memory_space<vmem>>, vector<1x128xf32>
    %825 = arith.cmpi slt, %c3_i32_175, %785 : i32
    %826 = arith.extui %825 : i1 to i32
    %827 = arith.sitofp %826 : i32 to f32
    %828 = vector.broadcast %827 : f32 to vector<1x128xf32>
    %829 = arith.mulf %824, %828 : vector<1x128xf32>
    %830 = arith.addf %819, %829 : vector<1x128xf32>
    %c4_i32_177 = arith.constant 4 : i32
    %831 = arith.index_cast %783 : i32 to index
    %832 = arith.index_cast %c4_i32_177 : i32 to index
    %833 = memref.load %arg5[%831, %832] : memref<8x6xi32, #tpu.memory_space<smem>>
    %834 = arith.index_cast %833 : i32 to index
    %c0_178 = arith.constant 0 : index
    %835 = vector.load %arg8[%834, %c0_178] : memref<64x128xf32, #tpu.memory_space<vmem>>, vector<1x128xf32>
    %836 = arith.cmpi slt, %c4_i32_177, %785 : i32
    %837 = arith.extui %836 : i1 to i32
    %838 = arith.sitofp %837 : i32 to f32
    %839 = vector.broadcast %838 : f32 to vector<1x128xf32>
    %840 = arith.mulf %835, %839 : vector<1x128xf32>
    %841 = arith.addf %830, %840 : vector<1x128xf32>
    %c5_i32_179 = arith.constant 5 : i32
    %842 = arith.index_cast %783 : i32 to index
    %843 = arith.index_cast %c5_i32_179 : i32 to index
    %844 = memref.load %arg5[%842, %843] : memref<8x6xi32, #tpu.memory_space<smem>>
    %845 = arith.index_cast %844 : i32 to index
    %c0_180 = arith.constant 0 : index
    %846 = vector.load %arg8[%845, %c0_180] : memref<64x128xf32, #tpu.memory_space<vmem>>, vector<1x128xf32>
    %847 = arith.cmpi slt, %c5_i32_179, %785 : i32
    %848 = arith.extui %847 : i1 to i32
    %849 = arith.sitofp %848 : i32 to f32
    %850 = vector.broadcast %849 : f32 to vector<1x128xf32>
    %851 = arith.mulf %846, %850 : vector<1x128xf32>
    %852 = arith.addf %841, %851 : vector<1x128xf32>
    %c6_i32_181 = arith.constant 6 : i32
    %c1_i32_182 = arith.constant 1 : i32
    %853 = arith.maxsi %785, %c1_i32_182 : i32
    %854 = arith.sitofp %853 : i32 to f32
    %855 = vector.broadcast %854 : f32 to vector<1x128xf32>
    %856 = arith.divf %852, %855 : vector<1x128xf32>
    %c4_i32_183 = arith.constant 4 : i32
    %857 = arith.muli %arg0, %c4_i32_183 : i32
    %c2_i32_184 = arith.constant 2 : i32
    %858 = arith.addi %857, %c2_i32_184 : i32
    %c2_i32_185 = arith.constant 2 : i32
    %859 = arith.muli %858, %c2_i32_185 : i32
    %c0_i32_186 = arith.constant 0 : i32
    %860 = arith.addi %859, %c0_i32_186 : i32
    %861 = arith.index_cast %860 : i32 to index
    %862 = memref.load %arg6[%861] : memref<8xi32, #tpu.memory_space<smem>>
    %cst_187 = arith.constant 0.000000e+00 : f32
    %863 = vector.broadcast %cst_187 : f32 to vector<1x128xf32>
    %c0_i32_188 = arith.constant 0 : i32
    %864 = arith.index_cast %860 : i32 to index
    %865 = arith.index_cast %c0_i32_188 : i32 to index
    %866 = memref.load %arg5[%864, %865] : memref<8x6xi32, #tpu.memory_space<smem>>
    %867 = arith.index_cast %866 : i32 to index
    %c0_189 = arith.constant 0 : index
    %868 = vector.load %arg8[%867, %c0_189] : memref<64x128xf32, #tpu.memory_space<vmem>>, vector<1x128xf32>
    %869 = arith.cmpi slt, %c0_i32_188, %862 : i32
    %870 = arith.extui %869 : i1 to i32
    %871 = arith.sitofp %870 : i32 to f32
    %872 = vector.broadcast %871 : f32 to vector<1x128xf32>
    %873 = arith.mulf %868, %872 : vector<1x128xf32>
    %874 = arith.addf %863, %873 : vector<1x128xf32>
    %c1_i32_190 = arith.constant 1 : i32
    %875 = arith.index_cast %860 : i32 to index
    %876 = arith.index_cast %c1_i32_190 : i32 to index
    %877 = memref.load %arg5[%875, %876] : memref<8x6xi32, #tpu.memory_space<smem>>
    %878 = arith.index_cast %877 : i32 to index
    %c0_191 = arith.constant 0 : index
    %879 = vector.load %arg8[%878, %c0_191] : memref<64x128xf32, #tpu.memory_space<vmem>>, vector<1x128xf32>
    %880 = arith.cmpi slt, %c1_i32_190, %862 : i32
    %881 = arith.extui %880 : i1 to i32
    %882 = arith.sitofp %881 : i32 to f32
    %883 = vector.broadcast %882 : f32 to vector<1x128xf32>
    %884 = arith.mulf %879, %883 : vector<1x128xf32>
    %885 = arith.addf %874, %884 : vector<1x128xf32>
    %c2_i32_192 = arith.constant 2 : i32
    %886 = arith.index_cast %860 : i32 to index
    %887 = arith.index_cast %c2_i32_192 : i32 to index
    %888 = memref.load %arg5[%886, %887] : memref<8x6xi32, #tpu.memory_space<smem>>
    %889 = arith.index_cast %888 : i32 to index
    %c0_193 = arith.constant 0 : index
    %890 = vector.load %arg8[%889, %c0_193] : memref<64x128xf32, #tpu.memory_space<vmem>>, vector<1x128xf32>
    %891 = arith.cmpi slt, %c2_i32_192, %862 : i32
    %892 = arith.extui %891 : i1 to i32
    %893 = arith.sitofp %892 : i32 to f32
    %894 = vector.broadcast %893 : f32 to vector<1x128xf32>
    %895 = arith.mulf %890, %894 : vector<1x128xf32>
    %896 = arith.addf %885, %895 : vector<1x128xf32>
    %c3_i32_194 = arith.constant 3 : i32
    %897 = arith.index_cast %860 : i32 to index
    %898 = arith.index_cast %c3_i32_194 : i32 to index
    %899 = memref.load %arg5[%897, %898] : memref<8x6xi32, #tpu.memory_space<smem>>
    %900 = arith.index_cast %899 : i32 to index
    %c0_195 = arith.constant 0 : index
    %901 = vector.load %arg8[%900, %c0_195] : memref<64x128xf32, #tpu.memory_space<vmem>>, vector<1x128xf32>
    %902 = arith.cmpi slt, %c3_i32_194, %862 : i32
    %903 = arith.extui %902 : i1 to i32
    %904 = arith.sitofp %903 : i32 to f32
    %905 = vector.broadcast %904 : f32 to vector<1x128xf32>
    %906 = arith.mulf %901, %905 : vector<1x128xf32>
    %907 = arith.addf %896, %906 : vector<1x128xf32>
    %c4_i32_196 = arith.constant 4 : i32
    %908 = arith.index_cast %860 : i32 to index
    %909 = arith.index_cast %c4_i32_196 : i32 to index
    %910 = memref.load %arg5[%908, %909] : memref<8x6xi32, #tpu.memory_space<smem>>
    %911 = arith.index_cast %910 : i32 to index
    %c0_197 = arith.constant 0 : index
    %912 = vector.load %arg8[%911, %c0_197] : memref<64x128xf32, #tpu.memory_space<vmem>>, vector<1x128xf32>
    %913 = arith.cmpi slt, %c4_i32_196, %862 : i32
    %914 = arith.extui %913 : i1 to i32
    %915 = arith.sitofp %914 : i32 to f32
    %916 = vector.broadcast %915 : f32 to vector<1x128xf32>
    %917 = arith.mulf %912, %916 : vector<1x128xf32>
    %918 = arith.addf %907, %917 : vector<1x128xf32>
    %c5_i32_198 = arith.constant 5 : i32
    %919 = arith.index_cast %860 : i32 to index
    %920 = arith.index_cast %c5_i32_198 : i32 to index
    %921 = memref.load %arg5[%919, %920] : memref<8x6xi32, #tpu.memory_space<smem>>
    %922 = arith.index_cast %921 : i32 to index
    %c0_199 = arith.constant 0 : index
    %923 = vector.load %arg8[%922, %c0_199] : memref<64x128xf32, #tpu.memory_space<vmem>>, vector<1x128xf32>
    %924 = arith.cmpi slt, %c5_i32_198, %862 : i32
    %925 = arith.extui %924 : i1 to i32
    %926 = arith.sitofp %925 : i32 to f32
    %927 = vector.broadcast %926 : f32 to vector<1x128xf32>
    %928 = arith.mulf %923, %927 : vector<1x128xf32>
    %929 = arith.addf %918, %928 : vector<1x128xf32>
    %c6_i32_200 = arith.constant 6 : i32
    %c1_i32_201 = arith.constant 1 : i32
    %930 = arith.maxsi %862, %c1_i32_201 : i32
    %931 = arith.sitofp %930 : i32 to f32
    %932 = vector.broadcast %931 : f32 to vector<1x128xf32>
    %933 = arith.divf %929, %932 : vector<1x128xf32>
    %c4_i32_202 = arith.constant 4 : i32
    %934 = arith.muli %arg0, %c4_i32_202 : i32
    %c3_i32_203 = arith.constant 3 : i32
    %935 = arith.addi %934, %c3_i32_203 : i32
    %c2_i32_204 = arith.constant 2 : i32
    %936 = arith.muli %935, %c2_i32_204 : i32
    %c0_i32_205 = arith.constant 0 : i32
    %937 = arith.addi %936, %c0_i32_205 : i32
    %938 = arith.index_cast %937 : i32 to index
    %939 = memref.load %arg6[%938] : memref<8xi32, #tpu.memory_space<smem>>
    %cst_206 = arith.constant 0.000000e+00 : f32
    %940 = vector.broadcast %cst_206 : f32 to vector<1x128xf32>
    %c0_i32_207 = arith.constant 0 : i32
    %941 = arith.index_cast %937 : i32 to index
    %942 = arith.index_cast %c0_i32_207 : i32 to index
    %943 = memref.load %arg5[%941, %942] : memref<8x6xi32, #tpu.memory_space<smem>>
    %944 = arith.index_cast %943 : i32 to index
    %c0_208 = arith.constant 0 : index
    %945 = vector.load %arg8[%944, %c0_208] : memref<64x128xf32, #tpu.memory_space<vmem>>, vector<1x128xf32>
    %946 = arith.cmpi slt, %c0_i32_207, %939 : i32
    %947 = arith.extui %946 : i1 to i32
    %948 = arith.sitofp %947 : i32 to f32
    %949 = vector.broadcast %948 : f32 to vector<1x128xf32>
    %950 = arith.mulf %945, %949 : vector<1x128xf32>
    %951 = arith.addf %940, %950 : vector<1x128xf32>
    %c1_i32_209 = arith.constant 1 : i32
    %952 = arith.index_cast %937 : i32 to index
    %953 = arith.index_cast %c1_i32_209 : i32 to index
    %954 = memref.load %arg5[%952, %953] : memref<8x6xi32, #tpu.memory_space<smem>>
    %955 = arith.index_cast %954 : i32 to index
    %c0_210 = arith.constant 0 : index
    %956 = vector.load %arg8[%955, %c0_210] : memref<64x128xf32, #tpu.memory_space<vmem>>, vector<1x128xf32>
    %957 = arith.cmpi slt, %c1_i32_209, %939 : i32
    %958 = arith.extui %957 : i1 to i32
    %959 = arith.sitofp %958 : i32 to f32
    %960 = vector.broadcast %959 : f32 to vector<1x128xf32>
    %961 = arith.mulf %956, %960 : vector<1x128xf32>
    %962 = arith.addf %951, %961 : vector<1x128xf32>
    %c2_i32_211 = arith.constant 2 : i32
    %963 = arith.index_cast %937 : i32 to index
    %964 = arith.index_cast %c2_i32_211 : i32 to index
    %965 = memref.load %arg5[%963, %964] : memref<8x6xi32, #tpu.memory_space<smem>>
    %966 = arith.index_cast %965 : i32 to index
    %c0_212 = arith.constant 0 : index
    %967 = vector.load %arg8[%966, %c0_212] : memref<64x128xf32, #tpu.memory_space<vmem>>, vector<1x128xf32>
    %968 = arith.cmpi slt, %c2_i32_211, %939 : i32
    %969 = arith.extui %968 : i1 to i32
    %970 = arith.sitofp %969 : i32 to f32
    %971 = vector.broadcast %970 : f32 to vector<1x128xf32>
    %972 = arith.mulf %967, %971 : vector<1x128xf32>
    %973 = arith.addf %962, %972 : vector<1x128xf32>
    %c3_i32_213 = arith.constant 3 : i32
    %974 = arith.index_cast %937 : i32 to index
    %975 = arith.index_cast %c3_i32_213 : i32 to index
    %976 = memref.load %arg5[%974, %975] : memref<8x6xi32, #tpu.memory_space<smem>>
    %977 = arith.index_cast %976 : i32 to index
    %c0_214 = arith.constant 0 : index
    %978 = vector.load %arg8[%977, %c0_214] : memref<64x128xf32, #tpu.memory_space<vmem>>, vector<1x128xf32>
    %979 = arith.cmpi slt, %c3_i32_213, %939 : i32
    %980 = arith.extui %979 : i1 to i32
    %981 = arith.sitofp %980 : i32 to f32
    %982 = vector.broadcast %981 : f32 to vector<1x128xf32>
    %983 = arith.mulf %978, %982 : vector<1x128xf32>
    %984 = arith.addf %973, %983 : vector<1x128xf32>
    %c4_i32_215 = arith.constant 4 : i32
    %985 = arith.index_cast %937 : i32 to index
    %986 = arith.index_cast %c4_i32_215 : i32 to index
    %987 = memref.load %arg5[%985, %986] : memref<8x6xi32, #tpu.memory_space<smem>>
    %988 = arith.index_cast %987 : i32 to index
    %c0_216 = arith.constant 0 : index
    %989 = vector.load %arg8[%988, %c0_216] : memref<64x128xf32, #tpu.memory_space<vmem>>, vector<1x128xf32>
    %990 = arith.cmpi slt, %c4_i32_215, %939 : i32
    %991 = arith.extui %990 : i1 to i32
    %992 = arith.sitofp %991 : i32 to f32
    %993 = vector.broadcast %992 : f32 to vector<1x128xf32>
    %994 = arith.mulf %989, %993 : vector<1x128xf32>
    %995 = arith.addf %984, %994 : vector<1x128xf32>
    %c5_i32_217 = arith.constant 5 : i32
    %996 = arith.index_cast %937 : i32 to index
    %997 = arith.index_cast %c5_i32_217 : i32 to index
    %998 = memref.load %arg5[%996, %997] : memref<8x6xi32, #tpu.memory_space<smem>>
    %999 = arith.index_cast %998 : i32 to index
    %c0_218 = arith.constant 0 : index
    %1000 = vector.load %arg8[%999, %c0_218] : memref<64x128xf32, #tpu.memory_space<vmem>>, vector<1x128xf32>
    %1001 = arith.cmpi slt, %c5_i32_217, %939 : i32
    %1002 = arith.extui %1001 : i1 to i32
    %1003 = arith.sitofp %1002 : i32 to f32
    %1004 = vector.broadcast %1003 : f32 to vector<1x128xf32>
    %1005 = arith.mulf %1000, %1004 : vector<1x128xf32>
    %1006 = arith.addf %995, %1005 : vector<1x128xf32>
    %c6_i32_219 = arith.constant 6 : i32
    %c1_i32_220 = arith.constant 1 : i32
    %1007 = arith.maxsi %939, %c1_i32_220 : i32
    %1008 = arith.sitofp %1007 : i32 to f32
    %1009 = vector.broadcast %1008 : f32 to vector<1x128xf32>
    %1010 = arith.divf %1006, %1009 : vector<1x128xf32>
    %1011 = tpu.concatenate %779, %856, %933, %1010 in 0 : vector<1x128xf32>, vector<1x128xf32>, vector<1x128xf32>, vector<1x128xf32> -> vector<4x128xf32>
    %1012 = arith.mulf %1011, %388 : vector<4x128xf32>
    %cst_221 = arith.constant dense<0.000000e+00> : vector<4xf32>
    %1013 = vector.multi_reduction <add>, %1012, %cst_221 [1] : vector<4x128xf32> to vector<4xf32>
    %1014 = vector.shape_cast %1013 : vector<4xf32> to vector<4x1xf32>
    %cst_222 = arith.constant 0.000000e+00 : f32
    %1015 = vector.broadcast %cst_222 : f32 to vector<4x1xf32>
    %1016 = arith.subf %1015, %1014 : vector<4x1xf32>
    %cst_223 = arith.constant 0.000000e+00 : f32
    %1017 = vector.broadcast %cst_223 : f32 to vector<4x1xf32>
    %1018 = arith.minimumf %1016, %1017 : vector<4x1xf32>
    %1019 = math.absf %1016 : vector<4x1xf32>
    %cst_224 = arith.constant 0.000000e+00 : f32
    %1020 = vector.broadcast %cst_224 : f32 to vector<4x1xf32>
    %1021 = arith.subf %1020, %1019 : vector<4x1xf32>
    %1022 = math.exp %1021 : vector<4x1xf32>
    %cst_225 = arith.constant 1.000000e+00 : f32
    %1023 = vector.broadcast %cst_225 : f32 to vector<4x1xf32>
    %1024 = arith.addf %1023, %1022 : vector<4x1xf32>
    %1025 = math.log %1024 : vector<4x1xf32>
    %1026 = arith.subf %1018, %1025 : vector<4x1xf32>
    %1027 = arith.addf %702, %1026 : vector<4x1xf32>
    %c4_i32_226 = arith.constant 4 : i32
    %1028 = arith.muli %arg0, %c4_i32_226 : i32
    %c0_i32_227 = arith.constant 0 : i32
    %1029 = arith.addi %1028, %c0_i32_227 : i32
    %c2_i32_228 = arith.constant 2 : i32
    %1030 = arith.muli %1029, %c2_i32_228 : i32
    %c1_i32_229 = arith.constant 1 : i32
    %1031 = arith.addi %1030, %c1_i32_229 : i32
    %1032 = arith.index_cast %1031 : i32 to index
    %1033 = memref.load %arg6[%1032] : memref<8xi32, #tpu.memory_space<smem>>
    %cst_230 = arith.constant 0.000000e+00 : f32
    %1034 = vector.broadcast %cst_230 : f32 to vector<1x128xf32>
    %c0_i32_231 = arith.constant 0 : i32
    %1035 = arith.index_cast %1031 : i32 to index
    %1036 = arith.index_cast %c0_i32_231 : i32 to index
    %1037 = memref.load %arg5[%1035, %1036] : memref<8x6xi32, #tpu.memory_space<smem>>
    %1038 = arith.index_cast %1037 : i32 to index
    %c0_232 = arith.constant 0 : index
    %1039 = vector.load %arg8[%1038, %c0_232] : memref<64x128xf32, #tpu.memory_space<vmem>>, vector<1x128xf32>
    %1040 = arith.cmpi slt, %c0_i32_231, %1033 : i32
    %1041 = arith.extui %1040 : i1 to i32
    %1042 = arith.sitofp %1041 : i32 to f32
    %1043 = vector.broadcast %1042 : f32 to vector<1x128xf32>
    %1044 = arith.mulf %1039, %1043 : vector<1x128xf32>
    %1045 = arith.addf %1034, %1044 : vector<1x128xf32>
    %c1_i32_233 = arith.constant 1 : i32
    %1046 = arith.index_cast %1031 : i32 to index
    %1047 = arith.index_cast %c1_i32_233 : i32 to index
    %1048 = memref.load %arg5[%1046, %1047] : memref<8x6xi32, #tpu.memory_space<smem>>
    %1049 = arith.index_cast %1048 : i32 to index
    %c0_234 = arith.constant 0 : index
    %1050 = vector.load %arg8[%1049, %c0_234] : memref<64x128xf32, #tpu.memory_space<vmem>>, vector<1x128xf32>
    %1051 = arith.cmpi slt, %c1_i32_233, %1033 : i32
    %1052 = arith.extui %1051 : i1 to i32
    %1053 = arith.sitofp %1052 : i32 to f32
    %1054 = vector.broadcast %1053 : f32 to vector<1x128xf32>
    %1055 = arith.mulf %1050, %1054 : vector<1x128xf32>
    %1056 = arith.addf %1045, %1055 : vector<1x128xf32>
    %c2_i32_235 = arith.constant 2 : i32
    %1057 = arith.index_cast %1031 : i32 to index
    %1058 = arith.index_cast %c2_i32_235 : i32 to index
    %1059 = memref.load %arg5[%1057, %1058] : memref<8x6xi32, #tpu.memory_space<smem>>
    %1060 = arith.index_cast %1059 : i32 to index
    %c0_236 = arith.constant 0 : index
    %1061 = vector.load %arg8[%1060, %c0_236] : memref<64x128xf32, #tpu.memory_space<vmem>>, vector<1x128xf32>
    %1062 = arith.cmpi slt, %c2_i32_235, %1033 : i32
    %1063 = arith.extui %1062 : i1 to i32
    %1064 = arith.sitofp %1063 : i32 to f32
    %1065 = vector.broadcast %1064 : f32 to vector<1x128xf32>
    %1066 = arith.mulf %1061, %1065 : vector<1x128xf32>
    %1067 = arith.addf %1056, %1066 : vector<1x128xf32>
    %c3_i32_237 = arith.constant 3 : i32
    %1068 = arith.index_cast %1031 : i32 to index
    %1069 = arith.index_cast %c3_i32_237 : i32 to index
    %1070 = memref.load %arg5[%1068, %1069] : memref<8x6xi32, #tpu.memory_space<smem>>
    %1071 = arith.index_cast %1070 : i32 to index
    %c0_238 = arith.constant 0 : index
    %1072 = vector.load %arg8[%1071, %c0_238] : memref<64x128xf32, #tpu.memory_space<vmem>>, vector<1x128xf32>
    %1073 = arith.cmpi slt, %c3_i32_237, %1033 : i32
    %1074 = arith.extui %1073 : i1 to i32
    %1075 = arith.sitofp %1074 : i32 to f32
    %1076 = vector.broadcast %1075 : f32 to vector<1x128xf32>
    %1077 = arith.mulf %1072, %1076 : vector<1x128xf32>
    %1078 = arith.addf %1067, %1077 : vector<1x128xf32>
    %c4_i32_239 = arith.constant 4 : i32
    %1079 = arith.index_cast %1031 : i32 to index
    %1080 = arith.index_cast %c4_i32_239 : i32 to index
    %1081 = memref.load %arg5[%1079, %1080] : memref<8x6xi32, #tpu.memory_space<smem>>
    %1082 = arith.index_cast %1081 : i32 to index
    %c0_240 = arith.constant 0 : index
    %1083 = vector.load %arg8[%1082, %c0_240] : memref<64x128xf32, #tpu.memory_space<vmem>>, vector<1x128xf32>
    %1084 = arith.cmpi slt, %c4_i32_239, %1033 : i32
    %1085 = arith.extui %1084 : i1 to i32
    %1086 = arith.sitofp %1085 : i32 to f32
    %1087 = vector.broadcast %1086 : f32 to vector<1x128xf32>
    %1088 = arith.mulf %1083, %1087 : vector<1x128xf32>
    %1089 = arith.addf %1078, %1088 : vector<1x128xf32>
    %c5_i32_241 = arith.constant 5 : i32
    %1090 = arith.index_cast %1031 : i32 to index
    %1091 = arith.index_cast %c5_i32_241 : i32 to index
    %1092 = memref.load %arg5[%1090, %1091] : memref<8x6xi32, #tpu.memory_space<smem>>
    %1093 = arith.index_cast %1092 : i32 to index
    %c0_242 = arith.constant 0 : index
    %1094 = vector.load %arg8[%1093, %c0_242] : memref<64x128xf32, #tpu.memory_space<vmem>>, vector<1x128xf32>
    %1095 = arith.cmpi slt, %c5_i32_241, %1033 : i32
    %1096 = arith.extui %1095 : i1 to i32
    %1097 = arith.sitofp %1096 : i32 to f32
    %1098 = vector.broadcast %1097 : f32 to vector<1x128xf32>
    %1099 = arith.mulf %1094, %1098 : vector<1x128xf32>
    %1100 = arith.addf %1089, %1099 : vector<1x128xf32>
    %c6_i32_243 = arith.constant 6 : i32
    %c1_i32_244 = arith.constant 1 : i32
    %1101 = arith.maxsi %1033, %c1_i32_244 : i32
    %1102 = arith.sitofp %1101 : i32 to f32
    %1103 = vector.broadcast %1102 : f32 to vector<1x128xf32>
    %1104 = arith.divf %1100, %1103 : vector<1x128xf32>
    %c4_i32_245 = arith.constant 4 : i32
    %1105 = arith.muli %arg0, %c4_i32_245 : i32
    %c1_i32_246 = arith.constant 1 : i32
    %1106 = arith.addi %1105, %c1_i32_246 : i32
    %c2_i32_247 = arith.constant 2 : i32
    %1107 = arith.muli %1106, %c2_i32_247 : i32
    %c1_i32_248 = arith.constant 1 : i32
    %1108 = arith.addi %1107, %c1_i32_248 : i32
    %1109 = arith.index_cast %1108 : i32 to index
    %1110 = memref.load %arg6[%1109] : memref<8xi32, #tpu.memory_space<smem>>
    %cst_249 = arith.constant 0.000000e+00 : f32
    %1111 = vector.broadcast %cst_249 : f32 to vector<1x128xf32>
    %c0_i32_250 = arith.constant 0 : i32
    %1112 = arith.index_cast %1108 : i32 to index
    %1113 = arith.index_cast %c0_i32_250 : i32 to index
    %1114 = memref.load %arg5[%1112, %1113] : memref<8x6xi32, #tpu.memory_space<smem>>
    %1115 = arith.index_cast %1114 : i32 to index
    %c0_251 = arith.constant 0 : index
    %1116 = vector.load %arg8[%1115, %c0_251] : memref<64x128xf32, #tpu.memory_space<vmem>>, vector<1x128xf32>
    %1117 = arith.cmpi slt, %c0_i32_250, %1110 : i32
    %1118 = arith.extui %1117 : i1 to i32
    %1119 = arith.sitofp %1118 : i32 to f32
    %1120 = vector.broadcast %1119 : f32 to vector<1x128xf32>
    %1121 = arith.mulf %1116, %1120 : vector<1x128xf32>
    %1122 = arith.addf %1111, %1121 : vector<1x128xf32>
    %c1_i32_252 = arith.constant 1 : i32
    %1123 = arith.index_cast %1108 : i32 to index
    %1124 = arith.index_cast %c1_i32_252 : i32 to index
    %1125 = memref.load %arg5[%1123, %1124] : memref<8x6xi32, #tpu.memory_space<smem>>
    %1126 = arith.index_cast %1125 : i32 to index
    %c0_253 = arith.constant 0 : index
    %1127 = vector.load %arg8[%1126, %c0_253] : memref<64x128xf32, #tpu.memory_space<vmem>>, vector<1x128xf32>
    %1128 = arith.cmpi slt, %c1_i32_252, %1110 : i32
    %1129 = arith.extui %1128 : i1 to i32
    %1130 = arith.sitofp %1129 : i32 to f32
    %1131 = vector.broadcast %1130 : f32 to vector<1x128xf32>
    %1132 = arith.mulf %1127, %1131 : vector<1x128xf32>
    %1133 = arith.addf %1122, %1132 : vector<1x128xf32>
    %c2_i32_254 = arith.constant 2 : i32
    %1134 = arith.index_cast %1108 : i32 to index
    %1135 = arith.index_cast %c2_i32_254 : i32 to index
    %1136 = memref.load %arg5[%1134, %1135] : memref<8x6xi32, #tpu.memory_space<smem>>
    %1137 = arith.index_cast %1136 : i32 to index
    %c0_255 = arith.constant 0 : index
    %1138 = vector.load %arg8[%1137, %c0_255] : memref<64x128xf32, #tpu.memory_space<vmem>>, vector<1x128xf32>
    %1139 = arith.cmpi slt, %c2_i32_254, %1110 : i32
    %1140 = arith.extui %1139 : i1 to i32
    %1141 = arith.sitofp %1140 : i32 to f32
    %1142 = vector.broadcast %1141 : f32 to vector<1x128xf32>
    %1143 = arith.mulf %1138, %1142 : vector<1x128xf32>
    %1144 = arith.addf %1133, %1143 : vector<1x128xf32>
    %c3_i32_256 = arith.constant 3 : i32
    %1145 = arith.index_cast %1108 : i32 to index
    %1146 = arith.index_cast %c3_i32_256 : i32 to index
    %1147 = memref.load %arg5[%1145, %1146] : memref<8x6xi32, #tpu.memory_space<smem>>
    %1148 = arith.index_cast %1147 : i32 to index
    %c0_257 = arith.constant 0 : index
    %1149 = vector.load %arg8[%1148, %c0_257] : memref<64x128xf32, #tpu.memory_space<vmem>>, vector<1x128xf32>
    %1150 = arith.cmpi slt, %c3_i32_256, %1110 : i32
    %1151 = arith.extui %1150 : i1 to i32
    %1152 = arith.sitofp %1151 : i32 to f32
    %1153 = vector.broadcast %1152 : f32 to vector<1x128xf32>
    %1154 = arith.mulf %1149, %1153 : vector<1x128xf32>
    %1155 = arith.addf %1144, %1154 : vector<1x128xf32>
    %c4_i32_258 = arith.constant 4 : i32
    %1156 = arith.index_cast %1108 : i32 to index
    %1157 = arith.index_cast %c4_i32_258 : i32 to index
    %1158 = memref.load %arg5[%1156, %1157] : memref<8x6xi32, #tpu.memory_space<smem>>
    %1159 = arith.index_cast %1158 : i32 to index
    %c0_259 = arith.constant 0 : index
    %1160 = vector.load %arg8[%1159, %c0_259] : memref<64x128xf32, #tpu.memory_space<vmem>>, vector<1x128xf32>
    %1161 = arith.cmpi slt, %c4_i32_258, %1110 : i32
    %1162 = arith.extui %1161 : i1 to i32
    %1163 = arith.sitofp %1162 : i32 to f32
    %1164 = vector.broadcast %1163 : f32 to vector<1x128xf32>
    %1165 = arith.mulf %1160, %1164 : vector<1x128xf32>
    %1166 = arith.addf %1155, %1165 : vector<1x128xf32>
    %c5_i32_260 = arith.constant 5 : i32
    %1167 = arith.index_cast %1108 : i32 to index
    %1168 = arith.index_cast %c5_i32_260 : i32 to index
    %1169 = memref.load %arg5[%1167, %1168] : memref<8x6xi32, #tpu.memory_space<smem>>
    %1170 = arith.index_cast %1169 : i32 to index
    %c0_261 = arith.constant 0 : index
    %1171 = vector.load %arg8[%1170, %c0_261] : memref<64x128xf32, #tpu.memory_space<vmem>>, vector<1x128xf32>
    %1172 = arith.cmpi slt, %c5_i32_260, %1110 : i32
    %1173 = arith.extui %1172 : i1 to i32
    %1174 = arith.sitofp %1173 : i32 to f32
    %1175 = vector.broadcast %1174 : f32 to vector<1x128xf32>
    %1176 = arith.mulf %1171, %1175 : vector<1x128xf32>
    %1177 = arith.addf %1166, %1176 : vector<1x128xf32>
    %c6_i32_262 = arith.constant 6 : i32
    %c1_i32_263 = arith.constant 1 : i32
    %1178 = arith.maxsi %1110, %c1_i32_263 : i32
    %1179 = arith.sitofp %1178 : i32 to f32
    %1180 = vector.broadcast %1179 : f32 to vector<1x128xf32>
    %1181 = arith.divf %1177, %1180 : vector<1x128xf32>
    %c4_i32_264 = arith.constant 4 : i32
    %1182 = arith.muli %arg0, %c4_i32_264 : i32
    %c2_i32_265 = arith.constant 2 : i32
    %1183 = arith.addi %1182, %c2_i32_265 : i32
    %c2_i32_266 = arith.constant 2 : i32
    %1184 = arith.muli %1183, %c2_i32_266 : i32
    %c1_i32_267 = arith.constant 1 : i32
    %1185 = arith.addi %1184, %c1_i32_267 : i32
    %1186 = arith.index_cast %1185 : i32 to index
    %1187 = memref.load %arg6[%1186] : memref<8xi32, #tpu.memory_space<smem>>
    %cst_268 = arith.constant 0.000000e+00 : f32
    %1188 = vector.broadcast %cst_268 : f32 to vector<1x128xf32>
    %c0_i32_269 = arith.constant 0 : i32
    %1189 = arith.index_cast %1185 : i32 to index
    %1190 = arith.index_cast %c0_i32_269 : i32 to index
    %1191 = memref.load %arg5[%1189, %1190] : memref<8x6xi32, #tpu.memory_space<smem>>
    %1192 = arith.index_cast %1191 : i32 to index
    %c0_270 = arith.constant 0 : index
    %1193 = vector.load %arg8[%1192, %c0_270] : memref<64x128xf32, #tpu.memory_space<vmem>>, vector<1x128xf32>
    %1194 = arith.cmpi slt, %c0_i32_269, %1187 : i32
    %1195 = arith.extui %1194 : i1 to i32
    %1196 = arith.sitofp %1195 : i32 to f32
    %1197 = vector.broadcast %1196 : f32 to vector<1x128xf32>
    %1198 = arith.mulf %1193, %1197 : vector<1x128xf32>
    %1199 = arith.addf %1188, %1198 : vector<1x128xf32>
    %c1_i32_271 = arith.constant 1 : i32
    %1200 = arith.index_cast %1185 : i32 to index
    %1201 = arith.index_cast %c1_i32_271 : i32 to index
    %1202 = memref.load %arg5[%1200, %1201] : memref<8x6xi32, #tpu.memory_space<smem>>
    %1203 = arith.index_cast %1202 : i32 to index
    %c0_272 = arith.constant 0 : index
    %1204 = vector.load %arg8[%1203, %c0_272] : memref<64x128xf32, #tpu.memory_space<vmem>>, vector<1x128xf32>
    %1205 = arith.cmpi slt, %c1_i32_271, %1187 : i32
    %1206 = arith.extui %1205 : i1 to i32
    %1207 = arith.sitofp %1206 : i32 to f32
    %1208 = vector.broadcast %1207 : f32 to vector<1x128xf32>
    %1209 = arith.mulf %1204, %1208 : vector<1x128xf32>
    %1210 = arith.addf %1199, %1209 : vector<1x128xf32>
    %c2_i32_273 = arith.constant 2 : i32
    %1211 = arith.index_cast %1185 : i32 to index
    %1212 = arith.index_cast %c2_i32_273 : i32 to index
    %1213 = memref.load %arg5[%1211, %1212] : memref<8x6xi32, #tpu.memory_space<smem>>
    %1214 = arith.index_cast %1213 : i32 to index
    %c0_274 = arith.constant 0 : index
    %1215 = vector.load %arg8[%1214, %c0_274] : memref<64x128xf32, #tpu.memory_space<vmem>>, vector<1x128xf32>
    %1216 = arith.cmpi slt, %c2_i32_273, %1187 : i32
    %1217 = arith.extui %1216 : i1 to i32
    %1218 = arith.sitofp %1217 : i32 to f32
    %1219 = vector.broadcast %1218 : f32 to vector<1x128xf32>
    %1220 = arith.mulf %1215, %1219 : vector<1x128xf32>
    %1221 = arith.addf %1210, %1220 : vector<1x128xf32>
    %c3_i32_275 = arith.constant 3 : i32
    %1222 = arith.index_cast %1185 : i32 to index
    %1223 = arith.index_cast %c3_i32_275 : i32 to index
    %1224 = memref.load %arg5[%1222, %1223] : memref<8x6xi32, #tpu.memory_space<smem>>
    %1225 = arith.index_cast %1224 : i32 to index
    %c0_276 = arith.constant 0 : index
    %1226 = vector.load %arg8[%1225, %c0_276] : memref<64x128xf32, #tpu.memory_space<vmem>>, vector<1x128xf32>
    %1227 = arith.cmpi slt, %c3_i32_275, %1187 : i32
    %1228 = arith.extui %1227 : i1 to i32
    %1229 = arith.sitofp %1228 : i32 to f32
    %1230 = vector.broadcast %1229 : f32 to vector<1x128xf32>
    %1231 = arith.mulf %1226, %1230 : vector<1x128xf32>
    %1232 = arith.addf %1221, %1231 : vector<1x128xf32>
    %c4_i32_277 = arith.constant 4 : i32
    %1233 = arith.index_cast %1185 : i32 to index
    %1234 = arith.index_cast %c4_i32_277 : i32 to index
    %1235 = memref.load %arg5[%1233, %1234] : memref<8x6xi32, #tpu.memory_space<smem>>
    %1236 = arith.index_cast %1235 : i32 to index
    %c0_278 = arith.constant 0 : index
    %1237 = vector.load %arg8[%1236, %c0_278] : memref<64x128xf32, #tpu.memory_space<vmem>>, vector<1x128xf32>
    %1238 = arith.cmpi slt, %c4_i32_277, %1187 : i32
    %1239 = arith.extui %1238 : i1 to i32
    %1240 = arith.sitofp %1239 : i32 to f32
    %1241 = vector.broadcast %1240 : f32 to vector<1x128xf32>
    %1242 = arith.mulf %1237, %1241 : vector<1x128xf32>
    %1243 = arith.addf %1232, %1242 : vector<1x128xf32>
    %c5_i32_279 = arith.constant 5 : i32
    %1244 = arith.index_cast %1185 : i32 to index
    %1245 = arith.index_cast %c5_i32_279 : i32 to index
    %1246 = memref.load %arg5[%1244, %1245] : memref<8x6xi32, #tpu.memory_space<smem>>
    %1247 = arith.index_cast %1246 : i32 to index
    %c0_280 = arith.constant 0 : index
    %1248 = vector.load %arg8[%1247, %c0_280] : memref<64x128xf32, #tpu.memory_space<vmem>>, vector<1x128xf32>
    %1249 = arith.cmpi slt, %c5_i32_279, %1187 : i32
    %1250 = arith.extui %1249 : i1 to i32
    %1251 = arith.sitofp %1250 : i32 to f32
    %1252 = vector.broadcast %1251 : f32 to vector<1x128xf32>
    %1253 = arith.mulf %1248, %1252 : vector<1x128xf32>
    %1254 = arith.addf %1243, %1253 : vector<1x128xf32>
    %c6_i32_281 = arith.constant 6 : i32
    %c1_i32_282 = arith.constant 1 : i32
    %1255 = arith.maxsi %1187, %c1_i32_282 : i32
    %1256 = arith.sitofp %1255 : i32 to f32
    %1257 = vector.broadcast %1256 : f32 to vector<1x128xf32>
    %1258 = arith.divf %1254, %1257 : vector<1x128xf32>
    %c4_i32_283 = arith.constant 4 : i32
    %1259 = arith.muli %arg0, %c4_i32_283 : i32
    %c3_i32_284 = arith.constant 3 : i32
    %1260 = arith.addi %1259, %c3_i32_284 : i32
    %c2_i32_285 = arith.constant 2 : i32
    %1261 = arith.muli %1260, %c2_i32_285 : i32
    %c1_i32_286 = arith.constant 1 : i32
    %1262 = arith.addi %1261, %c1_i32_286 : i32
    %1263 = arith.index_cast %1262 : i32 to index
    %1264 = memref.load %arg6[%1263] : memref<8xi32, #tpu.memory_space<smem>>
    %cst_287 = arith.constant 0.000000e+00 : f32
    %1265 = vector.broadcast %cst_287 : f32 to vector<1x128xf32>
    %c0_i32_288 = arith.constant 0 : i32
    %1266 = arith.index_cast %1262 : i32 to index
    %1267 = arith.index_cast %c0_i32_288 : i32 to index
    %1268 = memref.load %arg5[%1266, %1267] : memref<8x6xi32, #tpu.memory_space<smem>>
    %1269 = arith.index_cast %1268 : i32 to index
    %c0_289 = arith.constant 0 : index
    %1270 = vector.load %arg8[%1269, %c0_289] : memref<64x128xf32, #tpu.memory_space<vmem>>, vector<1x128xf32>
    %1271 = arith.cmpi slt, %c0_i32_288, %1264 : i32
    %1272 = arith.extui %1271 : i1 to i32
    %1273 = arith.sitofp %1272 : i32 to f32
    %1274 = vector.broadcast %1273 : f32 to vector<1x128xf32>
    %1275 = arith.mulf %1270, %1274 : vector<1x128xf32>
    %1276 = arith.addf %1265, %1275 : vector<1x128xf32>
    %c1_i32_290 = arith.constant 1 : i32
    %1277 = arith.index_cast %1262 : i32 to index
    %1278 = arith.index_cast %c1_i32_290 : i32 to index
    %1279 = memref.load %arg5[%1277, %1278] : memref<8x6xi32, #tpu.memory_space<smem>>
    %1280 = arith.index_cast %1279 : i32 to index
    %c0_291 = arith.constant 0 : index
    %1281 = vector.load %arg8[%1280, %c0_291] : memref<64x128xf32, #tpu.memory_space<vmem>>, vector<1x128xf32>
    %1282 = arith.cmpi slt, %c1_i32_290, %1264 : i32
    %1283 = arith.extui %1282 : i1 to i32
    %1284 = arith.sitofp %1283 : i32 to f32
    %1285 = vector.broadcast %1284 : f32 to vector<1x128xf32>
    %1286 = arith.mulf %1281, %1285 : vector<1x128xf32>
    %1287 = arith.addf %1276, %1286 : vector<1x128xf32>
    %c2_i32_292 = arith.constant 2 : i32
    %1288 = arith.index_cast %1262 : i32 to index
    %1289 = arith.index_cast %c2_i32_292 : i32 to index
    %1290 = memref.load %arg5[%1288, %1289] : memref<8x6xi32, #tpu.memory_space<smem>>
    %1291 = arith.index_cast %1290 : i32 to index
    %c0_293 = arith.constant 0 : index
    %1292 = vector.load %arg8[%1291, %c0_293] : memref<64x128xf32, #tpu.memory_space<vmem>>, vector<1x128xf32>
    %1293 = arith.cmpi slt, %c2_i32_292, %1264 : i32
    %1294 = arith.extui %1293 : i1 to i32
    %1295 = arith.sitofp %1294 : i32 to f32
    %1296 = vector.broadcast %1295 : f32 to vector<1x128xf32>
    %1297 = arith.mulf %1292, %1296 : vector<1x128xf32>
    %1298 = arith.addf %1287, %1297 : vector<1x128xf32>
    %c3_i32_294 = arith.constant 3 : i32
    %1299 = arith.index_cast %1262 : i32 to index
    %1300 = arith.index_cast %c3_i32_294 : i32 to index
    %1301 = memref.load %arg5[%1299, %1300] : memref<8x6xi32, #tpu.memory_space<smem>>
    %1302 = arith.index_cast %1301 : i32 to index
    %c0_295 = arith.constant 0 : index
    %1303 = vector.load %arg8[%1302, %c0_295] : memref<64x128xf32, #tpu.memory_space<vmem>>, vector<1x128xf32>
    %1304 = arith.cmpi slt, %c3_i32_294, %1264 : i32
    %1305 = arith.extui %1304 : i1 to i32
    %1306 = arith.sitofp %1305 : i32 to f32
    %1307 = vector.broadcast %1306 : f32 to vector<1x128xf32>
    %1308 = arith.mulf %1303, %1307 : vector<1x128xf32>
    %1309 = arith.addf %1298, %1308 : vector<1x128xf32>
    %c4_i32_296 = arith.constant 4 : i32
    %1310 = arith.index_cast %1262 : i32 to index
    %1311 = arith.index_cast %c4_i32_296 : i32 to index
    %1312 = memref.load %arg5[%1310, %1311] : memref<8x6xi32, #tpu.memory_space<smem>>
    %1313 = arith.index_cast %1312 : i32 to index
    %c0_297 = arith.constant 0 : index
    %1314 = vector.load %arg8[%1313, %c0_297] : memref<64x128xf32, #tpu.memory_space<vmem>>, vector<1x128xf32>
    %1315 = arith.cmpi slt, %c4_i32_296, %1264 : i32
    %1316 = arith.extui %1315 : i1 to i32
    %1317 = arith.sitofp %1316 : i32 to f32
    %1318 = vector.broadcast %1317 : f32 to vector<1x128xf32>
    %1319 = arith.mulf %1314, %1318 : vector<1x128xf32>
    %1320 = arith.addf %1309, %1319 : vector<1x128xf32>
    %c5_i32_298 = arith.constant 5 : i32
    %1321 = arith.index_cast %1262 : i32 to index
    %1322 = arith.index_cast %c5_i32_298 : i32 to index
    %1323 = memref.load %arg5[%1321, %1322] : memref<8x6xi32, #tpu.memory_space<smem>>
    %1324 = arith.index_cast %1323 : i32 to index
    %c0_299 = arith.constant 0 : index
    %1325 = vector.load %arg8[%1324, %c0_299] : memref<64x128xf32, #tpu.memory_space<vmem>>, vector<1x128xf32>
    %1326 = arith.cmpi slt, %c5_i32_298, %1264 : i32
    %1327 = arith.extui %1326 : i1 to i32
    %1328 = arith.sitofp %1327 : i32 to f32
    %1329 = vector.broadcast %1328 : f32 to vector<1x128xf32>
    %1330 = arith.mulf %1325, %1329 : vector<1x128xf32>
    %1331 = arith.addf %1320, %1330 : vector<1x128xf32>
    %c6_i32_300 = arith.constant 6 : i32
    %c1_i32_301 = arith.constant 1 : i32
    %1332 = arith.maxsi %1264, %c1_i32_301 : i32
    %1333 = arith.sitofp %1332 : i32 to f32
    %1334 = vector.broadcast %1333 : f32 to vector<1x128xf32>
    %1335 = arith.divf %1331, %1334 : vector<1x128xf32>
    %1336 = tpu.concatenate %1104, %1181, %1258, %1335 in 0 : vector<1x128xf32>, vector<1x128xf32>, vector<1x128xf32>, vector<1x128xf32> -> vector<4x128xf32>
    %1337 = arith.mulf %1336, %388 : vector<4x128xf32>
    %cst_302 = arith.constant dense<0.000000e+00> : vector<4xf32>
    %1338 = vector.multi_reduction <add>, %1337, %cst_302 [1] : vector<4x128xf32> to vector<4xf32>
    %1339 = vector.shape_cast %1338 : vector<4xf32> to vector<4x1xf32>
    %cst_303 = arith.constant 0.000000e+00 : f32
    %1340 = vector.broadcast %cst_303 : f32 to vector<4x1xf32>
    %1341 = arith.subf %1340, %1339 : vector<4x1xf32>
    %cst_304 = arith.constant 0.000000e+00 : f32
    %1342 = vector.broadcast %cst_304 : f32 to vector<4x1xf32>
    %1343 = arith.minimumf %1341, %1342 : vector<4x1xf32>
    %1344 = math.absf %1341 : vector<4x1xf32>
    %cst_305 = arith.constant 0.000000e+00 : f32
    %1345 = vector.broadcast %cst_305 : f32 to vector<4x1xf32>
    %1346 = arith.subf %1345, %1344 : vector<4x1xf32>
    %1347 = math.exp %1346 : vector<4x1xf32>
    %cst_306 = arith.constant 1.000000e+00 : f32
    %1348 = vector.broadcast %cst_306 : f32 to vector<4x1xf32>
    %1349 = arith.addf %1348, %1347 : vector<4x1xf32>
    %1350 = math.log %1349 : vector<4x1xf32>
    %1351 = arith.subf %1343, %1350 : vector<4x1xf32>
    %1352 = arith.addf %1027, %1351 : vector<4x1xf32>
    %1353 = vector.shape_cast %1352 : vector<4x1xf32> to vector<4x1xf32>
    %1354 = vector.broadcast %1353 : vector<4x1xf32> to vector<4x128xf32>
    %c0_307 = arith.constant 0 : index
    %c0_308 = arith.constant 0 : index
    %1355 = vector.load %arg9[%c0_307, %c0_308] : memref<4x128xf32, #tpu.memory_space<vmem>>, vector<4x128xf32>
    tpu.vector_store %arg9[%c0_307, %c0_308], %1354 {strides = array<i32>} : memref<4x128xf32, #tpu.memory_space<vmem>>, vector<4x128xf32>,
    return
  }
  func.func @transform_0(%arg0: i32, %arg1: memref<4x8xi32, #tpu.memory_space<smem>>, %arg2: memref<4xi32, #tpu.memory_space<smem>>, %arg3: memref<4x6xi32, #tpu.memory_space<smem>>, %arg4: memref<4xi32, #tpu.memory_space<smem>>, %arg5: memref<8x6xi32, #tpu.memory_space<smem>>, %arg6: memref<8xi32, #tpu.memory_space<smem>>) -> (i32, i32) {
    %c0_i32 = arith.constant 0 : i32
    %c0_i32_0 = arith.constant 0 : i32
    %c0_i32_1 = arith.constant 0 : i32
    return %c0_i32, %c0_i32_0 : i32, i32
  }
  func.func @transform_1(%arg0: i32, %arg1: memref<4x8xi32, #tpu.memory_space<smem>>, %arg2: memref<4xi32, #tpu.memory_space<smem>>, %arg3: memref<4x6xi32, #tpu.memory_space<smem>>, %arg4: memref<4xi32, #tpu.memory_space<smem>>, %arg5: memref<8x6xi32, #tpu.memory_space<smem>>, %arg6: memref<8xi32, #tpu.memory_space<smem>>) -> (i32, i32) {
    %c0_i32 = arith.constant 0 : i32
    %c0_i32_0 = arith.constant 0 : i32
    %c0_i32_1 = arith.constant 0 : i32
    return %c0_i32, %c0_i32_0 : i32, i32
  }
  func.func @transform_2(%arg0: i32, %arg1: memref<4x8xi32, #tpu.memory_space<smem>>, %arg2: memref<4xi32, #tpu.memory_space<smem>>, %arg3: memref<4x6xi32, #tpu.memory_space<smem>>, %arg4: memref<4xi32, #tpu.memory_space<smem>>, %arg5: memref<8x6xi32, #tpu.memory_space<smem>>, %arg6: memref<8xi32, #tpu.memory_space<smem>>) -> (i32, i32) {
    %c0_i32 = arith.constant 0 : i32
    %c0_i32_0 = arith.constant 0 : i32
    return %arg0, %c0_i32 : i32, i32
  }
}

</mosaic_0001>

<bundles_post_ra>
// kernel: tpu_custom_call.1
= control target key start
LH: loop header
LB: loop body
LE: loop exit
PB: predicated region body
PF: predicated region fallthrough
CT: control target
= control target key end

     0   :  { %s2999_s0 = inlined_call_operand.hbm [shape: s32[4,8], index: 0, kind: input, shape index: {}]   ;;  %s3000_s6 = inlined_call_operand.hbm [shape: f32[64,128], index: 6, kind: input, shape index: {}]   ;;  %s3001_s7 = inlined_call_operand.hbm [shape: f32[64,128], index: 7, kind: input, shape index: {}]   ;;  %s3002_s8 = inlined_call_operand.hbm [shape: f32[4,128], index: 8, kind: output, shape index: {}]   ;;  %s3003_s1 = inlined_call_operand.vmem [shape: s32[4], index: 1, kind: input, shape index: {}]   ;;  %s3004_s2 = inlined_call_operand.vmem [shape: s32[4,6], index: 2, kind: input, shape index: {}]   ;;  %s3005_s3 = inlined_call_operand.vmem [shape: s32[4], index: 3, kind: input, shape index: {}]   ;;  %s3006_s4 = inlined_call_operand.vmem [shape: s32[8,6], index: 4, kind: input, shape index: {}]   ;;  %s3007_s5 = inlined_call_operand.vmem [shape: s32[8], index: 5, kind: input, shape index: {}]  }
   0x1   :  { %3064 = sst [smem:[#allocation89_spill]] %s3002_s8  ;;  %s1595_s29 = scalar_lea.hbm %s2999_s0, 64 }
   0x2   :  { %p1596_p0 = scmp.ne.s32.totalorder %s2999_s0, %s1595_s29  ;;  %p1599_p1 = scmp.lt.u32.totalorder %s1595_s29, %s2999_s0 }
   0x4   :  { %p1601_p2 = pnand %p1599_p1, %p1596_p0 }
   0x6   :  { %1604 = shalt.err (!%p1601_p2)  }
   0x7   :  { %s1739_s12 = smov [#allocation3]   ;;  %s15_s17 = sshll.u32 %s3003_s1, 4  ;;  %s16_s17 = int_to_ptr.vmem [resolvable:$true] %s15_s17 }
   0x8   :  { %14 = dma.hbm_to_smem %s2999_s0, 64, %s1739_s12, [#allocation2] }
   0x9   :  { %s19_s20 = sshll.u32 %s3004_s2, 4  ;;  %s1605_s21 = scalar_lea.vmem %s16_s17, 16  ;;  %s20_s20 = int_to_ptr.vmem [resolvable:$true] %s19_s20 }
   0xa   :  { %p1606_p3 = scmp.ne.s32.totalorder %s16_s17, %s1605_s21  ;;  %p1610_p4 = scmp.lt.s32.totalorder %s16_s17, %s16_s17 }
   0xb   :  { %p1611_p5 = scmp.lt.s32.totalorder %s1605_s21, %s1605_s21 }
   0xd   :  { %p1612_p6 = por %p1611_p5, %p1610_p4 }
   0xf   :  { %p1613_p7 = pnand %p1612_p6, %p1606_p3 }
  0x11   :  { %1616 = shalt.err (!%p1613_p7)  }
  0x12   :  { %s1740_s22 = smov [#allocation4]   ;;  %s23_s24 = sshll.u32 %s3005_s3, 4  ;;  %s24_s24 = int_to_ptr.vmem [resolvable:$true] %s23_s24 }
  0x13   :  { %18 = dma.vmem_to_smem %s16_s17, 16, %s1740_s22, [#allocation2] }
  0x14   :  { %s1617_s1 = scalar_lea.vmem %s20_s20, 64  ;;  %p1622_p9 = scmp.lt.s32.totalorder %s20_s20, %s20_s20 }
  0x15   :  { %p1618_p8 = scmp.ne.s32.totalorder %s20_s20, %s1617_s1  ;;  %p1623_p10 = scmp.lt.s32.totalorder %s1617_s1, %s1617_s1 }
  0x17   :  { %p1624_p11 = por %p1623_p10, %p1622_p9 }
  0x19   :  { %p1625_p12 = pnand %p1624_p11, %p1618_p8 }
  0x1b   :  { %1628 = shalt.err (!%p1625_p12)  }
  0x1c   :  { %s1741_s2 = smov [#allocation5]   ;;  %s1629_s25 = scalar_lea.vmem %s24_s24, 16 }
  0x1d   :  { %22 = dma.vmem_to_smem %s20_s20, 64, %s1741_s2, [#allocation2] }
  0x1e   :  { %p1630_p13 = scmp.ne.s32.totalorder %s24_s24, %s1629_s25  ;;  %p1634_p0 = scmp.lt.s32.totalorder %s24_s24, %s24_s24 }
  0x1f   :  { %p1635_p1 = scmp.lt.s32.totalorder %s1629_s25, %s1629_s25 }
  0x21   :  { %p1636_p2 = por %p1635_p1, %p1634_p0 }
  0x23   :  { %p1637_p3 = pnand %p1636_p2, %p1630_p13 }
  0x25   :  { %1640 = shalt.err (!%p1637_p3)  }
  0x26   :  { %s1742_s26 = smov [#allocation6]   ;;  %s27_s28 = sshll.u32 %s3006_s4, 4  ;;  %s28_s28 = int_to_ptr.vmem [resolvable:$true] %s27_s28 }
  0x27   :  { %26 = dma.vmem_to_smem %s24_s24, 16, %s1742_s26, [#allocation2] }
  0x28   :  { %s31_s9 = sshll.u32 %s3007_s5, 4  ;;  %s1641_s10 = scalar_lea.vmem %s28_s28, 128  ;;  %s32_s9 = int_to_ptr.vmem [resolvable:$true] %s31_s9 }
  0x29   :  { %p1642_p4 = scmp.ne.s32.totalorder %s28_s28, %s1641_s10  ;;  %p1646_p5 = scmp.lt.s32.totalorder %s28_s28, %s28_s28 }
  0x2a   :  { %p1647_p6 = scmp.lt.s32.totalorder %s1641_s10, %s1641_s10 }
  0x2c   :  { %p1648_p7 = por %p1647_p6, %p1646_p5 }
  0x2e   :  { %p1649_p8 = pnand %p1648_p7, %p1642_p4 }
  0x30   :  { %1652 = shalt.err (!%p1649_p8)  }
  0x31   :  { %s1743_s11 = smov [#allocation7]   ;;  %s1653_s12 = scalar_lea.vmem %s32_s9, 16 }
  0x32   :  { %30 = dma.vmem_to_smem %s28_s28, 128, %s1743_s11, [#allocation2] }
  0x33   :  { %p1654_p9 = scmp.ne.s32.totalorder %s32_s9, %s1653_s12  ;;  %p1658_p10 = scmp.lt.s32.totalorder %s32_s9, %s32_s9 }
  0x34   :  { %p1659_p11 = scmp.lt.s32.totalorder %s1653_s12, %s1653_s12 }
  0x36   :  { %p1660_p12 = por %p1659_p11, %p1658_p10 }
  0x38   :  { %p1661_p13 = pnand %p1660_p12, %p1654_p9 }
  0x3a   :  { %1664 = shalt.err (!%p1661_p13)  }
  0x3b   :  { %s1744_s4 = smov [#allocation8]  }
  0x3c   :  { %34 = dma.vmem_to_smem %s32_s9, 16, %s1744_s4, [#allocation2] }
  0x3d   :  { %1731 = dma.done.wait [#allocation2], 304 }
  0x3e   :  { %1732 = vsyncadd [#allocation2], 4294966992 }
  0x3f   :  { %36 = sfence }
  0x40   :  { %37 = vsyncpa [#allocation10], 0 }
  0x41   :  { %38 = vsyncpa [#allocation13], 0 }
  0x42   :  { %39 = vsyncpa [#allocation11], 0  ;;  %s1745_s5 = smov [#allocation9]   ;;  %s1665_s16 = scalar_lea.hbm %s3000_s6, 1024 }
  0x43   :  { %s45_s13 = sshll.u32 %s1745_s5, 4  ;;  %p1666_p0 = scmp.ne.s32.totalorder %s3000_s6, %s1665_s16  ;;  %s46_s13 = int_to_ptr.vmem [resolvable:$true] %s45_s13 }
  0x44   :  { %p1669_p1 = scmp.lt.u32.totalorder %s1665_s16, %s3000_s6 }
  0x46   :  { %p1671_p2 = pnand %p1669_p1, %p1666_p0 }
  0x48   :  { %1674 = shalt.err (!%p1671_p2)
}
  0x49   :  { %s1675_s21 = scalar_lea.vmem %s46_s13, 1024  ;;  %p1680_p4 = scmp.lt.s32.totalorder %s46_s13, %s46_s13 }
  0x4a   :  { %p1676_p3 = scmp.ne.s32.totalorder %s46_s13, %s1675_s21  ;;  %p1681_p5 = scmp.lt.s32.totalorder %s1675_s21, %s1675_s21 }
  0x4c   :  { %p1682_p6 = por %p1681_p5, %p1680_p4 }
  0x4e   :  { %p1683_p7 = pnand %p1682_p6, %p1676_p3 }
  0x50   :  { %1686 = shalt.err (!%p1683_p7)
}
  0x51   :  { %s1746_s22 = smov 128   ;;  %s1747_s0 = smov 8  }
  0x52   :  { %51 = dma.hbm_to_vmem [thread:$0]  %s3000_s6, 1024, %s46_s13, [#allocation10], %s1746_s22, %s1746_s22, %s1747_s0  }
  0x53   :  { %s1748_s1 = smov [#allocation12]   ;;  %s1687_s3 = scalar_lea.hbm %s3001_s7, 1024 }
  0x54   :  { %s57_s2 = sshll.u32 %s1748_s1, 4  ;;  %p1688_p8 = scmp.ne.s32.totalorder %s3001_s7, %s1687_s3  ;;  %s58_s2 = int_to_ptr.vmem [resolvable:$true] %s57_s2 }
  0x55   :  { %p1691_p9 = scmp.lt.u32.totalorder %s1687_s3, %s3001_s7 }
  0x57   :  { %p1693_p10 = pnand %p1691_p9, %p1688_p8 }
  0x59   :  { %1696 = shalt.err (!%p1693_p10)
}
  0x5a   :  { %s1697_s9 = scalar_lea.vmem %s58_s2, 1024  ;;  %p1702_p12 = scmp.lt.s32.totalorder %s58_s2, %s58_s2 }
  0x5b   :  { %p1698_p11 = scmp.ne.s32.totalorder %s58_s2, %s1697_s9  ;;  %p1703_p13 = scmp.lt.s32.totalorder %s1697_s9, %s1697_s9 }
  0x5d   :  { %p1704_p0 = por %p1703_p13, %p1702_p12 }
  0x5f   :  { %p1705_p1 = pnand %p1704_p0, %p1698_p11 }
  0x61   :  { %1708 = shalt.err (!%p1705_p1)
}
  0x62   :  { %63 = dma.hbm_to_vmem [thread:$0]  %s3001_s7, 1024, %s58_s2, [#allocation13], %s1746_s22, %s1746_s22, %s1747_s0  }
  0x63   :  { %1733 = dma.done.wait [#allocation10], 1024  }
  0x64   :  { %1734 = vsyncadd [#allocation10], 4294966272 }
  0x65   :  { %1735 = dma.done.wait [#allocation13], 1024  }
  0x66   :  { %1736 = vsyncadd [#allocation13], 4294966272  ;;  %s1846_s11 = sld [smem:[#allocation4]]  ;;  %s1850_s4 = sld [smem:[#allocation3 + $0x1]]  ;;  %vm431_vm0 = vcmask 1040384   ;;  %vm433_vm1 = vcmask 1041408  }
  0x67   :  { %s1848_s12 = sld [smem:[#allocation3]]  ;;  %s1852_s5 = sld [smem:[#allocation3 + $0x2]]  ;;  %vm435_vm2 = vcmask 1042432   ;;  %vm694_vm3 = vcmask 1043456  }
  0x68   :  { %s1854_s13 = sld [smem:[#allocation3 + $0x3]]  ;;  %s1856_s7 = sld [smem:[#allocation3 + $0x4]] }
  0x69   :  { %s1858_s14 = sld [smem:[#allocation3 + $0x5]]  ;;  %s1860_s15 = sld [smem:[#allocation3 + $0x6]] }
  0x6a   :  { %s1862_s16 = sld [smem:[#allocation3 + $0x7]]  ;;  %s1864_s17 = sld [smem:[#allocation4 + $0x1]] }
  0x6b   :  { %s1866_s18 = sld [smem:[#allocation3 + $0x80]]  ;;  %s1868_s19 = sld [smem:[#allocation3 + $0x81]] }
  0x6c   :  { %p76_p2 = scmp.gt.s32.totalorder %s1846_s11, 0  ;;  %p86_p3 = scmp.gt.s32.totalorder %s1846_s11, 1 }
  0x6d   :  { %p96_p4 = scmp.gt.s32.totalorder %s1846_s11, 2  ;;  %p106_p5 = scmp.gt.s32.totalorder %s1846_s11, 3 }
  0x6e   :  { %3065 = sst [smem:[#allocation19_spill]] %s1856_s7  ;;  %p116_p6 = scmp.gt.s32.totalorder %s1846_s11, 4 }
  0x6f   :  { %3066 = sst [smem:[#allocation20_spill]] %s1858_s14  ;;  %p126_p7 = scmp.gt.s32.totalorder %s1846_s11, 5 }
  0x70   :  { %3067 = sst [smem:[#allocation21_spill]] %s1860_s15  ;;  %p136_p8 = scmp.gt.s32.totalorder %s1846_s11, 6 }
  0x71   :  { %3068 = sst [smem:[#allocation22_spill]] %s1862_s16  ;;  %p146_p9 = scmp.gt.s32.totalorder %s1846_s11, 7 }
  0x72   :  { %s1872_s20 = scalar_select %p76_p2, 1, 0 }
  0x73   :  { %s1876_s21 = scalar_select %p86_p3, 1, 0 }
  0x74   :  { %s1882_s23 = scalar_select %p96_p4, 1, 0 }
  0x75   :  { %s1884_s24 = scalar_select %p106_p5, 1, 0 }
  0x76   :  { %s1890_s25 = scalar_select %p116_p6, 1, 0 }
  0x77   :  { %s1892_s26 = scalar_select %p126_p7, 1, 0 }
  0x78   :  { %3069 = sst [smem:[#allocation23_spill]] %s1890_s25  ;;  %p164_p10 = scmp.gt.s32.totalorder %s1864_s17, 0 }
  0x79   :  { %3070 = sst [smem:[#allocation24_spill]] %s1892_s26  ;;  %s3373_s11 = smov (!%p86_p3, %s1846_s11), 1 }
  0x7a   :  { %s1898_s28 = scalar_select %p136_p8, 1, 0 }
  0x7b   :  { %s1900_s29 = scalar_select %p146_p9, 1, 0 }
  0x7c   :  { %3071 = sst [smem:[#allocation25_spill]] %s1898_s28  ;;  %p174_p11 = scmp.gt.s32.totalorder %s1864_s17, 1 }
  0x7d   :  { %3072 = sst [smem:[#allocation26_spill]] %s1900_s29  ;;  %s1915_s3 = sld [smem:[#allocation3 + $0x82]] }
  0x7e   :  { %3073 = sst [smem:[#allocation27_spill]] %s3373_s11  ;;  %p184_p12 = scmp.gt.s32.totalorder %s1864_s17, 2 }
  0x7f   :  { %s1910_s6 = scalar_select %p164_p10, 1, 0 }
  0x80   :  { %s1920_s30 = scalar_select %p174_p11, 1, 0 }
  0x81   :  { %s1922_s9 = scalar_select %p184_p12, 1, 0 }
  0x82   :  { %s1925_s1 = sld [smem:[#allocation3 + $0x83]]  ;;  %p194_p13 = scmp.gt.s32.totalorder %s1864_s17, 3 }
  0x83   :  { %s1929_s10 = sld [smem:[#allocation3 + $0x84]]  ;;  %p204_p0 = scmp.gt.s32.totalorder %s1864_s17, 4 }
  0x84   :  { %s1932_s27 = sld [smem:[#allocation3 + $0x85]]  ;;  %p214_p1 = scmp.gt.s32.totalorder %s1864_s17, 5 }
  0x85   :  { %s1934_s22 = scalar_select %p194_p13, 1, 0 }
  0x86   :  { %s1936_s8 = scalar_select %p204_p0, 1, 0 }
  0x87   :  { %s1941_s29 = sld [smem:[#allocation3 + $0x86]]  ;;  %p224_p2 = scmp.gt.s32.totalorder %s1864_s17, 6 }
  0x88   :  { %3076 = sst [smem:[#allocation30_spill]] %s1936_s8  ;;  %s1949_s15 = sld [smem:[#allocation3 + $0x87]] }
  0x89   :  { %3074 = sst [smem:[#allocation28_spill]] %s1929_s10  ;;  %p234_p3 = scmp.gt.s32.totalorder %s1864_s17, 7 }
  0x8a   :  { %3075 = sst [smem:[#allocation29_spill]] %s1932_s27  ;;  %s1953_s26 = sld [smem:[#allocation4 + $0x2]] }
  0x8b   :  { %s1944_s0 = scalar_select %p214_p1, 1, 0 }
  0x8c   :  { %s1946_s16 = scalar_select %p224_p2, 1, 0 }
  0x8d   :  { %3077 = sst [smem:[#allocation31_spill]] %s1941_s29  ;;  %s3375_s17 = smov (!%p174_p11, %s1864_s17), 1 }
  0x8e   :  { %3078 = sst [smem:[#allocation32_spill]] %s1944_s0  ;;  %s1963_s28 = sld [smem:[#allocation3 + $0x100]] }
  0x8f   :  { %3079 = sst [smem:[#allocation33_spill]] %s1946_s16  ;;  %s1968_s16 = sld [smem:[#allocation3 + $0x102]] }
  0x90   :  { %3080 = sst [smem:[#allocation34_spill]] %s1949_s15  ;;  %s1966_s15 = sld [smem:[#allocation3 + $0x101]] }
  0x91   :  { %s1955_s2 = scalar_select %p234_p3, 1, 0 }
  0x92   :  { %3082 = sst [smem:[#allocation36_spill]] %s3375_s17  ;;  %p252_p4 = scmp.gt.s32.totalorder %s1953_s26, 0 }
  0x93   :  { %3081 = sst [smem:[#allocation35_spill]] %s1955_s2  ;;  %p262_p5 = scmp.gt.s32.totalorder %s1953_s26, 1 }
  0x94   :  { %p272_p6 = scmp.gt.s32.totalorder %s1953_s26, 2  ;;  %s1973_s29 = sld [smem:[#allocation3 + $0x103]] }
  0x95   :  { %3084 = sst [smem:[#allocation38_spill]] %s1968_s16  ;;  %p282_p7 = scmp.gt.s32.totalorder %s1953_s26, 3 }
  0x96   :  { %3083 = sst [smem:[#allocation37_spill]] %s1966_s15  ;;  %s1979_s11 = sld [smem:[#allocation3 + $0x104]] }
  0x97   :  { %s1975_s0 = scalar_select %p252_p4, 1, 0 }
  0x98   :  { %s1983_s27 = scalar_select %p262_p5, 1, 0 }
  0x99   :  { %s1985_s17 = scalar_select %p272_p6, 1, 0 }
  0x9a   :  { %3085 = sst [smem:[#allocation39_spill]] %s1973_s29  ;;  %p292_p8 = scmp.gt.s32.totalorder %s1953_s26, 4 }
  0x9b   :  { %3087 = sst [smem:[#allocation41_spill]] %s1983_s27  ;;  %s1992_s8 = sld [smem:[#allocation3 + $0x105]] }
  0x9c   :  { %3086 = sst [smem:[#allocation40_spill]] %s1979_s11  ;;  %p302_p9 = scmp.gt.s32.totalorder %s1953_s26, 5 }
  0x9d   :  { %3088 = sst [smem:[#allocation42_spill]] %s1985_s17  ;;  %s2001_s7 = sld [smem:[#allocation3 + $0x106]] }
  0x9e   :  { %s1990_s29 = scalar_select %p282_p7, 1, 0 }
  0x9f   :  { %s1996_s10 = scalar_select %p292_p8, 1, 0 }
  0xa0   :  { %3089 = sst [smem:[#allocation43_spill]] %s1990_s29  ;;  %p312_p10 = scmp.gt.s32.totalorder %s1953_s26, 6 }
  0xa1   :  { %3090 = sst [smem:[#allocation44_spill]] %s1992_s8  ;;  %s2005_s2 = sld [smem:[#allocation3 + $0x107]] }
  0xa2   :  { %3091 = sst [smem:[#allocation45_spill]] %s1996_s10  ;;  %p322_p11 = scmp.gt.s32.totalorder %s1953_s26, 7 }
  0xa3   :  { %s1998_s11 = scalar_select %p302_p9, 1, 0 }
  0xa4   :  { %3093 = sst [smem:[#allocation47_spill]] %s2001_s7  ;;  %s2010_s14 = sld [smem:[#allocation4 + $0x3]] }
  0xa5   :  { %3092 = sst [smem:[#allocation46_spill]] %s1998_s11  ;;  %s2013_s29 = sld [smem:[#allocation3 + $0x180]] }
  0xa6   :  { %s2007_s17 = scalar_select %p312_p10, 1, 0 }
  0xa7   :  { %3094 = sst [smem:[#allocation48_spill]] %s2005_s2  ;;  %s2015_s25 = sld [smem:[#allocation3 + $0x181]] }
  0xa8   :  { %3095 = sst [smem:[#allocation49_spill]] %s2007_s17  ;;  %s2019_s2 = sld [smem:[#allocation3 + $0x182]] }
  0xa9   :  { %s2017_s16 = scalar_select %p322_p11, 1, 0 }
  0xaa   :  { %s2022_s11 = sld [smem:[#allocation3 + $0x183]]  ;;  %s3377_s26 = smov (!%p262_p5, %s1953_s26), 1 }
  0xab   :  { %3096 = sst [smem:[#allocation50_spill]] %s2013_s29  ;;  %p340_p12 = scmp.gt.s32.totalorder %s2010_s14, 0 }
  0xac   :  { %3098 = sst [smem:[#allocation52_spill]] %s2017_s16  ;;  %p350_p13 = scmp.gt.s32.totalorder %s2010_s14, 1 }
  0xad   :  { %3097 = sst [smem:[#allocation51_spill]] %s2015_s25  ;;  %p360_p0 = scmp.gt.s32.totalorder %s2010_s14, 2 }
  0xae   :  { %3099 = sst [smem:[#allocation53_spill]] %s2019_s2  ;;  %p370_p1 = scmp.gt.s32.totalorder %s2010_s14, 3 }
  0xaf   :  { %3101 = sst [smem:[#allocation55_spill]] %s3377_s26  ;;  %s2045_s8 = sld [smem:[#allocation3 + $0x184]] }
  0xb0   :  { %3100 = sst [smem:[#allocation54_spill]] %s2022_s11  ;;  %p380_p2 = scmp.gt.s32.totalorder %s2010_s14, 4 }
  0xb1   :  { %s2031_s17 = scalar_select %p340_p12, 1, 0 }
  0xb2   :  { %s2038_s2 = scalar_select %p350_p13, 1, 0 }
  0xb3   :  { %3102 = sst [smem:[#allocation56_spill]] %s2031_s17  ;;  %s2053_s17 = sld [smem:[#allocation3 + $0x185]] }
  0xb4   :  { %3103 = sst [smem:[#allocation57_spill]] %s2038_s2  ;;  %p390_p3 = scmp.gt.s32.totalorder %s2010_s14, 5 }
  0xb5   :  { %s2040_s7 = scalar_select %p360_p0, 1, 0 }
  0xb6   :  { %3105 = sst [smem:[#allocation59_spill]] %s2045_s8  ;;  %s2057_s16 = sld [smem:[#allocation3 + $0x186]] }
  0xb7   :  { %3104 = sst [smem:[#allocation58_spill]] %s2040_s7  ;;  %p400_p4 = scmp.gt.s32.totalorder %s2010_s14, 6 }
  0xb8   :  { %s2048_s26 = scalar_select %p370_p1, 1, 0 }
  0xb9   :  { %s2050_s10 = scalar_select %p380_p2, 1, 0 }
  0xba   :  { %3106 = sst [smem:[#allocation60_spill]] %s2048_s26  ;;  %s2060_s11 = sld [smem:[#allocation3 + $0x187]] }
  0xbb   :  { %3107 = sst [smem:[#allocation61_spill]] %s2050_s10  ;;  %p410_p5 = scmp.gt.s32.totalorder %s2010_s14, 7 }
  0xbc   :  { %3108 = sst [smem:[#allocation62_spill]] %s2053_s17  ;;  %s2069_s15 = sld [smem:[#allocation8 + $0x1]] }
  0xbd   :  { %3109 = sst [smem:[#allocation63_spill]] %s2057_s16  ;;  %s2071_s29 = sld [smem:[#allocation7 + $0x80]] }
  0xbe   :  { %s2062_s8 = scalar_select %p390_p3, 1, 0 }
  0xbf   :  { %s2064_s7 = scalar_select %p400_p4, 1, 0 }
  0xc0   :  { %3110 = sst [smem:[#allocation64_spill]] %s2060_s11  ;;  %s3379_s14 = smov (!%p350_p13, %s2010_s14), 1 }
  0xc1   :  { %3111 = sst [smem:[#allocation65_spill]] %s2062_s8  ;;  %s2081_s2 = sld [smem:[#allocation7 + $0x81]] }
  0xc2   :  { %3112 = sst [smem:[#allocation66_spill]] %s2064_s7  ;;  %s2084_s7 = sld [smem:[#allocation7 + $0x82]] }
  0xc3   :  { %3113 = sst [smem:[#allocation67_spill]] %s2071_s29  ;;  %p1012_p6 = scmp.gt.s32.totalorder %s2069_s15, 0 }
  0xc4   :  { %s2073_s25 = scalar_select %p410_p5, 1, 0 }
  0xc5   :  { %3115 = sst [smem:[#allocation69_spill]] %s3379_s14  ;;  %p1022_p7 = scmp.gt.s32.totalorder %s2069_s15, 1 }
  0xc6   :  { %3114 = sst [smem:[#allocation68_spill]] %s2073_s25  ;;  %p1032_p8 = scmp.gt.s32.totalorder %s2069_s15, 2 }
  0xc7   :  { %3116 = sst [smem:[#allocation70_spill]] %s2081_s2  ;;  %s2099_s25 = sld [smem:[#allocation7 + $0x83]] }
  0xc8   :  { %3117 = sst [smem:[#allocation71_spill]] %s2084_s7  ;;  %p1042_p9 = scmp.gt.s32.totalorder %s2069_s15, 3 }
  0xc9   :  { %s2089_s16 = scalar_select %p1012_p6, 1, 0 }
  0xca   :  { %s2093_s8 = scalar_select %p1022_p7, 1, 0 }
  0xcb   :  { %3118 = sst [smem:[#allocation72_spill]] %s2089_s16  ;;  %s2103_s14 = sld [smem:[#allocation7 + $0x84]] }
  0xcc   :  { %3119 = sst [smem:[#allocation73_spill]] %s2093_s8  ;;  %p1052_p10 = scmp.gt.s32.totalorder %s2069_s15, 4 }
  0xcd   :  { %s2097_s11 = scalar_select %p1032_p8, 1, 0 }
  0xce   :  { %3121 = sst [smem:[#allocation75_spill]] %s2099_s25  ;;  %s2108_s2 = sld [smem:[#allocation7 + $0x85]] }
  0xcf   :  { %3120 = sst [smem:[#allocation74_spill]] %s2097_s11  ;;  %p1062_p11 = scmp.gt.s32.totalorder %s2069_s15, 5 }
  0xd0   :  { %s2105_s7 = scalar_select %p1042_p9, 1, 0 }
  0xd1   :  { %3122 = sst [smem:[#allocation76_spill]] %s2103_s14  ;;  %s2114_s17 = sld [smem:[#allocation8 + $0x3]] }
  0xd2   :  { %3123 = sst [smem:[#allocation77_spill]] %s2105_s7  ;;  %s2119_s25 = sld [smem:[#allocation7 + $0x180]] }
  0xd3   :  { %s2112_s10 = scalar_select %p1052_p10, 1, 0 }
  0xd4   :  { %3124 = sst [smem:[#allocation78_spill]] %s2108_s2  ;;  %s2122_s29 = sld [smem:[#allocation7 + $0x181]] }
  0xd5   :  { %3125 = sst [smem:[#allocation79_spill]] %s2112_s10  ;;  %s3381_s15 = smov (!%p1022_p7, %s2069_s15), 1 }
  0xd6   :  { %s2117_s14 = scalar_select %p1062_p11, 1, 0 }
  0xd7   :  { %3129 = sst [smem:[#allocation83_spill]] %s3381_s15  ;;  %p1080_p12 = scmp.gt.s32.totalorder %s2114_s17, 0 }
  0xd8   :  { %3126 = sst [smem:[#allocation80_spill]] %s2117_s14  ;;  %p1090_p13 = scmp.gt.s32.totalorder %s2114_s17, 1 }
  0xd9   :  { %3127 = sst [smem:[#allocation81_spill]] %s2119_s25  ;;  %s2132_s27 = sld [smem:[#allocation7 + $0x182]] }
  0xda   :  { %3128 = sst [smem:[#allocation82_spill]] %s2122_s29  ;;  %p1100_p0 = scmp.gt.s32.totalorder %s2114_s17, 2 }
  0xdb   :  { %s2134_s10 = scalar_select %p1080_p12, 1, 0 }
  0xdc   :  { %s2140_s14 = scalar_select %p1090_p13, 1, 0 }
  0xdd   :  { %3131 = sst [smem:[#allocation85_spill]] %s2134_s10  ;;  %s74_s8 = scalar_lea.vmem [#allocation9], %s1848_s12 }
  0xde   :  { %s2142_s11 = scalar_select %p1100_p0, 1, 0  ;;  %v75_v0 = vld [vmem:[%s74_s8] sm:$0x1] }
  0xdf   :  { %3130 = sst [smem:[#allocation84_spill]] %s2132_s27  ;;  %s3132_s15 = scvt.s32.f32 %s1872_s20 }
  0xe0   :  { %s84_s27 = scalar_lea.vmem [#allocation9], %s1850_s4  ;;  %s3133_s16 = scvt.s32.f32 %s1876_s21 }
  0xe1   :  { %v79_v1 = vstv %s3132_s15  ;;  %v85_v2 = vld [vmem:[%s84_s27] sm:$0x1]  ;;  %s162_s2 = scalar_lea.vmem [#allocation9], %s1866_s18  ;;  %s2153_s10 = sld [smem:[#allocation7 + $0x183]] }
  0xe2   :  { %v89_v3 = vstv %s3133_s16  ;;  %v163_v4 = vld [vmem:[%s162_s2] sm:$0x1]  ;;  %s3134_s25 = scvt.s32.f32 %s1910_s6  ;;  %s172_s26 = scalar_lea.vmem [#allocation9], %s1868_s19  ;;  %v80_v8 = vmul.f32 %v79_v1, %v75_v0 }
  0xe3   :  { %v173_v6 = vld [vmem:[%s172_s26] sm:$0x1]  ;;  %s3135_s8 = scvt.s32.f32 %s1920_s30  ;;  %p1110_p1 = scmp.gt.s32.totalorder %s2114_s17, 3  ;;  %v90_v9 = vmul.f32 %v89_v3, %v85_v2 }
  0xe4   :  { %v167_v5 = vstv %s3134_s25  ;;  %s2161_s12 = sld [smem:[#allocation7 + $0x184]]  ;;  %p1120_p2 = scmp.gt.s32.totalorder %s2114_s17, 4 }
  0xe5   :  { %v177_v7 = vstv %s3135_s8  ;;  %s2164_s4 = sld [smem:[#allocation7 + $0x185]]  ;;  %s94_s16 = scalar_lea.vmem [#allocation9], %s1852_s5  ;;  %v168_v12 = vmul.f32 %v167_v5, %v163_v4  ;;  %v91_v16 = vadd.f32 %v90_v9, %v80_v8 }
  0xe6   :  { %s2166_s15 = scalar_select %p1110_p1, 1, 0  ;;  %v95_v10 = vld [vmem:[%s94_s16] sm:$0x1]  ;;  %v178_v13 = vmul.f32 %v177_v7, %v173_v6 }
  0xe7   :  { %s3138_s18 = scvt.s32.f32 %s1882_s23  ;;  %s182_s20 = scalar_lea.vmem [#allocation9], %s1915_s3 }
  0xe8   :  { %s2171_s19 = scalar_select %p1120_p2, 1, 0  ;;  %v183_v14 = vld [vmem:[%s182_s20] sm:$0x1]  ;;  %v179_v20 = vadd.f32 %v178_v13, %v168_v12 }
  0xe9   :  { %v99_v11 = vstv %s3138_s18  ;;  %s3140_s21 = scvt.s32.f32 %s1922_s9  ;;  %p1130_p3 = scmp.gt.s32.totalorder %s2114_s17, 5 }
  0xea   :  { %3136 = sst [smem:[#allocation86_spill]] %s2161_s12  ;;  %s3141_s23 = sld [smem:[#allocation37_spill]]  ;;  %v100_v17 = vmul.f32 %v99_v11, %v95_v10 }
  0xeb   :  { %3137 = sst [smem:[#allocation87_spill]] %s2164_s4  ;;  %v187_v15 = vstv %s3140_s21  ;;  %s3142_s26 = sld [smem:[#allocation41_spill]] }
  0xec   :  { %3139 = sst [smem:[#allocation88_spill]] %s2171_s19  ;;  %s2179_s25 = sld [smem:[#allocation8 + $0x5]]  ;;  %v188_v21 = vmul.f32 %v187_v15, %v183_v14  ;;  %v101_v28 = vadd.f32 %v100_v17, %v91_v16 }
  0xed   :  { %s104_s27 = scalar_lea.vmem [#allocation9], %s1854_s13  ;;  %s3143_s3 = scvt.s32.f32 %s1884_s24 }
  0xee   :  { %v105_v18 = vld [vmem:[%s104_s27] sm:$0x1]  ;;  %s2184_s30 = sld [smem:[#allocation7 + $0x280]]  ;;  %s3144_s9 = sld [smem:[#allocation19_spill]]  ;;  %v189_v32 = vadd.f32 %v188_v21, %v179_v20 }
  0xef   :  { %v109_v19 = vstv %s3143_s3  ;;  %s192_s6 = scalar_lea.vmem [#allocation9], %s1925_s1  ;;  %s3145_s8 = scvt.s32.f32 %s1934_s22 }
  0xf0   :  { %v193_v22 = vld [vmem:[%s192_s6] sm:$0x1]  ;;  %s3146_s16 = sld [smem:[#allocation23_spill]]  ;;  %s250_s13 = scalar_lea.vmem [#allocation9], %s1963_s28  ;;  %v110_v29 = vmul.f32 %v109_v19, %v105_v18 }
  0xf1   :  { %v197_v23 = vstv %s3145_s8  ;;  %s2191_s18 = scalar_select %p1130_p3, 1, 0  ;;  %v251_v24 = vld [vmem:[%s250_s13] sm:$0x1] }
  0xf2   :  { %s3148_s20 = scvt.s32.f32 %s1975_s0  ;;  %s3149_s24 = sld [smem:[#allocation28_spill]]  ;;  %v198_v33 = vmul.f32 %v197_v23, %v193_v22  ;;  %v111_v40 = vadd.f32 %v110_v29, %v101_v28 }
  0xf3   :  { %3147 = sst [smem:[#allocation37_spill]] %s2191_s18  ;;  %s260_s21 = scalar_lea.vmem [#allocation9], %s3141_s23 }
  0xf4   :  { %v255_v25 = vstv %s3148_s20  ;;  %v261_v26 = vld [vmem:[%s260_s21] sm:$0x1]  ;;  %s3150_s27 = scvt.s32.f32 %s3142_s26  ;;  %s3151_s3 = sld [smem:[#allocation30_spill]]  ;;  %v199_v44 = vadd.f32 %v198_v33, %v189_v32 }
  0xf5   :  { %s3383_s17 = smov (!%p1090_p13, %s2114_s17), 1  ;;  %s3153_s1 = sld [smem:[#allocation38_spill]]  ;;  %v256_v36 = vmul.f32 %v255_v25, %v251_v24 }
  0xf6   :  { %v265_v27 = vstv %s3150_s27  ;;  %3152 = sst [smem:[#allocation41_spill]] %s3383_s17  ;;  %s2205_s28 = sld [smem:[#allocation7 + $0x281]] }
  0xf7   :  { %s114_s0 = scalar_lea.vmem [#allocation9], %s3144_s9  ;;  %s3154_s6 = sld [smem:[#allocation42_spill]]  ;;  %v266_v37 = vmul.f32 %v265_v27, %v261_v26 }
  0xf8   :  { %v115_v30 = vld [vmem:[%s114_s0] sm:$0x1]  ;;  %s3155_s23 = scvt.s32.f32 %s3146_s16  ;;  %s3156_s8 = sld [smem:[#allocation20_spill]] }
  0xf9   :  { %s2211_s13 = sld [smem:[#allocation7 + $0x282]]  ;;  %s202_s20 = scalar_lea.vmem [#allocation9], %s3149_s24  ;;  %v267_v48 = vadd.f32 %v266_v37, %v256_v36 }
  0xfa   :  { %v119_v31 = vstv %s3155_s23  ;;  %s3157_s21 = sld [smem:[#allocation24_spill]]  ;;  %v203_v34 = vld [vmem:[%s202_s20] sm:$0x1]  ;;  %s3158_s27 = scvt.s32.f32 %s3151_s3 }
  0xfb   :  { %s3159_s9 = sld [smem:[#allocation29_spill]]  ;;  %p1148_p4 = scmp.gt.s32.totalorder %s2179_s25, 0  ;;  %v120_v41 = vmul.f32 %v119_v31, %v115_v30 }
  0xfc   :  { %v207_v35 = vstv %s3158_s27  ;;  %p1158_p5 = scmp.gt.s32.totalorder %s2179_s25, 1  ;;  %s3160_s16 = sld [smem:[#allocation32_spill]] }
  0xfd   :  { %s270_s0 = scalar_lea.vmem [#allocation9], %s3153_s1  ;;  %s3161_s23 = scvt.s32.f32 %s3154_s6  ;;  %v208_v45 = vmul.f32 %v207_v35, %v203_v34  ;;  %v121_v52 = vadd.f32 %v120_v41, %v111_v40 }
  0xfe   :  { %v271_v38 = vld [vmem:[%s270_s0] sm:$0x1]  ;;  %p1168_p6 = scmp.gt.s32.totalorder %s2179_s25, 2  ;;  %s3162_s22 = sld [smem:[#allocation39_spill]] }
  0xff   :  { %v275_v39 = vstv %s3161_s23  ;;  %s3163_s24 = sld [smem:[#allocation43_spill]]  ;;  %s124_s3 = scalar_lea.vmem [#allocation9], %s3156_s8  ;;  %v209_v60 = vadd.f32 %v208_v45, %v199_v44 }
 0x100   :  { %s2222_s5 = scalar_select %p1148_p4, 1, 0  ;;  %v125_v42 = vld [vmem:[%s124_s3] sm:$0x1]  ;;  %v276_v49 = vmul.f32 %v275_v39, %v271_v38 }
 0x101   :  { %s3164_s20 = scvt.s32.f32 %s3157_s21  ;;  %s3165_s27 = sld [smem:[#allocation50_spill]] }
 0x102   :  { %s3166_s1 = sld [smem:[#allocation56_spill]]  ;;  %s3167_s6 = sld [smem:[#allocation51_spill]]  ;;  %v277_v0 = vadd.f32 %v276_v49, %v267_v48 }
 0x103   :  { %v129_v43 = vstv %s3164_s20  ;;  %s2229_s0 = scalar_select %p1158_p5, 1, 0 }
 0x104   :  { %s212_s23 = scalar_lea.vmem [#allocation9], %s3159_s9  ;;  %s3168_s26 = scvt.s32.f32 %s3160_s16  ;;  %v130_v53 = vmul.f32 %v129_v43, %v125_v42 }
 0x105   :  { %v213_v46 = vld [vmem:[%s212_s23] sm:$0x1]  ;;  %s3169_s2 = sld [smem:[#allocation57_spill]]  ;;  %s3170_s8 = sld [smem:[#allocation21_spill]] }
 0x106   :  { %v217_v47 = vstv %s3168_s26  ;;  %s3171_s3 = sld [smem:[#allocation25_spill]]  ;;  %s280_s20 = scalar_lea.vmem [#allocation9], %s3162_s22  ;;  %v131_v6 = vadd.f32 %v130_v53, %v121_v52 }
 0x107   :  { %v281_v50 = vld [vmem:[%s280_s20] sm:$0x1]  ;;  %s3172_s29 = scvt.s32.f32 %s3163_s24  ;;  %s3173_s18 = sld [smem:[#allocation31_spill]]  ;;  %v218_v61 = vmul.f32 %v217_v47, %v213_v46 }
 0x108   :  { %s338_s9 = scalar_lea.vmem [#allocation9], %s3165_s27  ;;  %s3174_s23 = sld [smem:[#allocation33_spill]] }
 0x109   :  { %v285_v51 = vstv %s3172_s29  ;;  %v339_v54 = vld [vmem:[%s338_s9] sm:$0x1]  ;;  %s3175_s16 = scvt.s32.f32 %s3166_s1  ;;  %s348_s26 = scalar_lea.vmem [#allocation9], %s3167_s6  ;;  %v219_v12 = vadd.f32 %v218_v61, %v209_v60 }
 0x10a   :  { %v349_v56 = vld [vmem:[%s348_s26] sm:$0x1]  ;;  %s3177_s21 = sld [smem:[#allocation40_spill]]  ;;  %s3178_s24 = sld [smem:[#allocation45_spill]]  ;;  %v286_v1 = vmul.f32 %v285_v51, %v281_v50 }
 0x10b   :  { %v343_v55 = vstv %s3175_s16  ;;  %s3176_s4 = scvt.s32.f32 %s3169_s2  ;;  %s134_s29 = scalar_lea.vmem [#allocation9], %s3170_s8 }
 0x10c   :  { %s2247_s22 = scalar_select %p1168_p6, 1, 0  ;;  %v135_v58 = vld [vmem:[%s134_s29] sm:$0x1]  ;;  %v344_v4 = vmul.f32 %v343_v55, %v339_v54  ;;  %v287_v15 = vadd.f32 %v286_v1, %v277_v0 }
 0x10d   :  { %v353_v57 = vstv %s3176_s4  ;;  %s3179_s20 = scvt.s32.f32 %s3171_s3  ;;  %s2252_s27 = sld [smem:[#allocation7 + $0x283]] }
 0x10e   :  { %p1178_p7 = scmp.gt.s32.totalorder %s2179_s25, 3  ;;  %s3181_s1 = sld [smem:[#allocation53_spill]]  ;;  %v354_v5 = vmul.f32 %v353_v57, %v349_v56 }
 0x10f   :  { %v139_v59 = vstv %s3179_s20  ;;  %s222_s6 = scalar_lea.vmem [#allocation9], %s3173_s18  ;;  %s3182_s2 = scvt.s32.f32 %s3174_s23 }
 0x110   :  { %v223_v62 = vld [vmem:[%s222_s6] sm:$0x1]  ;;  %s3183_s4 = sld [smem:[#allocation58_spill]]  ;;  %s3184_s9 = sld [smem:[#allocation22_spill]]  ;;  %v140_v7 = vmul.f32 %v139_v59, %v135_v58  ;;  %v355_v19 = vadd.f32 %v354_v5, %v344_v4 }
 0x111   :  { %v227_v63 = vstv %s3182_s2  ;;  %s2259_s16 = sld [smem:[#allocation7 + $0x284]]  ;;  %s3186_s3 = sld [smem:[#allocation26_spill]] }
 0x112   :  { %s290_s26 = scalar_lea.vmem [#allocation9], %s3177_s21  ;;  %s3187_s29 = scvt.s32.f32 %s3178_s24  ;;  %v228_v13 = vmul.f32 %v227_v63, %v223_v62  ;;  %v2286_v21 = vadd.f32 %v140_v7, %v131_v6 }
 0x113   :  { %3180 = sst [smem:[#allocation19_spill]] %s2252_s27  ;;  %v291_v2 = vld [vmem:[%s290_s26] sm:$0x1]  ;;  %s3190_s6 = sld [smem:[#allocation44_spill]] }
 0x114   :  { %v295_v3 = vstv %s3187_s29  ;;  %s3188_s18 = sld [smem:[#allocation27_spill]]  ;;  %s358_s23 = scalar_lea.vmem [#allocation9], %s3181_s1  ;;  %v2294_v25 = vadd.f32 %v228_v13, %v219_v12 }
 0x115   :  { %s2264_s20 = scalar_select %p1178_p7, 1, 0  ;;  %v359_v8 = vld [vmem:[%s358_s23] sm:$0x1]  ;;  %v296_v16 = vmul.f32 %v295_v3, %v291_v2 }
 0x116   :  { %s3191_s2 = scvt.s32.f32 %s3183_s4  ;;  %s3192_s8 = sld [smem:[#allocation46_spill]] }
 0x117   :  { %3185 = sst [smem:[#allocation23_spill]] %s2259_s16  ;;  %p1188_p8 = scmp.gt.s32.totalorder %s2179_s25, 4  ;;  %v297_v30 = vadd.f32 %v296_v16, %v287_v15 }
 0x118   :  { %3189 = sst [smem:[#allocation28_spill]] %s2264_s20  ;;  %v363_v9 = vstv %s3191_s2  ;;  %s2270_s21 = sld [smem:[#allocation7 + $0x285]] }
 0x119   :  { %s144_s24 = scalar_lea.vmem [#allocation9], %s3184_s9  ;;  %s3194_s26 = scvt.s32.f32 %s3186_s3  ;;  %v364_v20 = vmul.f32 %v363_v9, %v359_v8 }
 0x11a   :  { %v145_v10 = vld [vmem:[%s144_s24] sm:$0x1]  ;;  %s3195_s29 = sld [smem:[#allocation54_spill]]  ;;  %s3196_s16 = sld [smem:[#allocation60_spill]] }
 0x11b   :  { %v149_v11 = vstv %s3194_s26  ;;  %p1198_p9 = scmp.gt.s32.totalorder %s2179_s25, 5  ;;  %s3197_s19 = scvt.s32.f32 %s3188_s18  ;;  %v365_v35 = vadd.f32 %v364_v20, %v355_v19 }
 0x11c   :  { %s3198_s1 = sld [smem:[#allocation34_spill]]  ;;  %s300_s23 = scalar_lea.vmem [#allocation9], %s3190_s6  ;;  %v2288_v22 = vmul.f32 %v149_v11, %v145_v10 }
 0x11d   :  { %v155_v14 = vstv %s3197_s19  ;;  %s2279_s4 = scalar_select %p1188_p8, 1, 0  ;;  %v301_v17 = vld [vmem:[%s300_s23] sm:$0x1] }
 0x11e   :  { %3193 = sst [smem:[#allocation30_spill]] %s2270_s21  ;;  %s3199_s2 = sld [smem:[#allocation35_spill]]  ;;  %1551 = vrcp.f32 %v155_v14 }
 0x11f   :  { %s3200_s9 = scvt.s32.f32 %s3192_s8  ;;  %s3201_s3 = sld [smem:[#allocation36_spill]] }
 0x120   :  { %s3202_s24 = sld [smem:[#allocation81_spill]]  ;;  %s3203_s19 = sld [smem:[#allocation85_spill]] }
 0x121   :  { %v305_v18 = vstv %s3200_s9  ;;  %s2284_s26 = sld [smem:[#allocation8 + $0x7]]  ;;  %s368_s18 = scalar_lea.vmem [#allocation9], %s3195_s29 }
 0x122   :  { %s3204_s7 = sld [smem:[#allocation82_spill]]  ;;  %v369_v23 = vld [vmem:[%s368_s18] sm:$0x1]  ;;  %s3205_s6 = scvt.s32.f32 %s3196_s16  ;;  %v306_v31 = vmul.f32 %v305_v18, %v301_v17 }
 0x123   :  { %s1190_s8 = scvt.s32.f32 %s2279_s4  ;;  %s232_s23 = scalar_lea.vmem [#allocation9], %s3198_s1 }
 0x124   :  { %v373_v24 = vstv %s3205_s6  ;;  %s3206_s9 = sld [smem:[#allocation67_spill]]  ;;  %v233_v26 = vld [vmem:[%s232_s23] sm:$0x1]  ;;  %s3207_s21 = scvt.s32.f32 %s3199_s2  ;;  %v2343_v52 = vadd.f32 %v306_v31, %v297_v30 }
 0x125   :  { %s3208_s12 = scvt.s32.f32 %s3201_s3  ;;  %s3209_s20 = sld [smem:[#allocation72_spill]]  ;;  %v374_v36 = vmul.f32 %v373_v24, %v369_v23 }
 0x126   :  { %v237_v27 = vstv %s3207_s21  ;;  %s3210_s27 = sld [smem:[#allocation70_spill]]  ;;  %s1078_s17 = scalar_lea.vmem [#allocation12], %s3202_s24 }
 0x127   :  { %v243_v28 = vstv %s3208_s12  ;;  %v1079_v29 = vld [vmem:[%s1078_s17] sm:$0x1]  ;;  %s3211_s29 = sld [smem:[#allocation73_spill]]  ;;  %s3212_s18 = scvt.s32.f32 %s3203_s19  ;;  %v2322_v41 = vmul.f32 %v237_v27, %v233_v26  ;;  %v375_v58 = vadd.f32 %v374_v36, %v365_v35 }
 0x128   :  { %s2304_s16 = scalar_select %p1198_p9, 1, 0  ;;  %1553 = vrcp.f32 %v243_v28  ;;  %v2384_v14 = vpop.eup %1551 }
 0x129   :  { %v1083_v32 = vstv %s3212_s18  ;;  %s1088_s1 = scalar_lea.vmem [#allocation12], %s3204_s7  ;;  %s3213_s6 = sld [smem:[#allocation47_spill]] }
 0x12a   :  { %v1089_v33 = vld [vmem:[%s1088_s1] sm:$0x1]  ;;  %s3214_s2 = scvt.s32.f32 %s2140_s14  ;;  %s3215_s21 = sld [smem:[#allocation49_spill]]  ;;  %v1084_v46 = vmul.f32 %v1083_v32, %v1079_v29 }
 0x12b   :  { %s2311_s3 = sld [smem:[#allocation7 + $0x380]]  ;;  %s3216_s12 = sld [smem:[#allocation59_spill]] }
 0x12c   :  { %v1093_v34 = vstv %s3214_s2  ;;  %s3217_s17 = sld [smem:[#allocation61_spill]]  ;;  %s1010_s24 = scalar_lea.vmem [#allocation12], %s3206_s9 }
 0x12d   :  { %v1011_v37 = vld [vmem:[%s1010_s24] sm:$0x1]  ;;  %s3218_s23 = scvt.s32.f32 %s3209_s20  ;;  %s1020_s19 = scalar_lea.vmem [#allocation12], %s3210_s27  ;;  %v1094_v47 = vmul.f32 %v1093_v34, %v1089_v33 }
 0x12e   :  { %v1021_v39 = vld [vmem:[%s1020_s19] sm:$0x1]  ;;  %s3219_s7 = scvt.s32.f32 %s3211_s29  ;;  %s1200_s14 = scvt.s32.f32 %s2304_s16 }
 0x12f   :  { %v1015_v38 = vstv %s3218_s23  ;;  %s2320_s18 = sld [smem:[#allocation7 + $0x381]]  ;;  %s310_s9 = scalar_lea.vmem [#allocation9], %s3213_s6  ;;  %v1095_v4 = vadd.f32 %v1094_v47, %v1084_v46 }
 0x130   :  { %v1025_v40 = vstv %s3219_s7  ;;  %v311_v42 = vld [vmem:[%s310_s9] sm:$0x1]  ;;  %s3220_s20 = scvt.s32.f32 %s3215_s21  ;;  %s3222_s29 = sld [smem:[#allocation84_spill]]  ;;  %v1016_v53 = vmul.f32 %v1015_v38, %v1011_v37 }
 0x131   :  { %s378_s27 = scalar_lea.vmem [#allocation9], %s3216_s12  ;;  %s3385_s25 = smov (!%p1158_p5, %s2179_s25), 1  ;;  %v1026_v54 = vmul.f32 %v1025_v40, %v1021_v39 }
 0x132   :  { %v315_v43 = vstv %s3220_s20  ;;  %v379_v44 = vld [vmem:[%s378_s27] sm:$0x1]  ;;  %s3221_s1 = scvt.s32.f32 %s3217_s17  ;;  %s1146_s2 = scalar_lea.vmem [#allocation12], %s2184_s30  ;;  %v2406_v33 = vpop.eup %1553 }
 0x133   :  { %v1147_v48 = vld [vmem:[%s1146_s2] sm:$0x1]  ;;  %s3223_s24 = scvt.s32.f32 %s2222_s5  ;;  %s1156_s6 = scalar_lea.vmem [#allocation12], %s2205_s28  ;;  %v2351_v57 = vmul.f32 %v315_v43, %v311_v42  ;;  %v1027_v10 = vadd.f32 %v1026_v54, %v1016_v53  ;;  %v1191_v53 = vstv %s1190_s8 }
 0x134   :  { %v383_v45 = vstv %s3221_s1  ;;  %s3224_s23 = sld [smem:[#allocation71_spill]]  ;;  %v1157_v50 = vld [vmem:[%s1156_s6] sm:$0x1]  ;;  %s3225_s21 = scvt.s32.f32 %s2229_s0 }
 0x135   :  { %v1151_v49 = vstv %s3223_s24  ;;  %s3226_s12 = sld [smem:[#allocation74_spill]]  ;;  %p1216_p10 = scmp.gt.s32.totalorder %s2284_s26, 0  ;;  %v384_v59 = vmul.f32 %v383_v45, %v379_v44 }
 0x136   :  { %v1161_v51 = vstv %s3225_s21  ;;  %p1226_p11 = scmp.gt.s32.totalorder %s2284_s26, 1  ;;  %s3227_s17 = sld [smem:[#allocation55_spill]]  ;;  %v1152_v1 = vmul.f32 %v1151_v49, %v1147_v48 }
 0x137   :  { %s3228_s19 = sld [smem:[#allocation62_spill]]  ;;  %s3229_s7 = sld [smem:[#allocation65_spill]]  ;;  %v1162_v2 = vmul.f32 %v1161_v51, %v1157_v50  ;;  %v385_v15 = vadd.f32 %v384_v59, %v375_v58 }
 0x138   :  { %s1098_s30 = scalar_lea.vmem [#allocation12], %s3222_s29  ;;  %s3230_s5 = scvt.s32.f32 %s2142_s11 }
 0x139   :  { %v1099_v55 = vld [vmem:[%s1098_s30] sm:$0x1]  ;;  %s1206_s28 = scvt.s32.f32 %s3385_s25  ;;  %s3231_s9 = sld [smem:[#allocation52_spill]]  ;;  %v1163_v20 = vadd.f32 %v1162_v2, %v1152_v1 }
 0x13a   :  { %v1103_v56 = vstv %s3230_s5  ;;  %s2349_s0 = sld [smem:[#allocation7 + $0x382]]  ;;  %s1030_s20 = scalar_lea.vmem [#allocation12], %s3224_s23 }
 0x13b   :  { %v1031_v60 = vld [vmem:[%s1030_s20] sm:$0x1]  ;;  %s3232_s27 = scvt.s32.f32 %s3226_s12  ;;  %s3233_s1 = sld [smem:[#allocation63_spill]]  ;;  %v1104_v5 = vmul.f32 %v1103_v56, %v1099_v55  ;;  %v1207_v45 = vstv %s1206_s28 }
 0x13c   :  { %s2358_s29 = scalar_select %p1216_p10, 1, 0 }
 0x13d   :  { %v1035_v61 = vstv %s3232_s27  ;;  %s3234_s11 = scvt.s32.f32 %s3227_s17  ;;  %s3235_s2 = sld [smem:[#allocation66_spill]]  ;;  %v1105_v29 = vadd.f32 %v1104_v5, %v1095_v4 }
 0x13e   :  { %s388_s24 = scalar_lea.vmem [#allocation9], %s3228_s19  ;;  %s3236_s6 = scvt.s32.f32 %s3229_s7  ;;  %v1036_v11 = vmul.f32 %v1035_v61, %v1031_v60 }
 0x13f   :  { %v331_v62 = vstv %s3234_s11  ;;  %v389_v63 = vld [vmem:[%s388_s24] sm:$0x1]  ;;  %p1236_p12 = scmp.gt.s32.totalorder %s2284_s26, 2  ;;  %s3237_s23 = scvt.s32.f32 %s3231_s9 }
 0x140   :  { %v393_v0 = vstv %s3236_s6  ;;  %s1166_s21 = scalar_lea.vmem [#allocation12], %s2211_s13  ;;  %s3238_s12 = scvt.s32.f32 %s2247_s22  ;;  %1555 = vrcp.f32 %v331_v62  ;;  %v1037_v35 = vadd.f32 %v1036_v11, %v1027_v10  ;;  %v1201_v10 = vstv %s1200_s14 }
 0x141   :  { %v2368_v3 = vstv %s3237_s23  ;;  %v1167_v6 = vld [vmem:[%s1166_s21] sm:$0x1]  ;;  %s3239_s17 = sld [smem:[#allocation75_spill]]  ;;  %s1218_s19 = scvt.s32.f32 %s2358_s29  ;;  %v394_v16 = vmul.f32 %v393_v0, %v389_v63  ;;  %v317_v11 = vadd.f32 %v2351_v57, %v2343_v52 }
 0x142   :  { %v1171_v7 = vstv %s3238_s12  ;;  %s3240_s30 = sld [smem:[#allocation77_spill]]  ;;  %s398_s7 = scalar_lea.vmem [#allocation9], %s3233_s1 }
 0x143   :  { %v399_v8 = vld [vmem:[%s398_s7] sm:$0x1]  ;;  %s3241_s5 = scvt.s32.f32 %s3235_s2  ;;  %s3242_s20 = sld [smem:[#allocation41_spill]]  ;;  %v1172_v23 = vmul.f32 %v1171_v7, %v1167_v6  ;;  %v1219_v26 = vstv %s1218_s19  ;;  %v395_v54 = vadd.f32 %v394_v16, %v385_v15 }
 0x144   :  { %s1108_s9 = scalar_lea.vmem [#allocation12], %s2153_s10  ;;  %s3243_s27 = scvt.s32.f32 %s2166_s15 }
 0x145   :  { %v403_v9 = vstv %s3241_s5  ;;  %v1109_v12 = vld [vmem:[%s1108_s9] sm:$0x1]  ;;  %s2382_s13 = scalar_select %p1226_p11, 1, 0  ;;  %v1173_v43 = vadd.f32 %v1172_v23, %v1163_v20 }
 0x146   :  { %v1113_v13 = vstv %s3243_s27  ;;  %s3244_s1 = sld [smem:[#allocation19_spill]]  ;;  %s3246_s10 = sld [smem:[#allocation28_spill]]  ;;  %v2398_v28 = vmul.f32 %v403_v9, %v399_v8 }
 0x147   :  { %s1040_s22 = scalar_lea.vmem [#allocation12], %s3239_s17  ;;  %s3248_s2 = sld [smem:[#allocation69_spill]]  ;;  %v1114_v30 = vmul.f32 %v1113_v13, %v1109_v12 }
 0x148   :  { %v1041_v17 = vld [vmem:[%s1040_s22] sm:$0x1]  ;;  %s3245_s29 = scvt.s32.f32 %s3240_s30  ;;  %s1214_s24 = scalar_lea.vmem [#allocation12], %s2311_s3 }
 0x149   :  { %s2391_s11 = scalar_select %p1236_p12, 1, 0  ;;  %v1215_v24 = vld [vmem:[%s1214_s24] sm:$0x1]  ;;  %v1115_v49 = vadd.f32 %v1114_v30, %v1105_v29 }
 0x14a   :  { %v1045_v18 = vstv %s3245_s29  ;;  %s3247_s15 = scvt.s32.f32 %s3242_s20  ;;  %s3249_s6 = sld [smem:[#allocation86_spill]]  ;;  %v1220_v40 = vmul.f32 %v1219_v26, %v1215_v24  ;;  %v1556_v5 = vpop.eup %1555 }
 0x14b   :  { %s1224_s23 = scalar_lea.vmem [#allocation12], %s2320_s18  ;;  %s3250_s21 = sld [smem:[#allocation88_spill]]  ;;  %v1046_v39 = vmul.f32 %v1045_v18, %v1041_v17  ;;  %v239_v18 = vadd.f32 %v2322_v41, %v2294_v25 }
 0x14c   :  { %v1139_v19 = vstv %s3247_s15  ;;  %v1225_v27 = vld [vmem:[%s1224_s23] sm:$0x1]  ;;  %s1228_s12 = scvt.s32.f32 %s2382_s13  ;;  %s1176_s17 = scalar_lea.vmem [#allocation12], %s3244_s1 }
 0x14d   :  { %v1177_v31 = vld [vmem:[%s1176_s17] sm:$0x1]  ;;  %s3251_s30 = scvt.s32.f32 %s3246_s10  ;;  %s1238_s7 = scvt.s32.f32 %s2391_s11  ;;  %1557 = vrcp.f32 %v1139_v19  ;;  %v1047_v61 = vadd.f32 %v1046_v39, %v1037_v35 }
 0x14e   :  { %s2404_s5 = sld [smem:[#allocation7 + $0x383]]  ;;  %s3252_s3 = scvt.s32.f32 %s3248_s2  ;;  %v1229_v38 = vstv %s1228_s12 }
 0x14f   :  { %v1181_v32 = vstv %s3251_s30  ;;  %s3254_s20 = sld [smem:[#allocation83_spill]]  ;;  %p1246_p13 = scmp.gt.s32.totalorder %s2284_s26, 3  ;;  %v1230_v42 = vmul.f32 %v1229_v38, %v1225_v27  ;;  %v1239_v47 = vstv %s1238_s7 }
 0x150   :  { %v419_v34 = vstv %s3252_s3  ;;  %s1118_s18 = scalar_lea.vmem [#allocation12], %s3249_s6  ;;  %s2414_s9 = sld [smem:[#allocation7 + $0x384]]  ;;  %v1182_v44 = vmul.f32 %v1181_v32, %v1177_v31  ;;  %v245_v31 = vmul.f32 %v2406_v33, %v239_v18 }
 0x151   :  { %v1119_v36 = vld [vmem:[%s1118_s18] sm:$0x1]  ;;  %s3253_s19 = scvt.s32.f32 %s3250_s21  ;;  %s3255_s27 = sld [smem:[#allocation23_spill]]  ;;  %1559 = vrcp.f32 %v419_v34  ;;  %v1231_v62 = vadd.f32 %v1230_v42, %v1220_v40 }
 0x152   :  { %p1256_p0 = scmp.gt.s32.totalorder %s2284_s26, 4  ;;  %s2417_s13 = sld [smem:[#allocation7 + $0x385]]  ;;  %1561 = vrcp.f32 %v1207_v45  ;;  %v1183_v0 = vadd.f32 %v1182_v44, %v1173_v43  ;;  %v423_v45 = vrot.slane %v245_v31, 7 }
 0x153   :  { %v1123_v37 = vstv %s3253_s19  ;;  %s3256_s22 = sld [smem:[#allocation76_spill]]  ;;  %s3257_s1 = sld [smem:[#allocation79_spill]] }
 0x154   :  { %s1234_s29 = scalar_lea.vmem [#allocation12], %s2349_s0  ;;  %s3258_s10 = sld [smem:[#allocation87_spill]]  ;;  %v1124_v50 = vmul.f32 %v1123_v37, %v1119_v36 }
 0x155   :  { %v1235_v46 = vld [vmem:[%s1234_s29] sm:$0x1]  ;;  %s3259_s11 = sld [smem:[#allocation37_spill]]  ;;  %s3260_s2 = scvt.s32.f32 %s3254_s20 }
 0x156   :  { %s2424_s15 = scalar_select %p1246_p13, 1, 0  ;;  %v1240_v63 = vmul.f32 %v1239_v47, %v1235_v46  ;;  %v1125_v7 = vadd.f32 %v1124_v50, %v1115_v49 }
 0x157   :  { %v1071_v48 = vstv %s3260_s2  ;;  %s3261_s24 = sld [smem:[#allocation48_spill]]  ;;  %s1186_s6 = scalar_lea.vmem [#allocation12], %s3255_s27  ;;  %v1558_v26 = vpop.eup %1557 }
 0x158   :  { %v1187_v51 = vld [vmem:[%s1186_s6] sm:$0x1]  ;;  %s2433_s25 = scalar_select %p1256_p0, 1, 0  ;;  %1563 = vrcp.f32 %v1071_v48  ;;  %v1241_v52 = vadd.f32 %v1240_v63, %v1231_v62 }
 0x159   :  { %s1050_s28 = scalar_lea.vmem [#allocation12], %s3256_s22  ;;  %s3262_s0 = scvt.s32.f32 %s3257_s1  ;;  %v1192_v1 = vmul.f32 %v1191_v53, %v1187_v51 }
 0x15a   :  { %v1051_v55 = vld [vmem:[%s1050_s28] sm:$0x1]  ;;  %s1128_s23 = scalar_lea.vmem [#allocation12], %s3258_s10  ;;  %s1248_s12 = scvt.s32.f32 %s2424_s15 }
 0x15b   :  { %v1055_v56 = vstv %s3262_s0  ;;  %v1129_v58 = vld [vmem:[%s1128_s23] sm:$0x1]  ;;  %s3263_s21 = scvt.s32.f32 %s3259_s11  ;;  %p1266_p1 = scmp.gt.s32.totalorder %s2284_s26, 5  ;;  %v1193_v19 = vadd.f32 %v1192_v1, %v1183_v0  ;;  %v1560_v36 = vpop.eup %1559 }
 0x15c   :  { %s3264_s4 = sld [smem:[#allocation30_spill]]  ;;  %s1258_s8 = scvt.s32.f32 %s2433_s25  ;;  %v1249_v4 = vstv %s1248_s12  ;;  %v1056_v6 = vmul.f32 %v1055_v56, %v1051_v55 }
 0x15d   :  { %v1133_v59 = vstv %s3263_s21  ;;  %s320_s17 = scalar_lea.vmem [#allocation9], %s3261_s24  ;;  %s3265_s30 = sld [smem:[#allocation64_spill]] }
 0x15e   :  { %v321_v60 = vld [vmem:[%s320_s17] sm:$0x1]  ;;  %s1244_s7 = scalar_lea.vmem [#allocation12], %s2404_s5  ;;  %s3266_s3 = sld [smem:[#allocation68_spill]]  ;;  %v1134_v8 = vmul.f32 %v1133_v59, %v1129_v58  ;;  %v1259_v24 = vstv %s1258_s8  ;;  %v1057_v41 = vadd.f32 %v1056_v6, %v1047_v61 }
 0x15f   :  { %v1245_v2 = vld [vmem:[%s1244_s7] sm:$0x1]  ;;  %s3267_s18 = sld [smem:[#allocation78_spill]]  ;;  %s2446_s19 = sld [smem:[#allocation8]]  ;;  %v326_v12 = vmul.f32 %v2368_v3, %v321_v60  ;;  %v405_v3 = vadd.f32 %v2398_v28, %v395_v54  ;;  %v151_v28 = vadd.f32 %v2288_v22, %v2286_v21  ;;  %v1562_v21 = vpop.eup %1561 }
 0x160   :  { %s3268_s20 = sld [smem:[#allocation80_spill]]  ;;  %s2451_s22 = sld [smem:[#allocation7]]  ;;  %v1250_v57 = vmul.f32 %v1249_v4, %v1245_v2  ;;  %v1135_v29 = vadd.f32 %v1134_v8, %v1125_v7 }
 0x161   :  { %s2464_s16 = scalar_select %p1266_p1, 1, 0  ;;  %v327_v30 = vadd.f32 %v326_v12, %v317_v11  ;;  %v157_v44 = vmul.f32 %v2384_v14, %v151_v28 }
 0x162   :  { %s1196_s27 = scalar_lea.vmem [#allocation12], %s3264_s4  ;;  %s3387_s26 = smov (!%p1226_p11, %s2284_s26), 1  ;;  %v1251_v32 = vadd.f32 %v1250_v57, %v1241_v52  ;;  %v1141_v42 = vmul.f32 %v1558_v26, %v1135_v29  ;;  %v1564_v33 = vpop.eup %1563 }
 0x163   :  { %v1197_v9 = vld [vmem:[%s1196_s27] sm:$0x1]  ;;  %s408_s5 = scalar_lea.vmem [#allocation9], %s3265_s30  ;;  %s1254_s14 = scalar_lea.vmem [#allocation12], %s2414_s9  ;;  %v333_v43 = vmul.f32 %v1556_v5, %v327_v30  ;;  %v432_v14 = vsel %vm431_vm0, %v157_v44, %v423_v45 }
 0x164   :  { %v409_v13 = vld [vmem:[%s408_s5] sm:$0x1]  ;;  %s3269_s1 = scvt.s32.f32 %s3266_s3  ;;  %v1202_v20 = vmul.f32 %v1201_v10, %v1197_v9  ;;  %s1268_s11 = scvt.s32.f32 %s2464_s16  ;;  %v1279_v51 = vrot.slane %v1141_v42, 7 }
 0x165   :  { %s1060_s29 = scalar_lea.vmem [#allocation12], %s3267_s18  ;;  %v1255_v23 = vld [vmem:[%s1254_s14] sm:$0x1]  ;;  %s2476_s15 = sld [smem:[#allocation7 + $0x1]]  ;;  %v426_v53 = vrot.slane %v333_v43, 6 }
 0x166   :  { %v413_v15 = vstv %s3269_s1  ;;  %v1061_v16 = vld [vmem:[%s1060_s29] sm:$0x1]  ;;  %s3270_s10 = scvt.s32.f32 %s3268_s20  ;;  %s1274_s2 = scvt.s32.f32 %s3387_s26  ;;  %v1260_v34 = vmul.f32 %v1259_v24, %v1255_v23  ;;  %v1203_v37 = vadd.f32 %v1202_v20, %v1193_v19  ;;  %v1269_v39 = vstv %s1268_s11 }
 0x167   :  { %v414_v25 = vmul.f32 %v413_v15, %v409_v13  ;;  %s2478_s24 = sld [smem:[#allocation7 + $0x2]]  ;;  %p713_p2 = scmp.gt.s32.totalorder %s2446_s19, 0  ;;  %v434_v60 = vsel %vm433_vm1, %v432_v14, %v426_v53 }
 0x168   :  { %v1065_v17 = vstv %s3270_s10  ;;  %p723_p3 = scmp.gt.s32.totalorder %s2446_s19, 1  ;;  %v1275_v35 = vstv %s1274_s2  ;;  %p733_p4 = scmp.gt.s32.totalorder %s2446_s19, 2  ;;  %v1261_v46 = vadd.f32 %v1260_v34, %v1251_v32  ;;  %v1209_v48 = vmul.f32 %v1562_v21, %v1203_v37 }
 0x169   :  { %v1066_v27 = vmul.f32 %v1065_v17, %v1061_v16  ;;  %s1264_s9 = scalar_lea.vmem [#allocation12], %s2417_s13  ;;  %1565 = vrcp.f32 %v1275_v35  ;;  %v415_v22 = vadd.f32 %v414_v25, %v405_v3  ;;  %s2500_s0 = sld [smem:[#allocation7 + $0x3]] }
 0x16a   :  { %v1265_v38 = vld [vmem:[%s1264_s9] sm:$0x1]  ;;  %s2487_s26 = scalar_select %p713_p2, 1, 0  ;;  %v1282_v55 = vrot.slane %v1209_v48, 6 }
 0x16b   :  { %v1067_v40 = vadd.f32 %v1066_v27, %v1057_v41  ;;  %s2491_s6 = scalar_select %p723_p3, 1, 0  ;;  %v1270_v47 = vmul.f32 %v1269_v39, %v1265_v38  ;;  %v421_v49 = vmul.f32 %v1560_v36, %v415_v22 }
 0x16c   :  { %s2498_s28 = scalar_select %p733_p4, 1, 0 }
 0x16d   :  { %v1073_v50 = vmul.f32 %v1564_v33, %v1067_v40  ;;  %p743_p5 = scmp.gt.s32.totalorder %s2446_s19, 3  ;;  %s2504_s21 = sld [smem:[#allocation7 + $0x4]]  ;;  %v1271_v54 = vadd.f32 %v1270_v47, %v1261_v46  ;;  %v429_v56 = vrot.slane %v421_v49, 5 }
 0x16e   :  { %p753_p6 = scmp.gt.s32.totalorder %s2446_s19, 4  ;;  %s2510_s17 = sld [smem:[#allocation7 + $0x5]] }
 0x16f   :  { %3271 = sst [smem:[#allocation38_spill]] %s2500_s0  ;;  %v1287_v58 = vsel %vm431_vm0, %v1073_v50, %v1279_v51  ;;  %p763_p7 = scmp.gt.s32.totalorder %s2446_s19, 5  ;;  %v2523_v63 = vsel %vm435_vm2, %v434_v60, %v429_v56 }
 0x170   :  { %s2507_s12 = scalar_select %p743_p5, 1, 0  ;;  %v1288_v62 = vsel %vm433_vm1, %v1287_v58, %v1282_v55 }
 0x171   :  { %s2516_s8 = scalar_select %p753_p6, 1, 0 }
 0x172   :  { %3273 = sst [smem:[#allocation20_spill]] %s2507_s12  ;;  %s2527_s18 = sld [smem:[#allocation7 + $0x100]] }
 0x173   :  { %3272 = sst [smem:[#allocation42_spill]] %s2504_s21  ;;  %v1566_v59 = vpop.eup %1565  ;;  %s2518_s30 = sld [smem:[#allocation8 + $0x2]] }
 0x174   :  { %3274 = sst [smem:[#allocation24_spill]] %s2510_s17  ;;  %v1277_v61 = vmul.f32 %v1566_v59, %v1271_v54  ;;  %s2531_s27 = sld [smem:[#allocation7 + $0x101]] }
 0x175   :  { %3275 = sst [smem:[#allocation29_spill]] %s2516_s8  ;;  %s3389_s19 = smov (!%p723_p3, %s2446_s19), 1 }
 0x176   :  { %v1285_v0 = vrot.slane %v1277_v61, 5  ;;  %s2525_s3 = scalar_select %p763_p7, 1, 0 }
 0x177   :  { %3277 = sst [smem:[#allocation39_spill]] %s3389_s19  ;;  %s2543_s1 = sld [smem:[#allocation7 + $0x102]] }
 0x178   :  { %3276 = sst [smem:[#allocation32_spill]] %s2525_s3  ;;  %v1289_v1 = vsel %vm435_vm2, %v1288_v62, %v1285_v0  ;;  %s2557_s9 = sld [smem:[#allocation7 + $0x103]] }
 0x179   :  { %v1290_v2 = vmul.f32 %v1289_v1, %v2523_v63  ;;  %p781_p8 = scmp.gt.s32.totalorder %s2518_s30, 0  ;;  %p791_p9 = scmp.gt.s32.totalorder %s2518_s30, 1 }
 0x17a   :  { %p801_p10 = scmp.gt.s32.totalorder %s2518_s30, 2  ;;  %p811_p11 = scmp.gt.s32.totalorder %s2518_s30, 3 }
 0x17b   :  { %v1291_v4 = vsel %vm694_vm3, %v1290_v2, 0.0  ;;  %s2545_s29 = scalar_select %p781_p8, 1, 0 }
 0x17c   :  { %1292 = vadd.xlane.f32.xlu1 %v1291_v4  ;;  %s2551_s16 = scalar_select %p791_p9, 1, 0 }
 0x17d   :  { %s2553_s14 = scalar_select %p801_p10, 1, 0 }
 0x17e   :  { %s2560_s20 = sld [smem:[#allocation7 + $0x104]]  ;;  %p821_p12 = scmp.gt.s32.totalorder %s2518_s30, 4 }
 0x17f   :  { %s2563_s7 = sld [smem:[#allocation7 + $0x105]]  ;;  %p831_p13 = scmp.gt.s32.totalorder %s2518_s30, 5 }
 0x180   :  { %s2565_s5 = scalar_select %p811_p11, 1, 0 }
 0x181   :  { %s2567_s4 = scalar_select %p821_p12, 1, 0 }
 0x182   :  { %s2572_s25 = sld [smem:[#allocation8 + $0x4]]  ;;  %s2574_s2 = sld [smem:[#allocation7 + $0x200]] }
 0x183   :  { %3280 = sst [smem:[#allocation56_spill]] %s2567_s4  ;;  %s3391_s30 = smov (!%p791_p9, %s2518_s30), 1 }
 0x184   :  { %3278 = sst [smem:[#allocation43_spill]] %s2560_s20  ;;  %s2587_s3 = sld [smem:[#allocation7 + $0x202]] }
 0x185   :  { %3279 = sst [smem:[#allocation50_spill]] %s2563_s7  ;;  %s2584_s23 = sld [smem:[#allocation7 + $0x201]] }
 0x186   :  { %s2576_s11 = scalar_select %p831_p13, 1, 0 }
 0x187   :  { %3282 = sst [smem:[#allocation57_spill]] %s3391_s30  ;;  %s2602_s13 = sld [smem:[#allocation7 + $0x203]] }
 0x188   :  { %3281 = sst [smem:[#allocation51_spill]] %s2576_s11  ;;  %p849_p0 = scmp.gt.s32.totalorder %s2572_s25, 0 }
 0x189   :  { %p859_p1 = scmp.gt.s32.totalorder %s2572_s25, 1  ;;  %p869_p2 = scmp.gt.s32.totalorder %s2572_s25, 2 }
 0x18a   :  { %s2592_s17 = scalar_select %p849_p0, 1, 0 }
 0x18b   :  { %s2596_s7 = scalar_select %p859_p1, 1, 0 }
 0x18c   :  { %s2600_s11 = scalar_select %p869_p2, 1, 0 }
 0x18d   :  { %3283 = sst [smem:[#allocation21_spill]] %s2602_s13  ;;  %p879_p3 = scmp.gt.s32.totalorder %s2572_s25, 3 }
 0x18e   :  { %s2606_s19 = sld [smem:[#allocation7 + $0x204]]  ;;  %p889_p4 = scmp.gt.s32.totalorder %s2572_s25, 4 }
 0x18f   :  { %s2608_s4 = scalar_select %p879_p3, 1, 0 }
 0x190   :  { %s2611_s20 = sld [smem:[#allocation7 + $0x205]]  ;;  %p899_p5 = scmp.gt.s32.totalorder %s2572_s25, 5 }
 0x191   :  { %3285 = sst [smem:[#allocation31_spill]] %s2608_s4  ;;  %s2617_s13 = sld [smem:[#allocation8 + $0x6]] }
 0x192   :  { %s2615_s8 = scalar_select %p889_p4, 1, 0 }
 0x193   :  { %s779_s30 = scalar_lea.vmem [#allocation12], %s2527_s18  ;;  %s3287_s12 = scvt.s32.f32 %s2545_s29 }
 0x194   :  { %3284 = sst [smem:[#allocation25_spill]] %s2606_s19  ;;  %s891_s21 = scvt.s32.f32 %s2615_s8  ;;  %v780_v5 = vld [vmem:[%s779_s30] sm:$0x1] }
 0x195   :  { %s2621_s19 = scalar_select %p899_p5, 1, 0  ;;  %v784_v6 = vstv %s3287_s12 }
 0x196   :  { %3286 = sst [smem:[#allocation33_spill]] %s2611_s20  ;;  %s789_s10 = scalar_lea.vmem [#allocation12], %s2531_s27  ;;  %v785_v13 = vmul.f32 %v784_v6, %v780_v5  ;;  %v892_v62 = vstv %s891_s21 }
 0x197   :  { %v790_v7 = vld [vmem:[%s789_s10] sm:$0x1]  ;;  %s3288_s20 = scvt.s32.f32 %s2551_s16  ;;  %s2628_s4 = sld [smem:[#allocation7 + $0x300]] }
 0x198   :  { %s711_s0 = scalar_lea.vmem [#allocation12], %s2451_s22  ;;  %s3289_s18 = scvt.s32.f32 %s2487_s26 }
 0x199   :  { %v794_v8 = vstv %s3288_s20  ;;  %v712_v9 = vld [vmem:[%s711_s0] sm:$0x1]  ;;  %s721_s30 = scalar_lea.vmem [#allocation12], %s2476_s15  ;;  %s3290_s29 = scvt.s32.f32 %s2491_s6 }
 0x19a   :  { %v716_v10 = vstv %s3289_s18  ;;  %v722_v11 = vld [vmem:[%s721_s30] sm:$0x1]  ;;  %s901_s12 = scvt.s32.f32 %s2621_s19  ;;  %s2637_s27 = sld [smem:[#allocation7 + $0x301]]  ;;  %v795_v15 = vmul.f32 %v794_v8, %v790_v7 }
 0x19b   :  { %v726_v12 = vstv %s3290_s29  ;;  %s3393_s25 = smov (!%p859_p1, %s2572_s25), 1  ;;  %s847_s22 = scalar_lea.vmem [#allocation12], %s2574_s2  ;;  %v717_v57 = vmul.f32 %v716_v10, %v712_v9 }
 0x19c   :  { %v848_v16 = vld [vmem:[%s847_s22] sm:$0x1]  ;;  %s3291_s26 = scvt.s32.f32 %s2592_s17  ;;  %s857_s15 = scalar_lea.vmem [#allocation12], %s2584_s23  ;;  %v727_v3 = vmul.f32 %v726_v12, %v722_v11  ;;  %v796_v41 = vadd.f32 %v795_v15, %v785_v13 }
 0x19d   :  { %v858_v18 = vld [vmem:[%s857_s15] sm:$0x1]  ;;  %s3292_s6 = scvt.s32.f32 %s2596_s7  ;;  %p917_p6 = scmp.gt.s32.totalorder %s2617_s13, 0 }
 0x19e   :  { %v852_v17 = vstv %s3291_s26  ;;  %p927_p7 = scmp.gt.s32.totalorder %s2617_s13, 1  ;;  %s799_s0 = scalar_lea.vmem [#allocation12], %s2543_s1  ;;  %v728_v30 = vadd.f32 %v727_v3, %v717_v57 }
 0x19f   :  { %v862_v52 = vstv %s3292_s6  ;;  %v800_v19 = vld [vmem:[%s799_s0] sm:$0x1]  ;;  %s3293_s20 = scvt.s32.f32 %s2553_s14  ;;  %s907_s10 = scvt.s32.f32 %s3393_s25  ;;  %v853_v26 = vmul.f32 %v852_v17, %v848_v16  ;;  %v902_v17 = vstv %s901_s12 }
 0x1a0   :  { %s2656_s16 = sld [smem:[#allocation7 + $0x302]]  ;;  %s731_s17 = scalar_lea.vmem [#allocation12], %s2478_s24  ;;  %v863_v25 = vmul.f32 %v862_v52, %v858_v18 }
 0x1a1   :  { %v804_v20 = vstv %s3293_s20  ;;  %v732_v23 = vld [vmem:[%s731_s17] sm:$0x1]  ;;  %s3294_s23 = scvt.s32.f32 %s2498_s28  ;;  %s3295_s2 = sld [smem:[#allocation38_spill]]  ;;  %v908_v54 = vstv %s907_s10 }
 0x1a2   :  { %s918_s7 = scalar_select %p917_p6, 1, 0  ;;  %v805_v27 = vmul.f32 %v804_v20, %v800_v19  ;;  %v864_v38 = vadd.f32 %v863_v25, %v853_v26 }
 0x1a3   :  { %v736_v24 = vstv %s3294_s23  ;;  %s3296_s18 = sld [smem:[#allocation20_spill]]  ;;  %p937_p8 = scmp.gt.s32.totalorder %s2617_s13, 2 }
 0x1a4   :  { %s3297_s1 = sld [smem:[#allocation57_spill]]  ;;  %s867_s14 = scalar_lea.vmem [#allocation12], %s2587_s3  ;;  %v737_v31 = vmul.f32 %v736_v24, %v732_v23  ;;  %v806_v42 = vadd.f32 %v805_v27, %v796_v41 }
 0x1a5   :  { %v868_v29 = vld [vmem:[%s867_s14] sm:$0x1]  ;;  %s3298_s30 = scvt.s32.f32 %s2600_s11  ;;  %s919_s24 = scvt.s32.f32 %s918_s7 }
 0x1a6   :  { %s809_s28 = scalar_lea.vmem [#allocation12], %s2557_s9  ;;  %s3299_s29 = scvt.s32.f32 %s2565_s5  ;;  %v738_v45 = vadd.f32 %v737_v31, %v728_v30 }
 0x1a7   :  { %v872_v28 = vstv %s3298_s30  ;;  %v810_v32 = vld [vmem:[%s809_s28] sm:$0x1]  ;;  %s928_s22 = scalar_select %p927_p7, 1, 0  ;;  %v920_v22 = vstv %s919_s24 }
 0x1a8   :  { %v814_v34 = vstv %s3299_s29  ;;  %s3300_s26 = sld [smem:[#allocation21_spill]]  ;;  %s741_s15 = scalar_lea.vmem [#allocation12], %s3295_s2  ;;  %v873_v39 = vmul.f32 %v872_v28, %v868_v29 }
 0x1a9   :  { %v742_v35 = vld [vmem:[%s741_s15] sm:$0x1]  ;;  %s3301_s6 = scvt.s32.f32 %s3296_s18  ;;  %s3302_s0 = sld [smem:[#allocation31_spill]]  ;;  %v815_v33 = vmul.f32 %v814_v34, %v810_v32 }
 0x1aa   :  { %s2675_s3 = scalar_select %p937_p8, 1, 0  ;;  %v874_v53 = vadd.f32 %v873_v39, %v864_v38 }
 0x1ab   :  { %v746_v36 = vstv %s3301_s6  ;;  %s3303_s11 = scvt.s32.f32 %s3297_s1  ;;  %s3304_s20 = sld [smem:[#allocation43_spill]]  ;;  %v816_v59 = vadd.f32 %v815_v33, %v806_v42 }
 0x1ac   :  { %s915_s9 = scalar_lea.vmem [#allocation12], %s2628_s4  ;;  %s3305_s5 = sld [smem:[#allocation56_spill]]  ;;  %v747_v49 = vmul.f32 %v746_v36, %v742_v35 }
 0x1ad   :  { %v840_v37 = vstv %s3303_s11  ;;  %v916_v21 = vld [vmem:[%s915_s9] sm:$0x1]  ;;  %s925_s17 = scalar_lea.vmem [#allocation12], %s2637_s27  ;;  %s929_s23 = scvt.s32.f32 %s928_s22 }
 0x1ae   :  { %v926_v40 = vld [vmem:[%s925_s17] sm:$0x1]  ;;  %s877_s7 = scalar_lea.vmem [#allocation12], %s3300_s26  ;;  %s939_s18 = scvt.s32.f32 %s2675_s3  ;;  %1567 = vrcp.f32 %v840_v37  ;;  %v921_v50 = vmul.f32 %v920_v22, %v916_v21  ;;  %v748_v5 = vadd.f32 %v747_v49, %v738_v45 }
 0x1af   :  { %v878_v43 = vld [vmem:[%s877_s7] sm:$0x1]  ;;  %s3306_s2 = scvt.s32.f32 %s3302_s0  ;;  %s2685_s1 = sld [smem:[#allocation7 + $0x303]]  ;;  %v930_v48 = vstv %s929_s23  ;;  %1569 = vrcp.f32 %v908_v54 }
 0x1b0   :  { %s3308_s27 = sld [smem:[#allocation39_spill]]  ;;  %p947_p9 = scmp.gt.s32.totalorder %s2617_s13, 3  ;;  %v931_v51 = vmul.f32 %v930_v48, %v926_v40  ;;  %v940_v56 = vstv %s939_s18 }
 0x1b1   :  { %v882_v44 = vstv %s3306_s2  ;;  %s819_s4 = scalar_lea.vmem [#allocation12], %s3304_s20  ;;  %s2691_s30 = sld [smem:[#allocation7 + $0x304]] }
 0x1b2   :  { %v820_v46 = vld [vmem:[%s819_s4] sm:$0x1]  ;;  %s3307_s14 = scvt.s32.f32 %s3305_s5  ;;  %s3309_s24 = sld [smem:[#allocation25_spill]]  ;;  %v883_v14 = vmul.f32 %v882_v44, %v878_v43  ;;  %v932_v6 = vadd.f32 %v931_v51, %v921_v50 }
 0x1b3   :  { %p957_p10 = scmp.gt.s32.totalorder %s2617_s13, 4  ;;  %s3310_s28 = sld [smem:[#allocation42_spill]] }
 0x1b4   :  { %v824_v47 = vstv %s3307_s14  ;;  %s2694_s29 = sld [smem:[#allocation7 + $0x305]]  ;;  %s3311_s22 = sld [smem:[#allocation29_spill]]  ;;  %v884_v8 = vadd.f32 %v883_v14, %v874_v53 }
 0x1b5   :  { %s3312_s26 = sld [smem:[#allocation50_spill]]  ;;  %s935_s15 = scalar_lea.vmem [#allocation12], %s2656_s16  ;;  %v825_v60 = vmul.f32 %v824_v47, %v820_v46 }
 0x1b6   :  { %s3313_s6 = sld [smem:[#allocation51_spill]]  ;;  %v936_v55 = vld [vmem:[%s935_s15] sm:$0x1]  ;;  %s3314_s3 = scvt.s32.f32 %s3308_s27 }
 0x1b7   :  { %s948_s0 = scalar_select %p947_p9, 1, 0  ;;  %v941_v7 = vmul.f32 %v940_v56, %v936_v55  ;;  %v826_v13 = vadd.f32 %v825_v60, %v816_v59 }
 0x1b8   :  { %v772_v58 = vstv %s3314_s3  ;;  %s887_s11 = scalar_lea.vmem [#allocation12], %s3309_s24  ;;  %p967_p11 = scmp.gt.s32.totalorder %s2617_s13, 5  ;;  %v1568_v26 = vpop.eup %1567 }
 0x1b9   :  { %v888_v61 = vld [vmem:[%s887_s11] sm:$0x1]  ;;  %s2708_s20 = scalar_select %p957_p10, 1, 0  ;;  %1571 = vrcp.f32 %v772_v58  ;;  %v942_v57 = vadd.f32 %v941_v7, %v932_v6  ;;  %v1570_v35 = vpop.eup %1569 }
 0x1ba   :  { %s751_s25 = scalar_lea.vmem [#allocation12], %s3310_s28  ;;  %s3315_s10 = scvt.s32.f32 %s3311_s22  ;;  %v893_v9 = vmul.f32 %v892_v62, %v888_v61 }
 0x1bb   :  { %v752_v0 = vld [vmem:[%s751_s25] sm:$0x1]  ;;  %s829_s16 = scalar_lea.vmem [#allocation12], %s3312_s26  ;;  %s949_s5 = scvt.s32.f32 %s948_s0 }
 0x1bc   :  { %v756_v1 = vstv %s3315_s10  ;;  %v830_v2 = vld [vmem:[%s829_s16] sm:$0x1]  ;;  %s3316_s9 = scvt.s32.f32 %s3313_s6  ;;  %s3317_s17 = sld [smem:[#allocation33_spill]]  ;;  %v894_v19 = vadd.f32 %v893_v9, %v884_v8 }
 0x1bd   :  { %s3318_s21 = sld [smem:[#allocation24_spill]]  ;;  %s959_s8 = scvt.s32.f32 %s2708_s20  ;;  %v950_v11 = vstv %s949_s5  ;;  %v757_v12 = vmul.f32 %v756_v1, %v752_v0 }
 0x1be   :  { %v834_v4 = vstv %s3316_s9  ;;  %s3319_s23 = sld [smem:[#allocation32_spill]]  ;;  %s945_s7 = scalar_lea.vmem [#allocation12], %s2685_s1 }
 0x1bf   :  { %v946_v10 = vld [vmem:[%s945_s7] sm:$0x1]  ;;  %s2719_s2 = sld [smem:[#allocation6]]  ;;  %v835_v15 = vmul.f32 %v834_v4, %v830_v2  ;;  %s3395_s13 = smov (!%p927_p7, %s2617_s13), 1  ;;  %v960_v24 = vstv %s959_s8  ;;  %v758_v25 = vadd.f32 %v757_v12, %v748_v5 }
 0x1c0   :  { %s2724_s4 = sld [smem:[#allocation5]]  ;;  %v951_v3 = vmul.f32 %v950_v11, %v946_v10  ;;  %s955_s24 = scalar_lea.vmem [#allocation12], %s2691_s30 }
 0x1c1   :  { %s968_s1 = scalar_select %p967_p11, 1, 0  ;;  %v956_v23 = vld [vmem:[%s955_s24] sm:$0x1]  ;;  %v836_v27 = vadd.f32 %v835_v15, %v826_v13 }
 0x1c2   :  { %s897_s18 = scalar_lea.vmem [#allocation12], %s3317_s17  ;;  %s2735_s12 = sld [smem:[#allocation5 + $0x1]]  ;;  %v952_v29 = vadd.f32 %v951_v3, %v942_v57  ;;  %v961_v28 = vmul.f32 %v960_v24, %v956_v23 }
 0x1c3   :  { %v898_v16 = vld [vmem:[%s897_s18] sm:$0x1]  ;;  %s761_s14 = scalar_lea.vmem [#allocation12], %s3318_s21  ;;  %s969_s19 = scvt.s32.f32 %s968_s1  ;;  %v842_v37 = vmul.f32 %v1568_v26, %v836_v27  ;;  %v1572_v38 = vpop.eup %1571 }
 0x1c4   :  { %v762_v18 = vld [vmem:[%s761_s14] sm:$0x1]  ;;  %s3320_s27 = scvt.s32.f32 %s3319_s23  ;;  %v903_v20 = vmul.f32 %v902_v17, %v898_v16  ;;  %s975_s28 = scvt.s32.f32 %s3395_s13  ;;  %v962_v39 = vadd.f32 %v961_v28, %v952_v29 }
 0x1c5   :  { %s2737_s22 = sld [smem:[#allocation5 + $0x2]]  ;;  %p441_p12 = scmp.gt.s32.totalorder %s2719_s2, 0  ;;  %v970_v34 = vstv %s969_s19  ;;  %v980_v42 = vrot.slane %v842_v37, 7 }
 0x1c6   :  { %v766_v52 = vstv %s3320_s27  ;;  %p450_p13 = scmp.gt.s32.totalorder %s2719_s2, 1  ;;  %v976_v30 = vstv %s975_s28  ;;  %p459_p0 = scmp.gt.s32.totalorder %s2719_s2, 2  ;;  %v904_v31 = vadd.f32 %v903_v20, %v894_v19 }
 0x1c7   :  { %v767_v41 = vmul.f32 %v766_v52, %v762_v18  ;;  %s965_s30 = scalar_lea.vmem [#allocation12], %s2694_s29  ;;  %1573 = vrcp.f32 %v976_v30  ;;  %s2755_s0 = sld [smem:[#allocation5 + $0x3]] }
 0x1c8   :  { %v966_v32 = vld [vmem:[%s965_s30] sm:$0x1]  ;;  %s2743_s26 = scalar_select %p441_p12, 1, 0  ;;  %v910_v22 = vmul.f32 %v1570_v35, %v904_v31 }
 0x1c9   :  { %v768_v36 = vadd.f32 %v767_v41, %v758_v25  ;;  %s2747_s13 = scalar_select %p450_p13, 1, 0  ;;  %v971_v21 = vmul.f32 %v970_v34, %v966_v32 }
 0x1ca   :  { %s2753_s6 = scalar_select %p459_p0, 1, 0  ;;  %v983_v43 = vrot.slane %v910_v22, 6 }
 0x1cb   :  { %v774_v40 = vmul.f32 %v1572_v38, %v768_v36  ;;  %p468_p1 = scmp.gt.s32.totalorder %s2719_s2, 3  ;;  %s2758_s3 = sld [smem:[#allocation5 + $0x4]]  ;;  %v972_v33 = vadd.f32 %v971_v21, %v962_v39 }
 0x1cc   :  { %p477_p2 = scmp.gt.s32.totalorder %s2719_s2, 4  ;;  %s2765_s25 = sld [smem:[#allocation5 + $0x5]] }
 0x1cd   :  { %3321 = sst [smem:[#allocation40_spill]] %s2755_s0  ;;  %v988_v44 = vsel %vm431_vm0, %v774_v40, %v980_v42  ;;  %p486_p3 = scmp.gt.s32.totalorder %s2719_s2, 5 }
 0x1ce   :  { %s2760_s11 = scalar_select %p468_p1, 1, 0  ;;  %v989_v47 = vsel %vm433_vm1, %v988_v44, %v983_v43 }
 0x1cf   :  { %s2768_s10 = scalar_select %p477_p2, 1, 0 }
 0x1d0   :  { %3323 = sst [smem:[#allocation53_spill]] %s2760_s11  ;;  %s2771_s9 = sld [smem:[#allocation6 + $0x1]] }
 0x1d1   :  { %3322 = sst [smem:[#allocation45_spill]] %s2758_s3  ;;  %v1574_v45 = vpop.eup %1573  ;;  %s2777_s21 = sld [smem:[#allocation5 + $0x80]] }
 0x1d2   :  { %3324 = sst [smem:[#allocation58_spill]] %s2765_s25  ;;  %v978_v46 = vmul.f32 %v1574_v45, %v972_v33  ;;  %s2781_s23 = sld [smem:[#allocation5 + $0x81]] }
 0x1d3   :  { %3325 = sst [smem:[#allocation22_spill]] %s2768_s10  ;;  %s3397_s2 = smov (!%p450_p13, %s2719_s2), 1 }
 0x1d4   :  { %v986_v48 = vrot.slane %v978_v46, 5  ;;  %s2774_s5 = scalar_select %p486_p3, 1, 0 }
 0x1d5   :  { %3327 = sst [smem:[#allocation27_spill]] %s3397_s2  ;;  %s2793_s18 = sld [smem:[#allocation5 + $0x82]] }
 0x1d6   :  { %3326 = sst [smem:[#allocation26_spill]] %s2774_s5  ;;  %v990_v49 = vsel %vm435_vm2, %v989_v47, %v986_v48  ;;  %p502_p4 = scmp.gt.s32.totalorder %s2771_s9, 0 }
 0x1d7   :  { %v991_v50 = vmul.f32 %v990_v49, %v2523_v63  ;;  %p511_p5 = scmp.gt.s32.totalorder %s2771_s9, 1  ;;  %p520_p6 = scmp.gt.s32.totalorder %s2771_s9, 2 }
 0x1d8   :  { %s2795_s14 = scalar_select %p502_p4, 1, 0 }
 0x1d9   :  { %v992_v51 = vsel %vm694_vm3, %v991_v50, 0.0  ;;  %s2801_s1 = scalar_select %p511_p5, 1, 0 }
 0x1da   :  { %993 = vadd.xlane.f32.xlu0 %v992_v51  ;;  %s2803_s24 = scalar_select %p520_p6, 1, 0 }
 0x1db   :  { %s2807_s30 = sld [smem:[#allocation5 + $0x83]]  ;;  %p529_p7 = scmp.gt.s32.totalorder %s2771_s9, 3 }
 0x1dc   :  { %s2810_s8 = sld [smem:[#allocation5 + $0x84]]  ;;  %p538_p8 = scmp.gt.s32.totalorder %s2771_s9, 4 }
 0x1dd   :  { %s2813_s17 = sld [smem:[#allocation5 + $0x85]]  ;;  %p547_p9 = scmp.gt.s32.totalorder %s2771_s9, 5 }
 0x1de   :  { %s2815_s7 = scalar_select %p529_p7, 1, 0 }
 0x1df   :  { %s2817_s16 = scalar_select %p538_p8, 1, 0 }
 0x1e0   :  { %s2822_s15 = sld [smem:[#allocation6 + $0x2]]  ;;  %s2824_s28 = sld [smem:[#allocation5 + $0x100]] }
 0x1e1   :  { %3330 = sst [smem:[#allocation54_spill]] %s2817_s16  ;;  %s3399_s9 = smov (!%p511_p5, %s2771_s9), 1 }
 0x1e2   :  { %3328 = sst [smem:[#allocation44_spill]] %s2810_s8  ;;  %s2834_s20 = sld [smem:[#allocation5 + $0x101]] }
 0x1e3   :  { %3329 = sst [smem:[#allocation46_spill]] %s2813_s17  ;;  %s2837_s5 = sld [smem:[#allocation5 + $0x102]] }
 0x1e4   :  { %s2826_s19 = scalar_select %p547_p9, 1, 0 }
 0x1e5   :  { %3332 = sst [smem:[#allocation34_spill]] %s3399_s9  ;;  %s2852_s29 = sld [smem:[#allocation5 + $0x103]] }
 0x1e6   :  { %3331 = sst [smem:[#allocation60_spill]] %s2826_s19  ;;  %p563_p10 = scmp.gt.s32.totalorder %s2822_s15, 0 }
 0x1e7   :  { %p572_p11 = scmp.gt.s32.totalorder %s2822_s15, 1  ;;  %p581_p12 = scmp.gt.s32.totalorder %s2822_s15, 2 }
 0x1e8   :  { %s2842_s25 = scalar_select %p563_p10, 1, 0 }
 0x1e9   :  { %s2846_s17 = scalar_select %p572_p11, 1, 0 }
 0x1ea   :  { %s2850_s19 = scalar_select %p581_p12, 1, 0 }
 0x1eb   :  { %3333 = sst [smem:[#allocation35_spill]] %s2852_s29  ;;  %p590_p13 = scmp.gt.s32.totalorder %s2822_s15, 3 }
 0x1ec   :  { %s2856_s2 = sld [smem:[#allocation5 + $0x104]]  ;;  %p599_p0 = scmp.gt.s32.totalorder %s2822_s15, 4 }
 0x1ed   :  { %s2858_s16 = scalar_select %p590_p13, 1, 0 }
 0x1ee   :  { %s2861_s8 = sld [smem:[#allocation5 + $0x105]]  ;;  %p608_p1 = scmp.gt.s32.totalorder %s2822_s15, 5 }
 0x1ef   :  { %3335 = sst [smem:[#allocation81_spill]] %s2858_s16  ;;  %s2867_s29 = sld [smem:[#allocation6 + $0x3]] }
 0x1f0   :  { %s2865_s10 = scalar_select %p599_p0, 1, 0 }
 0x1f1   :  { %s500_s9 = scalar_lea.vmem [#allocation12], %s2777_s21  ;;  %s3337_s11 = scvt.s32.f32 %s2795_s14 }
 0x1f2   :  { %3334 = sst [smem:[#allocation36_spill]] %s2856_s2  ;;  %s601_s3 = scvt.s32.f32 %s2865_s10  ;;  %v501_v53 = vld [vmem:[%s500_s9] sm:$0x1] }
 0x1f3   :  { %s2871_s2 = scalar_select %p608_p1, 1, 0  ;;  %v505_v14 = vstv %s3337_s11 }
 0x1f4   :  { %3336 = sst [smem:[#allocation85_spill]] %s2861_s8  ;;  %s509_s27 = scalar_lea.vmem [#allocation12], %s2781_s23  ;;  %v506_v61 = vmul.f32 %v505_v14, %v501_v53  ;;  %v602_v47 = vstv %s601_s3 }
 0x1f5   :  { %v510_v54 = vld [vmem:[%s509_s27] sm:$0x1]  ;;  %s3338_s8 = scvt.s32.f32 %s2801_s1  ;;  %s2878_s16 = sld [smem:[#allocation5 + $0x180]] }
 0x1f6   :  { %s439_s0 = scalar_lea.vmem [#allocation12], %s2724_s4  ;;  %s3339_s21 = scvt.s32.f32 %s2743_s26 }
 0x1f7   :  { %v514_v55 = vstv %s3338_s8  ;;  %v440_v56 = vld [vmem:[%s439_s0] sm:$0x1]  ;;  %s448_s9 = scalar_lea.vmem [#allocation12], %s2735_s12  ;;  %s3340_s14 = scvt.s32.f32 %s2747_s13 }
 0x1f8   :  { %v444_v58 = vstv %s3339_s21  ;;  %v449_v59 = vld [vmem:[%s448_s9] sm:$0x1]  ;;  %s610_s11 = scvt.s32.f32 %s2871_s2  ;;  %s2887_s23 = sld [smem:[#allocation5 + $0x181]]  ;;  %v515_v62 = vmul.f32 %v514_v55, %v510_v54 }
 0x1f9   :  { %v453_v60 = vstv %s3340_s14  ;;  %s3401_s15 = smov (!%p572_p11, %s2822_s15), 1  ;;  %s561_s4 = scalar_lea.vmem [#allocation12], %s2824_s28  ;;  %v445_v5 = vmul.f32 %v444_v58, %v440_v56 }
 0x1fa   :  { %v562_v0 = vld [vmem:[%s561_s4] sm:$0x1]  ;;  %s3341_s26 = scvt.s32.f32 %s2842_s25  ;;  %s570_s12 = scalar_lea.vmem [#allocation12], %s2834_s20  ;;  %v454_v6 = vmul.f32 %v453_v60, %v449_v59  ;;  %v516_v13 = vadd.f32 %v515_v62, %v506_v61 }
 0x1fb   :  { %v571_v2 = vld [vmem:[%s570_s12] sm:$0x1]  ;;  %s3342_s13 = scvt.s32.f32 %s2846_s17  ;;  %p624_p2 = scmp.gt.s32.totalorder %s2867_s29, 0 }
 0x1fc   :  { %v566_v1 = vstv %s3341_s26  ;;  %p633_p3 = scmp.gt.s32.totalorder %s2867_s29, 1  ;;  %s518_s0 = scalar_lea.vmem [#allocation12], %s2793_s18  ;;  %v455_v18 = vadd.f32 %v454_v6, %v445_v5 }
 0x1fd   :  { %v575_v4 = vstv %s3342_s13  ;;  %v519_v7 = vld [vmem:[%s518_s0] sm:$0x1]  ;;  %s3343_s8 = scvt.s32.f32 %s2803_s24  ;;  %s616_s27 = scvt.s32.f32 %s3401_s15  ;;  %v567_v11 = vmul.f32 %v566_v1, %v562_v0  ;;  %v611_v1 = vstv %s610_s11 }
 0x1fe   :  { %s2906_s1 = sld [smem:[#allocation5 + $0x182]]  ;;  %s457_s25 = scalar_lea.vmem [#allocation12], %s2737_s22  ;;  %v576_v12 = vmul.f32 %v575_v4, %v571_v2 }
 0x1ff   :  { %v523_v8 = vstv %s3343_s8  ;;  %v458_v9 = vld [vmem:[%s457_s25] sm:$0x1]  ;;  %s3344_s20 = scvt.s32.f32 %s2753_s6  ;;  %s3345_s28 = sld [smem:[#allocation40_spill]]  ;;  %v617_v40 = vstv %s616_s27 }
 0x200   :  { %s625_s17 = scalar_select %p624_p2, 1, 0  ;;  %v524_v15 = vmul.f32 %v523_v8, %v519_v7  ;;  %v577_v24 = vadd.f32 %v576_v12, %v567_v11 }
 0x201   :  { %v462_v10 = vstv %s3344_s20  ;;  %s3346_s21 = sld [smem:[#allocation53_spill]]  ;;  %p642_p4 = scmp.gt.s32.totalorder %s2867_s29, 2 }
 0x202   :  { %s3347_s18 = sld [smem:[#allocation34_spill]]  ;;  %s579_s24 = scalar_lea.vmem [#allocation12], %s2837_s5  ;;  %v463_v52 = vmul.f32 %v462_v10, %v458_v9  ;;  %v525_v29 = vadd.f32 %v524_v15, %v516_v13 }
 0x203   :  { %v580_v16 = vld [vmem:[%s579_s24] sm:$0x1]  ;;  %s3348_s9 = scvt.s32.f32 %s2850_s19  ;;  %s626_s22 = scvt.s32.f32 %s625_s17 }
 0x204   :  { %s527_s6 = scalar_lea.vmem [#allocation12], %s2807_s30  ;;  %s3349_s14 = scvt.s32.f32 %s2815_s7  ;;  %v464_v32 = vadd.f32 %v463_v52, %v455_v18 }
 0x205   :  { %v584_v17 = vstv %s3348_s9  ;;  %v528_v57 = vld [vmem:[%s527_s6] sm:$0x1]  ;;  %s634_s4 = scalar_select %p633_p3, 1, 0  ;;  %v627_v41 = vstv %s626_s22 }
 0x206   :  { %v532_v3 = vstv %s3349_s14  ;;  %s3350_s26 = sld [smem:[#allocation35_spill]]  ;;  %s466_s12 = scalar_lea.vmem [#allocation12], %s3345_s28  ;;  %v585_v26 = vmul.f32 %v584_v17, %v580_v16 }
 0x207   :  { %v467_v19 = vld [vmem:[%s466_s12] sm:$0x1]  ;;  %s3351_s13 = scvt.s32.f32 %s3346_s21  ;;  %s3352_s0 = sld [smem:[#allocation81_spill]]  ;;  %v533_v28 = vmul.f32 %v532_v3, %v528_v57 }
 0x208   :  { %s2925_s5 = scalar_select %p642_p4, 1, 0  ;;  %v586_v21 = vadd.f32 %v585_v26, %v577_v24 }
 0x209   :  { %v471_v20 = vstv %s3351_s13  ;;  %s3353_s19 = scvt.s32.f32 %s3347_s18  ;;  %s3354_s8 = sld [smem:[#allocation44_spill]]  ;;  %v534_v44 = vadd.f32 %v533_v28, %v525_v29 }
 0x20a   :  { %s622_s30 = scalar_lea.vmem [#allocation12], %s2878_s16  ;;  %s3355_s7 = sld [smem:[#allocation54_spill]]  ;;  %v472_v37 = vmul.f32 %v471_v20, %v467_v19 }
 0x20b   :  { %v556_v23 = vstv %s3353_s19  ;;  %v623_v25 = vld [vmem:[%s622_s30] sm:$0x1]  ;;  %s631_s25 = scalar_lea.vmem [#allocation12], %s2887_s23  ;;  %s635_s20 = scvt.s32.f32 %s634_s4 }
 0x20c   :  { %v632_v27 = vld [vmem:[%s631_s25] sm:$0x1]  ;;  %s588_s17 = scalar_lea.vmem [#allocation12], %s3350_s26  ;;  %s644_s21 = scvt.s32.f32 %s2925_s5  ;;  %1575 = vrcp.f32 %v556_v23  ;;  %v628_v38 = vmul.f32 %v627_v41, %v623_v25  ;;  %v473_v53 = vadd.f32 %v472_v37, %v464_v32 }
 0x20d   :  { %v589_v30 = vld [vmem:[%s588_s17] sm:$0x1]  ;;  %s3356_s28 = scvt.s32.f32 %s3352_s0  ;;  %s2935_s18 = sld [smem:[#allocation5 + $0x183]]  ;;  %v636_v36 = vstv %s635_s20  ;;  %1577 = vrcp.f32 %v617_v40 }
 0x20e   :  { %s3358_s23 = sld [smem:[#allocation27_spill]]  ;;  %p651_p5 = scmp.gt.s32.totalorder %s2867_s29, 3  ;;  %v637_v39 = vmul.f32 %v636_v36, %v632_v27  ;;  %v645_v33 = vstv %s644_s21 }
 0x20f   :  { %v593_v31 = vstv %s3356_s28  ;;  %s536_s16 = scalar_lea.vmem [#allocation12], %s3354_s8  ;;  %s2941_s9 = sld [smem:[#allocation5 + $0x184]] }
 0x210   :  { %v537_v34 = vld [vmem:[%s536_s16] sm:$0x1]  ;;  %s3357_s24 = scvt.s32.f32 %s3355_s7  ;;  %s3359_s22 = sld [smem:[#allocation36_spill]]  ;;  %v594_v22 = vmul.f32 %v593_v31, %v589_v30  ;;  %v638_v14 = vadd.f32 %v637_v39, %v628_v38 }
 0x211   :  { %p660_p6 = scmp.gt.s32.totalorder %s2867_s29, 4  ;;  %s3360_s6 = sld [smem:[#allocation45_spill]] }
 0x212   :  { %v541_v35 = vstv %s3357_s24  ;;  %s2944_s14 = sld [smem:[#allocation5 + $0x185]]  ;;  %s3361_s4 = sld [smem:[#allocation22_spill]]  ;;  %v595_v55 = vadd.f32 %v594_v22, %v586_v21  ;;  %v1293_v22 = vpop.xlane.xlu1 %1292 }
 0x213   :  { %s3362_s26 = sld [smem:[#allocation46_spill]]  ;;  %s640_s12 = scalar_lea.vmem [#allocation12], %s2906_s1  ;;  %v542_v45 = vmul.f32 %v541_v35, %v537_v34 }
 0x214   :  { %s3363_s13 = sld [smem:[#allocation60_spill]]  ;;  %v641_v42 = vld [vmem:[%s640_s12] sm:$0x1]  ;;  %s3364_s5 = scvt.s32.f32 %s3358_s23 }
 0x215   :  { %s652_s0 = scalar_select %p651_p5, 1, 0  ;;  %v646_v54 = vmul.f32 %v645_v33, %v641_v42  ;;  %v543_v61 = vadd.f32 %v542_v45, %v534_v44  ;;  %v1294_v42 = vsub.f32 0.0, %v1293_v22 }
 0x216   :  { %v495_v43 = vstv %s3364_s5  ;;  %s597_s19 = scalar_lea.vmem [#allocation12], %s3359_s22  ;;  %s3367_s25 = sld [smem:[#allocation85_spill]]  ;;  %v1576_v11 = vpop.eup %1575 }
 0x217   :  { %v598_v46 = vld [vmem:[%s597_s19] sm:$0x1]  ;;  %s2958_s8 = scalar_select %p660_p6, 1, 0  ;;  %1579 = vrcp.f32 %v495_v43  ;;  %v647_v5 = vadd.f32 %v646_v54, %v638_v14  ;;  %v1578_v19 = vpop.eup %1577  ;;  %v1296_v43 = vand.u32 2147483647, %v1294_v42 }
 0x218   :  { %s475_s15 = scalar_lea.vmem [#allocation12], %s3360_s6  ;;  %s3365_s27 = scvt.s32.f32 %s3361_s4  ;;  %v603_v56 = vmul.f32 %v602_v47, %v598_v46 }
 0x219   :  { %v476_v48 = vld [vmem:[%s475_s15] sm:$0x1]  ;;  %s545_s1 = scalar_lea.vmem [#allocation12], %s3362_s26  ;;  %s653_s7 = scvt.s32.f32 %s652_s0  ;;  %v1297_v45 = vsub.f32 0.0, %v1296_v43 }
 0x21a   :  { %v480_v49 = vstv %s3365_s27  ;;  %v546_v50 = vld [vmem:[%s545_s1] sm:$0x1]  ;;  %s3366_s30 = scvt.s32.f32 %s3363_s13  ;;  %p669_p7 = scmp.gt.s32.totalorder %s2867_s29, 5  ;;  %v604_v7 = vadd.f32 %v603_v56, %v595_v55 }
 0x21b   :  { %s3368_s3 = sld [smem:[#allocation58_spill]]  ;;  %s649_s20 = scalar_lea.vmem [#allocation12], %s2935_s18  ;;  %v654_v59 = vstv %s653_s7  ;;  %v481_v60 = vmul.f32 %v480_v49, %v476_v48  ;;  %v1298_v47 = vmul.f32 1.442695, %v1297_v45 }
 0x21c   :  { %v550_v51 = vstv %s3366_s30  ;;  %s3369_s10 = sld [smem:[#allocation26_spill]]  ;;  %v650_v58 = vld [vmem:[%s649_s20] sm:$0x1]  ;;  %s662_s17 = scvt.s32.f32 %s2958_s8 }
 0x21d   :  { %v551_v62 = vmul.f32 %v550_v51, %v546_v50  ;;  %s606_s28 = scalar_lea.vmem [#allocation12], %s3367_s25  ;;  %v655_v6 = vmul.f32 %v654_v59, %v650_v58  ;;  %s3403_s29 = smov (!%p633_p3, %s2867_s29), 1  ;;  %v482_v12 = vadd.f32 %v481_v60, %v473_v53 }
 0x21e   :  { %v607_v0 = vld [vmem:[%s606_s28] sm:$0x1]  ;;  %s670_s24 = scalar_select %p669_p7, 1, 0  ;;  %v663_v10 = vstv %s662_s17 }
 0x21f   :  { %v612_v8 = vmul.f32 %v611_v1, %v607_v0  ;;  %s658_s18 = scalar_lea.vmem [#allocation12], %s2941_s9  ;;  %v552_v15 = vadd.f32 %v551_v62, %v543_v61  ;;  %s677_s2 = scvt.s32.f32 %s3403_s29  ;;  %v656_v16 = vadd.f32 %v655_v6, %v647_v5  ;;  %v1295_v6 = vmin.f32 %v1294_v42, 0.0 }
 0x220   :  { %v659_v9 = vld [vmem:[%s658_s18] sm:$0x1]  ;;  %s671_s23 = scvt.s32.f32 %s670_s24  ;;  %s667_s11 = scalar_lea.vmem [#allocation12], %s2944_s14 }
 0x221   :  { %s484_s21 = scalar_lea.vmem [#allocation12], %s3368_s3  ;;  %v664_v17 = vmul.f32 %v663_v10, %v659_v9  ;;  %v678_v18 = vstv %s677_s2  ;;  %v613_v52 = vadd.f32 %v612_v8, %v604_v7  ;;  %v668_v57 = vld [vmem:[%s667_s11] sm:$0x1]  ;;  %v558_v23 = vmul.f32 %v1576_v11, %v552_v15  ;;  %v1580_v24 = vpop.eup %1579  ;;  %s1749_s29 = smov [#allocation14]  }
 0x222   :  { %v485_v2 = vld [vmem:[%s484_s21] sm:$0x1]  ;;  %s3370_s16 = scvt.s32.f32 %s3369_s10  ;;  %v672_v3 = vstv %s671_s23  ;;  %1581 = vrcp.f32 %v678_v18  ;;  %s1312_s9 = sshll.u32 %s1749_s29, 4  ;;  %s1313_s9 = int_to_ptr.vmem [resolvable:$true] %s1312_s9 }
 0x223   :  { %v665_v26 = vadd.f32 %v664_v17, %v656_v16  ;;  %v673_v25 = vmul.f32 %v672_v3, %v668_v57  ;;  %v619_v41 = vmul.f32 %v1578_v19, %v613_v52  ;;  %v682_v29 = vrot.slane %v558_v23, 7  ;;  %s1709_s22 = scalar_lea.vmem %s1313_s9, 64  ;;  %p1714_p9 = scmp.lt.s32.totalorder %s1313_s9, %s1313_s9 }
 0x224   :  { %v489_v4 = vstv %s3370_s16  ;;  %p1710_p8 = scmp.ne.s32.totalorder %s1313_s9, %s1709_s22  ;;  %p1715_p10 = scmp.lt.s32.totalorder %s1709_s22, %s1709_s22 }
 0x225   :  { %v490_v13 = vmul.f32 %v489_v4, %v485_v2  ;;  %v674_v28 = vadd.f32 %v673_v25, %v665_v26  ;;  %v685_v30 = vrot.slane %v619_v41, 6 }
 0x226   :  { %p1716_p11 = por %p1715_p10, %p1714_p9 }
 0x227   :  { %v491_v20 = vadd.f32 %v490_v13, %v482_v12 }
 0x228   :  { %p1717_p12 = pnand %p1716_p11, %p1710_p8 }
 0x229   :  { %v497_v27 = vmul.f32 %v1580_v24, %v491_v20 }
 0x22b   :  { %v690_v31 = vsel %vm431_vm0, %v497_v27, %v682_v29 }
 0x22c   :  { %v1582_v32 = vpop.eup %1581  ;;  %v691_v35 = vsel %vm433_vm1, %v690_v31, %v685_v30 }
 0x22d   :  { %v680_v34 = vmul.f32 %v1582_v32, %v674_v28 }
 0x22f   :  { %v688_v36 = vrot.slane %v680_v34, 5 }
 0x231   :  { %v692_v37 = vsel %vm435_vm2, %v691_v35, %v688_v36 }
 0x232   :  { %v693_v38 = vmul.f32 %v692_v37, %v2523_v63 }
 0x234   :  { %v695_v39 = vsel %vm694_vm3, %v693_v38, 0.0 }
 0x235   :  { %696 = vadd.xlane.f32.xlu0 %v695_v39 }
 0x267   :  { %v994_v21 = vpop.xlane.xlu0 %993 }
 0x268   :  { %v995_v40 = vsub.f32 0.0, %v994_v21 }
 0x26a   :  { %v997_v33 = vand.u32 2147483647, %v995_v40  ;;  %v996_v2 = vmin.f32 %v995_v40, 0.0 }
 0x26c   :  { %v998_v44 = vsub.f32 0.0, %v997_v33 }
 0x26e   :  { %v999_v46 = vmul.f32 1.442695, %v998_v44 }
 0x270   :  { %1583 = vpow2.f32 %v999_v46 }
 0x271   :  { %1585 = vpow2.f32 %v1298_v47 }
 0x27a   :  { %v1584_v63 = vpop.eup %1583 }
 0x27b   :  { %v1586_v53 = vpop.eup %1585  ;;  %v1001_v14 = vadd.f32 1.0, %v1584_v63 }
 0x27c   :  { %v1300_v54 = vadd.f32 1.0, %v1586_v53 }
 0x2c2   :  { %v697_v48 = vpop.xlane.xlu0 %696 }
 0x2c3   :  { %v699_v49 = vand.u32 2147483647, %v697_v48  ;;  %v698_v0 = vmin.f32 %v697_v48, 0.0 }
 0x2c5   :  { %v700_v50 = vsub.f32 0.0, %v699_v49 }
 0x2c7   :  { %v701_v51 = vmul.f32 1.442695, %v700_v50 }
 0x2c9   :  { %1587 = vpow2.f32 %v701_v51 }
 0x2ca   :  { %1589 = vlog2.f32 %v1001_v14 }
 0x2cb   :  { %1591 = vlog2.f32 %v1300_v54 }
 0x2d3   :  { %v1588_v55 = vpop.eup %1587 }
 0x2d4   :  { %v703_v56 = vadd.f32 1.0, %v1588_v55  ;;  %v1590_v58 = vpop.eup %1589 }
 0x2d5   :  { %v1592_v59 = vpop.eup %1591  ;;  %v1003_v60 = vmul.f32 0.6931472, %v1590_v58 }
 0x2d6   :  { %1593 = vlog2.f32 %v703_v56  ;;  %v1302_v62 = vmul.f32 0.6931472, %v1592_v59 }
 0x2d7   :  { %v1004_v5 = vsub.f32 %v996_v2, %v1003_v60 }
 0x2d8   :  { %v1303_v8 = vsub.f32 %v1295_v6, %v1302_v62 }
 0x2e0   :  { %v1594_v61 = vpop.eup %1593 }
 0x2e1   :  { %v705_v1 = vmul.f32 0.6931472, %v1594_v61 }
 0x2e3   :  { %v706_v4 = vsub.f32 %v698_v0, %v705_v1 }
 0x2e5   :  { %v1005_v7 = vadd.f32 %v1004_v5, %v706_v4 }
 0x2e7   :  { %v1304_v9 = vadd.f32 %v1303_v8, %v1005_v7 }
 0x2e9   :  { %1305 = vst [vmem:[#allocation14] sm:$0xf] %v1304_v9 }
 0x2ea   :  { %1720 = shalt.err (!%p1717_p12)
}
 0x2eb   :  { %s3371_s4 = sld [smem:[#allocation89_spill]] }
 0x2f1   :  { %s1721_s26 = scalar_lea.hbm %s3371_s4, 64 }
 0x2f2   :  { %p1722_p13 = scmp.ne.s32.totalorder %s3371_s4, %s1721_s26  ;;  %p1725_p0 = scmp.lt.u32.totalorder %s1721_s26, %s3371_s4 }
 0x2f4   :  { %p1727_p1 = pnand %p1725_p0, %p1722_p13 }
 0x2f6   :  { %1730 = shalt.err (!%p1727_p1)
}
 0x2f7   :  { %1315 = dma.vmem_to_hbm [thread:$0]  %s1313_s9, 64, %s3371_s4, [#allocation11]  }
 0x2f8   :  { %1737 = dma.done.wait [#allocation11], 64  }
 0x2f9   :  { %1738 = vsyncadd [#allocation11], 4294967232 }
 0x2fa   :  { %1319 = vsyncpa [#allocation10], 1 }
 0x2fb   :  { %1320 = vsyncpa [#allocation13], 1 }
 0x2fc   :  { %1321 = vsyncpa [#allocation11], 1 }

</bundles_post_ra>
